<compile_context>
chip_gen: v5e
topology: v5e:2x2
jax: 0.10.0
libtpu: 0.0.40
codegen_flags: <defaults>
</compile_context>

<pallas_src>
import functools

import jax
import jax.numpy as jnp
from jax import lax
from jax.experimental import pallas as pl
from jax.experimental.pallas import tpu as pltpu


def _round_up(v, m):
    return ((v + m - 1) // m) * m


# ============================================================================
# 1) Fused Bottleneck block kernel (one grid step == one batch element)
# ============================================================================
def _bottleneck_kernel(x_ref, w1_ref, w2_ref, w3_ref,
                       b1_ref, b2_ref, b3_ref,
                       mlo_ref, mhi_ref,
                       o_ref, h1p_ref, *, M, W, PAD, TRAIL):
    # x_ref:  (1, M, C1) flat NHWC activations (M = H*W), also the residual.
    # w1_ref: (C1, Cm)  w2_ref: (9, Cm, Cm) tap-major HWIO  w3_ref: (Cm, C1)
    # b*_ref: (1, C) folded BN shift (scale already folded into the weights).
    # mlo/mhi: (M, 1) W-boundary masks.
    # h1p_ref: VMEM scratch (PAD + M + TRAIL, Cm) flat buffer, zero borders.
    cm = w1_ref.shape[1]
    x = x_ref[0]                                              # (M, C1)

    # ---- stage 1: 1x1 conv (+ folded BN scale) + shift + ReLU ----
    h1 = jnp.dot(x, w1_ref[...], preferred_element_type=jnp.float32)
    h1 = jnp.maximum(h1 + b1_ref[...], 0.0)                   # (M, Cm)

    # ---- stage 2: 3x3 conv (pad=1) + shift + ReLU ----
    # H halo handled by zero borders of the flat scratch; W halo by masks.
    # Borders are zeroed every step (each TensorCore owns its own scratch).
    h1p_ref[pl.ds(0, PAD), :] = jnp.zeros((PAD, cm), jnp.float32)
    h1p_ref[pl.ds(PAD + M, TRAIL), :] = jnp.zeros((TRAIL, cm), jnp.float32)
    h1p_ref[pl.ds(PAD, M), :] = h1

    mlo = jnp.broadcast_to(mlo_ref[...], (M, cm))             # hoisted broadcast
    mhi = jnp.broadcast_to(mhi_ref[...], (M, cm))
    acc = jnp.zeros((M, cm), jnp.float32)
    for t in range(9):                                        # unrolled taps
        dy, dx = t // 3, t % 3
        start = PAD + (dy - 1) * W + (dx - 1)                 # static offset
        win = h1p_ref[pl.ds(start, M), :]                     # (M, Cm) window
        if dx == 0:
            win = win * mlo
        elif dx == 2:
            win = win * mhi
        acc = acc + jnp.dot(win, w2_ref[t],
                            preferred_element_type=jnp.float32)
    h2 = jnp.maximum(acc + b2_ref[...], 0.0)                  # (M, Cm)

    # ---- stage 3: 1x1 conv + shift + residual add + ReLU ----
    y = jnp.dot(h2, w3_ref[...], preferred_element_type=jnp.float32)
    o_ref[0] = jnp.maximum(y + b3_ref[...] + x, 0.0).astype(o_ref.dtype)


def bottleneck_forward_nhwc(x_nhwc, params):
    """Fused bottleneck, NHWC in / NHWC out (preferred when stacking blocks)."""
    N, H, W, C1 = x_nhwc.shape
    Cm = params["w1"].shape[1]
    assert params["w3"].shape == (Cm, C1), \
        "identity residual needs inplanes == planes*4"

    M = H * W
    PAD = _round_up(W + 1, 8)                  # leading zero rows (8-aligned)
    TRAIL = _round_up(W + 1, 8)                # trailing zero rows
    R = PAD + M + TRAIL

    x3 = x_nhwc.reshape(N, M, C1)              # free row-major merge

    # One-time fold of BN scale into the conv weights (inference BN fold).
    w1 = params["w1"] * params["s1"][None, :]
    w2 = (params["w2_hwio"] * params["s2"][None, None, None, :]).reshape(9, Cm, Cm)
    w3 = params["w3"] * params["s3"][None, :]
    b1 = params["b1"].reshape(1, Cm)
    b2 = params["b2"].reshape(1, Cm)
    b3 = params["b3"].reshape(1, C1)

    # W-boundary masks (H boundary handled by the scratch zero borders).
    col = jnp.arange(M, dtype=jnp.int32) % W
    m_lo = (col >= 1).astype(jnp.float32).reshape(M, 1)      # valid for dx == 0
    m_hi = (col <= W - 2).astype(jnp.float32).reshape(M, 1)  # valid for dx == 2

    kernel = functools.partial(_bottleneck_kernel, M=M, W=W, PAD=PAD, TRAIL=TRAIL)
    out = pl.pallas_call(
        kernel,
        out_shape=jax.ShapeDtypeStruct((N, M, C1), jnp.float32),
        grid=(N,),
        in_specs=[
            pl.BlockSpec((1, M, C1), lambda n: (n, 0, 0)),    # x (+ residual)
            pl.BlockSpec((C1, Cm), lambda n: (0, 0)),         # w1 (scale-folded)
            pl.BlockSpec((9, Cm, Cm), lambda n: (0, 0, 0)),   # w2 taps
            pl.BlockSpec((Cm, C1), lambda n: (0, 0)),         # w3
            pl.BlockSpec((1, Cm), lambda n: (0, 0)),          # b1
            pl.BlockSpec((1, Cm), lambda n: (0, 0)),          # b2
            pl.BlockSpec((1, C1), lambda n: (0, 0)),          # b3
            pl.BlockSpec((M, 1), lambda n: (0, 0)),           # mask dx==0
            pl.BlockSpec((M, 1), lambda n: (0, 0)),           # mask dx==2
        ],
        out_specs=pl.BlockSpec((1, M, C1), lambda n: (n, 0, 0)),
        scratch_shapes=[pltpu.VMEM((R, Cm), jnp.float32)],
        compiler_params=pltpu.CompilerParams(
            dimension_semantics=("parallel",)),               # megacore / 2 TCs
    )(x3, w1, w2, w3, b1, b2, b3, m_lo, m_hi)
    return out.reshape(N, H, W, C1)


def bottleneck_forward(x_nchw, params):
    """NCHW boundary wrapper matching the PyTorch Bottleneck.forward()."""
    x = jnp.transpose(x_nchw, (0, 2, 3, 1))          # NCHW -> NHWC (boundary)
    out = bottleneck_forward_nhwc(x, params)
    return jnp.transpose(out, (0, 3, 1, 2))          # NHWC -> NCHW


# ============================================================================
# 2) Fused MLP head kernel (forward_features_to_output):
#    Linear(2048->1024) -> ReLU -> Linear(1024->outsize)
# ============================================================================
def _mlp_head_kernel(x_ref, w1_ref, b1_ref, w2_ref, b2_ref, o_ref, acc_ref):
    k = pl.program_id(0)

    @pl.when(k == 0)
    def _():
        acc_ref[...] = jnp.zeros_like(acc_ref)

    acc_ref[...] += jnp.dot(x_ref[...], w1_ref[...],
                            preferred_element_type=jnp.float32)

    @pl.when(k == pl.num_programs(0) - 1)
    def _():
        h = jnp.maximum(acc_ref[...] + b1_ref[...], 0.0)      # hidden in VMEM
        o_ref[...] = (jnp.dot(h, w2_ref[...],
                              preferred_element_type=jnp.float32)
                      + b2_ref[...]).astype(o_ref.dtype)


def deca_head_forward(features, head_params, *, tk=512):
    B, F = features.shape
    H1 = head_params["w1"].shape[1]
    O = head_params["w2"].shape[1]
    assert F % tk == 0
    b1 = head_params["b1"].reshape(1, H1)
    b2 = head_params["b2"].reshape(1, O)
    return pl.pallas_call(
        _mlp_head_kernel,
        out_shape=jax.ShapeDtypeStruct((B, O), jnp.float32),
        grid=(F // tk,),
        in_specs=[
            pl.BlockSpec((B, tk), lambda k: (0, k)),          # features chunk
            pl.BlockSpec((tk, H1), lambda k: (k, 0)),         # W1 chunk
            pl.BlockSpec((1, H1), lambda k: (0, 0)),          # b1
            pl.BlockSpec((H1, O), lambda k: (0, 0)),          # W2 (resident)
            pl.BlockSpec((1, O), lambda k: (0, 0)),           # b2
        ],
        out_specs=pl.BlockSpec((B, O), lambda k: (0, 0)),
        scratch_shapes=[pltpu.VMEM((B, H1), jnp.float32)],
        compiler_params=pltpu.CompilerParams(
            dimension_semantics=("arbitrary",)),              # K reduction
    )(features, head_params["w1"], b1, head_params["w2"], b2)


# ============================================================================
# Deterministic parameter construction + pure-JAX references
# ============================================================================
def _fold_bn(gamma, beta, mean, var, eps=1e-5):
    scale = gamma / jnp.sqrt(var + eps)
    shift = beta - mean * scale
    return scale, shift


def make_params(key, inplanes, planes):
    ks = jax.random.split(key, 6)
    exp = 4
    # PyTorch conv weight layouts: (Cout, Cin, kh, kw)
    w1_t = 0.1 * jax.random.normal(ks[0], (planes, inplanes, 1, 1), jnp.float32)
    w2_t = 0.1 * jax.random.normal(ks[1], (planes, planes, 3, 3), jnp.float32)
    w3_t = 0.1 * jax.random.normal(ks[2], (planes * exp, planes, 1, 1), jnp.float32)

    def bn(k, c):
        k1, k2, k3, k4 = jax.random.split(k, 4)
        gamma = 1.0 + 0.1 * jax.random.normal(k1, (c,), jnp.float32)
        beta = 0.1 * jax.random.normal(k2, (c,), jnp.float32)
        mean = 0.1 * jax.random.normal(k3, (c,), jnp.float32)
        var = 0.5 + jax.random.uniform(k4, (c,), jnp.float32)
        return _fold_bn(gamma, beta, mean, var)

    s1, b1 = bn(ks[3], planes)
    s2, b2 = bn(ks[4], planes)
    s3, b3 = bn(ks[5], planes * exp)

    return {
        "w1": w1_t[:, :, 0, 0].T,                      # (Cin, Cm)
        "w2_hwio": jnp.transpose(w2_t, (2, 3, 1, 0)),  # (3, 3, Cm, Cm) HWIO
        "w3": w3_t[:, :, 0, 0].T,                      # (Cm, Cin)
        "s1": s1, "b1": b1, "s2": s2, "b2": b2, "s3": s3, "b3": b3,
    }


def make_head_params(key, feat, hidden, outsize):
    k1, k2, k3, k4 = jax.random.split(key, 4)
    return {
        "w1": jax.random.normal(k1, (feat, hidden), jnp.float32) / (feat ** 0.5),
        "b1": 0.1 * jax.random.normal(k2, (hidden,), jnp.float32),
        "w2": jax.random.normal(k3, (hidden, outsize), jnp.float32) / (hidden ** 0.5),
        "b2": 0.1 * jax.random.normal(k4, (outsize,), jnp.float32),
    }


def reference_bottleneck(x_nchw, params):
    """Pure-JAX reference using lax.conv_general_dilated (NHWC/HWIO)."""
    x = jnp.transpose(x_nchw, (0, 2, 3, 1))
    dn = ("NHWC", "HWIO", "NHWC")

    y = lax.conv_general_dilated(x, params["w1"][None, None], (1, 1), "VALID",
                                 dimension_numbers=dn)
    y = jnp.maximum(y * params["s1"] + params["b1"], 0.0)

    y = lax.conv_general_dilated(y, params["w2_hwio"], (1, 1),
                                 ((1, 1), (1, 1)), dimension_numbers=dn)
    y = jnp.maximum(y * params["s2"] + params["b2"], 0.0)

    y = lax.conv_general_dilated(y, params["w3"][None, None], (1, 1), "VALID",
                                 dimension_numbers=dn)
    y = jnp.maximum(y * params["s3"] + params["b3"] + x, 0.0)
    return jnp.transpose(y, (0, 3, 1, 2))


def reference_head(x, hp):
    h = jnp.maximum(x @ hp["w1"] + hp["b1"], 0.0)
    return h @ hp["w2"] + hp["b2"]


# ============================================================================
if __name__ == "__main__":
    key = jax.random.PRNGKey(0)
    k_x, k_p, k_f, k_h = jax.random.split(key, 4)

    # ---- Bottleneck block demo (identity-residual block of the backbone) ----
    # inplanes = 128 keeps the kernel's output lane dim a multiple of 128
    # (dense stores); planes = 32 is the bottleneck width.
    N, planes, H, W = 2, 32, 16, 16
    inplanes = planes * 4
    x = jax.random.normal(k_x, (N, inplanes, H, W), jnp.float32)   # NCHW
    params = make_params(k_p, inplanes, planes)

    out = jax.block_until_ready(bottleneck_forward(x, params))
    ref = reference_bottleneck(x, params)
    assert out.shape == (N, inplanes, H, W)
    err = float(jnp.max(jnp.abs(out - ref)))
    assert jnp.allclose(out, ref, atol=2e-3, rtol=2e-3), err

    # ---- MLP head demo (forward_features_to_output) ----
    B, F, H1, O = 2, 2048, 1024, 256
    feats = jax.random.normal(k_f, (B, F), jnp.float32)
    hp = make_head_params(k_h, F, H1, O)
    pout = jax.block_until_ready(deca_head_forward(feats, hp))
    pref = reference_head(feats, hp)
    err2 = float(jnp.max(jnp.abs(pout - pref)))
    assert jnp.allclose(pout, pref, atol=2e-3, rtol=2e-3), err2

    print("KERNEL_OK")
</pallas_src>

<mosaic_0001>
module attributes {stable_mosaic.version = 11 : i64} {
  func.func @_bottleneck_kernel(%arg0: i32, %arg1: memref<1x256x128xf32, #tpu.memory_space<vmem>>, %arg2: memref<128x32xf32, #tpu.memory_space<vmem>>, %arg3: memref<9x32x32xf32, #tpu.memory_space<vmem>>, %arg4: memref<32x128xf32, #tpu.memory_space<vmem>>, %arg5: memref<1x32xf32, #tpu.memory_space<vmem>>, %arg6: memref<1x32xf32, #tpu.memory_space<vmem>>, %arg7: memref<1x128xf32, #tpu.memory_space<vmem>>, %arg8: memref<256x1xf32, #tpu.memory_space<vmem>>, %arg9: memref<256x1xf32, #tpu.memory_space<vmem>>, %arg10: memref<1x256x128xf32, #tpu.memory_space<vmem>>, %arg11: memref<304x32xf32, #tpu.memory_space<vmem>>) attributes {dimension_semantics = [#tpu.dimension_semantics<parallel>], iteration_bounds = array<i64: 2>, scalar_prefetch = 0 : i64, scratch_operands = 1 : i64, tpu.core_type = #tpu.core_type<tc>, window_params = [{transform_indices = @transform_0, window_bounds = array<i64: 1, 256, 128>}, {pipeline_mode = #tpu.pipeline_mode<synchronous>, transform_indices = @transform_1, window_bounds = array<i64: 128, 32>}, {pipeline_mode = #tpu.pipeline_mode<synchronous>, transform_indices = @transform_2, window_bounds = array<i64: 9, 32, 32>}, {pipeline_mode = #tpu.pipeline_mode<synchronous>, transform_indices = @transform_3, window_bounds = array<i64: 32, 128>}, {pipeline_mode = #tpu.pipeline_mode<synchronous>, transform_indices = @transform_4, window_bounds = array<i64: 1, 32>}, {pipeline_mode = #tpu.pipeline_mode<synchronous>, transform_indices = @transform_5, window_bounds = array<i64: 1, 32>}, {pipeline_mode = #tpu.pipeline_mode<synchronous>, transform_indices = @transform_6, window_bounds = array<i64: 1, 128>}, {pipeline_mode = #tpu.pipeline_mode<synchronous>, transform_indices = @transform_7, window_bounds = array<i64: 256, 1>}, {pipeline_mode = #tpu.pipeline_mode<synchronous>, transform_indices = @transform_8, window_bounds = array<i64: 256, 1>}, {transform_indices = @transform_9, window_bounds = array<i64: 1, 256, 128>}]} {
    %c0 = arith.constant 0 : index
    %c0_0 = arith.constant 0 : index
    %c0_1 = arith.constant 0 : index
    %0 = vector.load %arg1[%c0, %c0_0, %c0_1] : memref<1x256x128xf32, #tpu.memory_space<vmem>>, vector<1x256x128xf32>
    %1 = vector.shape_cast %0 : vector<1x256x128xf32> to vector<256x128xf32>
    %c0_2 = arith.constant 0 : index
    %c0_3 = arith.constant 0 : index
    %2 = vector.load %arg2[%c0_2, %c0_3] : memref<128x32xf32, #tpu.memory_space<vmem>>, vector<128x32xf32>
    %cst = arith.constant dense<0.000000e+00> : vector<256x32xf32>
    %3 = tpu.matmul %1, %2, %cst {dimension_numbers = #tpu.dot_dimension_numbers<[1], [0], [0], [1], [0, 0, 1, 1], [], []>} : vector<256x128xf32>, vector<128x32xf32>, vector<256x32xf32> -> vector<256x32xf32>
    %c0_4 = arith.constant 0 : index
    %c0_5 = arith.constant 0 : index
    %4 = vector.load %arg5[%c0_4, %c0_5] : memref<1x32xf32, #tpu.memory_space<vmem>>, vector<1x32xf32>
    %5 = vector.broadcast %4 : vector<1x32xf32> to vector<256x32xf32>
    %6 = arith.addf %3, %5 : vector<256x32xf32>
    %cst_6 = arith.constant 0.000000e+00 : f32
    %7 = vector.broadcast %cst_6 : f32 to vector<256x32xf32>
    %8 = arith.maximumf %6, %7 : vector<256x32xf32>
    %cst_7 = arith.constant 0.000000e+00 : f32
    %9 = vector.broadcast %cst_7 : f32 to vector<24x32xf32>
    %c0_8 = arith.constant 0 : index
    %c0_9 = arith.constant 0 : index
    %10 = vector.load %arg11[%c0_8, %c0_9] : memref<304x32xf32, #tpu.memory_space<vmem>>, vector<24x32xf32>
    tpu.vector_store %arg11[%c0_8, %c0_9], %9 {strides = array<i32>} : memref<304x32xf32, #tpu.memory_space<vmem>>, vector<24x32xf32>,
    %cst_10 = arith.constant 0.000000e+00 : f32
    %11 = vector.broadcast %cst_10 : f32 to vector<24x32xf32>
    %c280 = arith.constant 280 : index
    %c0_11 = arith.constant 0 : index
    %12 = vector.load %arg11[%c280, %c0_11] : memref<304x32xf32, #tpu.memory_space<vmem>>, vector<24x32xf32>
    tpu.vector_store %arg11[%c280, %c0_11], %11 {strides = array<i32>} : memref<304x32xf32, #tpu.memory_space<vmem>>, vector<24x32xf32>,
    %c24 = arith.constant 24 : index
    %c0_12 = arith.constant 0 : index
    %13 = vector.load %arg11[%c24, %c0_12] : memref<304x32xf32, #tpu.memory_space<vmem>>, vector<256x32xf32>
    tpu.vector_store %arg11[%c24, %c0_12], %8 {strides = array<i32>} : memref<304x32xf32, #tpu.memory_space<vmem>>, vector<256x32xf32>,
    %c0_13 = arith.constant 0 : index
    %c0_14 = arith.constant 0 : index
    %14 = vector.load %arg8[%c0_13, %c0_14] : memref<256x1xf32, #tpu.memory_space<vmem>>, vector<256x1xf32>
    %15 = vector.shape_cast %14 : vector<256x1xf32> to vector<256x1xf32>
    %16 = vector.broadcast %15 : vector<256x1xf32> to vector<256x32xf32>
    %c0_15 = arith.constant 0 : index
    %c0_16 = arith.constant 0 : index
    %17 = vector.load %arg9[%c0_15, %c0_16] : memref<256x1xf32, #tpu.memory_space<vmem>>, vector<256x1xf32>
    %18 = vector.shape_cast %17 : vector<256x1xf32> to vector<256x1xf32>
    %19 = vector.broadcast %18 : vector<256x1xf32> to vector<256x32xf32>
    %cst_17 = arith.constant 0.000000e+00 : f32
    %20 = vector.broadcast %cst_17 : f32 to vector<256x32xf32>
    %c7 = arith.constant 7 : index
    %c0_18 = arith.constant 0 : index
    %21 = vector.load %arg11[%c7, %c0_18] : memref<304x32xf32, #tpu.memory_space<vmem>>, vector<256x32xf32>
    %22 = arith.mulf %21, %16 : vector<256x32xf32>
    %c0_19 = arith.constant 0 : index
    %c0_20 = arith.constant 0 : index
    %c0_21 = arith.constant 0 : index
    %23 = vector.load %arg3[%c0_19, %c0_20, %c0_21] : memref<9x32x32xf32, #tpu.memory_space<vmem>>, vector<1x32x32xf32>
    %24 = vector.shape_cast %23 : vector<1x32x32xf32> to vector<32x32xf32>
    %cst_22 = arith.constant dense<0.000000e+00> : vector<256x32xf32>
    %25 = tpu.matmul %22, %24, %cst_22 {dimension_numbers = #tpu.dot_dimension_numbers<[1], [0], [0], [1], [0, 0, 1, 1], [], []>} : vector<256x32xf32>, vector<32x32xf32>, vector<256x32xf32> -> vector<256x32xf32>
    %26 = arith.addf %20, %25 : vector<256x32xf32>
    %c8 = arith.constant 8 : index
    %c0_23 = arith.constant 0 : index
    %27 = vector.load %arg11[%c8, %c0_23] : memref<304x32xf32, #tpu.memory_space<vmem>>, vector<256x32xf32>
    %c1 = arith.constant 1 : index
    %c0_24 = arith.constant 0 : index
    %c0_25 = arith.constant 0 : index
    %28 = vector.load %arg3[%c1, %c0_24, %c0_25] : memref<9x32x32xf32, #tpu.memory_space<vmem>>, vector<1x32x32xf32>
    %29 = vector.shape_cast %28 : vector<1x32x32xf32> to vector<32x32xf32>
    %cst_26 = arith.constant dense<0.000000e+00> : vector<256x32xf32>
    %30 = tpu.matmul %27, %29, %cst_26 {dimension_numbers = #tpu.dot_dimension_numbers<[1], [0], [0], [1], [0, 0, 1, 1], [], []>} : vector<256x32xf32>, vector<32x32xf32>, vector<256x32xf32> -> vector<256x32xf32>
    %31 = arith.addf %26, %30 : vector<256x32xf32>
    %c9 = arith.constant 9 : index
    %c0_27 = arith.constant 0 : index
    %32 = vector.load %arg11[%c9, %c0_27] : memref<304x32xf32, #tpu.memory_space<vmem>>, vector<256x32xf32>
    %33 = arith.mulf %32, %19 : vector<256x32xf32>
    %c2 = arith.constant 2 : index
    %c0_28 = arith.constant 0 : index
    %c0_29 = arith.constant 0 : index
    %34 = vector.load %arg3[%c2, %c0_28, %c0_29] : memref<9x32x32xf32, #tpu.memory_space<vmem>>, vector<1x32x32xf32>
    %35 = vector.shape_cast %34 : vector<1x32x32xf32> to vector<32x32xf32>
    %cst_30 = arith.constant dense<0.000000e+00> : vector<256x32xf32>
    %36 = tpu.matmul %33, %35, %cst_30 {dimension_numbers = #tpu.dot_dimension_numbers<[1], [0], [0], [1], [0, 0, 1, 1], [], []>} : vector<256x32xf32>, vector<32x32xf32>, vector<256x32xf32> -> vector<256x32xf32>
    %37 = arith.addf %31, %36 : vector<256x32xf32>
    %c23 = arith.constant 23 : index
    %c0_31 = arith.constant 0 : index
    %38 = vector.load %arg11[%c23, %c0_31] : memref<304x32xf32, #tpu.memory_space<vmem>>, vector<256x32xf32>
    %39 = arith.mulf %38, %16 : vector<256x32xf32>
    %c3 = arith.constant 3 : index
    %c0_32 = arith.constant 0 : index
    %c0_33 = arith.constant 0 : index
    %40 = vector.load %arg3[%c3, %c0_32, %c0_33] : memref<9x32x32xf32, #tpu.memory_space<vmem>>, vector<1x32x32xf32>
    %41 = vector.shape_cast %40 : vector<1x32x32xf32> to vector<32x32xf32>
    %cst_34 = arith.constant dense<0.000000e+00> : vector<256x32xf32>
    %42 = tpu.matmul %39, %41, %cst_34 {dimension_numbers = #tpu.dot_dimension_numbers<[1], [0], [0], [1], [0, 0, 1, 1], [], []>} : vector<256x32xf32>, vector<32x32xf32>, vector<256x32xf32> -> vector<256x32xf32>
    %43 = arith.addf %37, %42 : vector<256x32xf32>
    %c24_35 = arith.constant 24 : index
    %c0_36 = arith.constant 0 : index
    %44 = vector.load %arg11[%c24_35, %c0_36] : memref<304x32xf32, #tpu.memory_space<vmem>>, vector<256x32xf32>
    %c4 = arith.constant 4 : index
    %c0_37 = arith.constant 0 : index
    %c0_38 = arith.constant 0 : index
    %45 = vector.load %arg3[%c4, %c0_37, %c0_38] : memref<9x32x32xf32, #tpu.memory_space<vmem>>, vector<1x32x32xf32>
    %46 = vector.shape_cast %45 : vector<1x32x32xf32> to vector<32x32xf32>
    %cst_39 = arith.constant dense<0.000000e+00> : vector<256x32xf32>
    %47 = tpu.matmul %44, %46, %cst_39 {dimension_numbers = #tpu.dot_dimension_numbers<[1], [0], [0], [1], [0, 0, 1, 1], [], []>} : vector<256x32xf32>, vector<32x32xf32>, vector<256x32xf32> -> vector<256x32xf32>
    %48 = arith.addf %43, %47 : vector<256x32xf32>
    %c25 = arith.constant 25 : index
    %c0_40 = arith.constant 0 : index
    %49 = vector.load %arg11[%c25, %c0_40] : memref<304x32xf32, #tpu.memory_space<vmem>>, vector<256x32xf32>
    %50 = arith.mulf %49, %19 : vector<256x32xf32>
    %c5 = arith.constant 5 : index
    %c0_41 = arith.constant 0 : index
    %c0_42 = arith.constant 0 : index
    %51 = vector.load %arg3[%c5, %c0_41, %c0_42] : memref<9x32x32xf32, #tpu.memory_space<vmem>>, vector<1x32x32xf32>
    %52 = vector.shape_cast %51 : vector<1x32x32xf32> to vector<32x32xf32>
    %cst_43 = arith.constant dense<0.000000e+00> : vector<256x32xf32>
    %53 = tpu.matmul %50, %52, %cst_43 {dimension_numbers = #tpu.dot_dimension_numbers<[1], [0], [0], [1], [0, 0, 1, 1], [], []>} : vector<256x32xf32>, vector<32x32xf32>, vector<256x32xf32> -> vector<256x32xf32>
    %54 = arith.addf %48, %53 : vector<256x32xf32>
    %c39 = arith.constant 39 : index
    %c0_44 = arith.constant 0 : index
    %55 = vector.load %arg11[%c39, %c0_44] : memref<304x32xf32, #tpu.memory_space<vmem>>, vector<256x32xf32>
    %56 = arith.mulf %55, %16 : vector<256x32xf32>
    %c6 = arith.constant 6 : index
    %c0_45 = arith.constant 0 : index
    %c0_46 = arith.constant 0 : index
    %57 = vector.load %arg3[%c6, %c0_45, %c0_46] : memref<9x32x32xf32, #tpu.memory_space<vmem>>, vector<1x32x32xf32>
    %58 = vector.shape_cast %57 : vector<1x32x32xf32> to vector<32x32xf32>
    %cst_47 = arith.constant dense<0.000000e+00> : vector<256x32xf32>
    %59 = tpu.matmul %56, %58, %cst_47 {dimension_numbers = #tpu.dot_dimension_numbers<[1], [0], [0], [1], [0, 0, 1, 1], [], []>} : vector<256x32xf32>, vector<32x32xf32>, vector<256x32xf32> -> vector<256x32xf32>
    %60 = arith.addf %54, %59 : vector<256x32xf32>
    %c40 = arith.constant 40 : index
    %c0_48 = arith.constant 0 : index
    %61 = vector.load %arg11[%c40, %c0_48] : memref<304x32xf32, #tpu.memory_space<vmem>>, vector<256x32xf32>
    %c7_49 = arith.constant 7 : index
    %c0_50 = arith.constant 0 : index
    %c0_51 = arith.constant 0 : index
    %62 = vector.load %arg3[%c7_49, %c0_50, %c0_51] : memref<9x32x32xf32, #tpu.memory_space<vmem>>, vector<1x32x32xf32>
    %63 = vector.shape_cast %62 : vector<1x32x32xf32> to vector<32x32xf32>
    %cst_52 = arith.constant dense<0.000000e+00> : vector<256x32xf32>
    %64 = tpu.matmul %61, %63, %cst_52 {dimension_numbers = #tpu.dot_dimension_numbers<[1], [0], [0], [1], [0, 0, 1, 1], [], []>} : vector<256x32xf32>, vector<32x32xf32>, vector<256x32xf32> -> vector<256x32xf32>
    %65 = arith.addf %60, %64 : vector<256x32xf32>
    %c41 = arith.constant 41 : index
    %c0_53 = arith.constant 0 : index
    %66 = vector.load %arg11[%c41, %c0_53] : memref<304x32xf32, #tpu.memory_space<vmem>>, vector<256x32xf32>
    %67 = arith.mulf %66, %19 : vector<256x32xf32>
    %c8_54 = arith.constant 8 : index
    %c0_55 = arith.constant 0 : index
    %c0_56 = arith.constant 0 : index
    %68 = vector.load %arg3[%c8_54, %c0_55, %c0_56] : memref<9x32x32xf32, #tpu.memory_space<vmem>>, vector<1x32x32xf32>
    %69 = vector.shape_cast %68 : vector<1x32x32xf32> to vector<32x32xf32>
    %cst_57 = arith.constant dense<0.000000e+00> : vector<256x32xf32>
    %70 = tpu.matmul %67, %69, %cst_57 {dimension_numbers = #tpu.dot_dimension_numbers<[1], [0], [0], [1], [0, 0, 1, 1], [], []>} : vector<256x32xf32>, vector<32x32xf32>, vector<256x32xf32> -> vector<256x32xf32>
    %71 = arith.addf %65, %70 : vector<256x32xf32>
    %c0_58 = arith.constant 0 : index
    %c0_59 = arith.constant 0 : index
    %72 = vector.load %arg6[%c0_58, %c0_59] : memref<1x32xf32, #tpu.memory_space<vmem>>, vector<1x32xf32>
    %73 = vector.broadcast %72 : vector<1x32xf32> to vector<256x32xf32>
    %74 = arith.addf %71, %73 : vector<256x32xf32>
    %cst_60 = arith.constant 0.000000e+00 : f32
    %75 = vector.broadcast %cst_60 : f32 to vector<256x32xf32>
    %76 = arith.maximumf %74, %75 : vector<256x32xf32>
    %c0_61 = arith.constant 0 : index
    %c0_62 = arith.constant 0 : index
    %77 = vector.load %arg4[%c0_61, %c0_62] : memref<32x128xf32, #tpu.memory_space<vmem>>, vector<32x128xf32>
    %cst_63 = arith.constant dense<0.000000e+00> : vector<256x128xf32>
    %78 = tpu.matmul %76, %77, %cst_63 {dimension_numbers = #tpu.dot_dimension_numbers<[1], [0], [0], [1], [0, 0, 1, 1], [], []>} : vector<256x32xf32>, vector<32x128xf32>, vector<256x128xf32> -> vector<256x128xf32>
    %c0_64 = arith.constant 0 : index
    %c0_65 = arith.constant 0 : index
    %79 = vector.load %arg7[%c0_64, %c0_65] : memref<1x128xf32, #tpu.memory_space<vmem>>, vector<1x128xf32>
    %80 = vector.broadcast %79 : vector<1x128xf32> to vector<256x128xf32>
    %81 = arith.addf %78, %80 : vector<256x128xf32>
    %82 = arith.addf %81, %1 : vector<256x128xf32>
    %cst_66 = arith.constant 0.000000e+00 : f32
    %83 = vector.broadcast %cst_66 : f32 to vector<256x128xf32>
    %84 = arith.maximumf %82, %83 : vector<256x128xf32>
    %c0_67 = arith.constant 0 : index
    %c0_68 = arith.constant 0 : index
    %c0_69 = arith.constant 0 : index
    %85 = vector.load %arg10[%c0_67, %c0_68, %c0_69] : memref<1x256x128xf32, #tpu.memory_space<vmem>>, vector<1x256x128xf32>
    %86 = vector.shape_cast %85 : vector<1x256x128xf32> to vector<256x128xf32>
    %87 = vector.shape_cast %84 : vector<256x128xf32> to vector<1x256x128xf32>
    tpu.vector_store %arg10[%c0_67, %c0_68, %c0_69], %87 {strides = array<i32>} : memref<1x256x128xf32, #tpu.memory_space<vmem>>, vector<1x256x128xf32>,
    return
  }
  func.func @transform_0(%arg0: i32) -> (i32, i32, i32) {
    %c0_i32 = arith.constant 0 : i32
    %c0_i32_0 = arith.constant 0 : i32
    %c0_i32_1 = arith.constant 0 : i32
    return %arg0, %c0_i32, %c0_i32_0 : i32, i32, i32
  }
  func.func @transform_1(%arg0: i32) -> (i32, i32) {
    %c0_i32 = arith.constant 0 : i32
    %c0_i32_0 = arith.constant 0 : i32
    %c0_i32_1 = arith.constant 0 : i32
    return %c0_i32, %c0_i32_0 : i32, i32
  }
  func.func @transform_2(%arg0: i32) -> (i32, i32, i32) {
    %c0_i32 = arith.constant 0 : i32
    %c0_i32_0 = arith.constant 0 : i32
    %c0_i32_1 = arith.constant 0 : i32
    %c0_i32_2 = arith.constant 0 : i32
    return %c0_i32, %c0_i32_0, %c0_i32_1 : i32, i32, i32
  }
  func.func @transform_3(%arg0: i32) -> (i32, i32) {
    %c0_i32 = arith.constant 0 : i32
    %c0_i32_0 = arith.constant 0 : i32
    %c0_i32_1 = arith.constant 0 : i32
    return %c0_i32, %c0_i32_0 : i32, i32
  }
  func.func @transform_4(%arg0: i32) -> (i32, i32) {
    %c0_i32 = arith.constant 0 : i32
    %c0_i32_0 = arith.constant 0 : i32
    %c0_i32_1 = arith.constant 0 : i32
    return %c0_i32, %c0_i32_0 : i32, i32
  }
  func.func @transform_5(%arg0: i32) -> (i32, i32) {
    %c0_i32 = arith.constant 0 : i32
    %c0_i32_0 = arith.constant 0 : i32
    %c0_i32_1 = arith.constant 0 : i32
    return %c0_i32, %c0_i32_0 : i32, i32
  }
  func.func @transform_6(%arg0: i32) -> (i32, i32) {
    %c0_i32 = arith.constant 0 : i32
    %c0_i32_0 = arith.constant 0 : i32
    %c0_i32_1 = arith.constant 0 : i32
    return %c0_i32, %c0_i32_0 : i32, i32
  }
  func.func @transform_7(%arg0: i32) -> (i32, i32) {
    %c0_i32 = arith.constant 0 : i32
    %c0_i32_0 = arith.constant 0 : i32
    %c0_i32_1 = arith.constant 0 : i32
    return %c0_i32, %c0_i32_0 : i32, i32
  }
  func.func @transform_8(%arg0: i32) -> (i32, i32) {
    %c0_i32 = arith.constant 0 : i32
    %c0_i32_0 = arith.constant 0 : i32
    %c0_i32_1 = arith.constant 0 : i32
    return %c0_i32, %c0_i32_0 : i32, i32
  }
  func.func @transform_9(%arg0: i32) -> (i32, i32, i32) {
    %c0_i32 = arith.constant 0 : i32
    %c0_i32_0 = arith.constant 0 : i32
    %c0_i32_1 = arith.constant 0 : i32
    return %arg0, %c0_i32, %c0_i32_0 : i32, i32, i32
  }
}

</mosaic_0001>

<bundles_post_ra>
// kernel: tpu_custom_call.1
= control target key start
LH: loop header
LB: loop body
LE: loop exit
PB: predicated region body
PF: predicated region fallthrough
CT: control target
= control target key end

     0   :  { %14 = vsyncpa [#allocation4], 0  ;;  %s6566_s0 = inlined_call_operand.vmem [shape: f32[2,256,128], index: 0, kind: input, shape index: {}]   ;;  %s6567_s1 = inlined_call_operand.vmem [shape: f32[128,32], index: 1, kind: input, shape index: {}]   ;;  %s6568_s2 = inlined_call_operand.hbm [shape: f32[9,32,32], index: 2, kind: input, shape index: {}]   ;;  %s6569_s3 = inlined_call_operand.vmem [shape: f32[32,128], index: 3, kind: input, shape index: {}]   ;;  %s6570_s4 = inlined_call_operand.vmem [shape: f32[1,32], index: 4, kind: input, shape index: {}]   ;;  %s6571_s5 = inlined_call_operand.vmem [shape: f32[1,32], index: 5, kind: input, shape index: {}]   ;;  %s6572_s6 = inlined_call_operand.vmem [shape: f32[1,128], index: 6, kind: input, shape index: {}]   ;;  %s6573_s7 = inlined_call_operand.vmem [shape: f32[256,1], index: 7, kind: input, shape index: {}]   ;;  %s6574_s8 = inlined_call_operand.vmem [shape: f32[256,1], index: 8, kind: input, shape index: {}]   ;;  %s6575_s9 = inlined_call_operand.hbm [shape: f32[2,256,128], index: 9, kind: output, shape index: {}]  }
   0x1   :  { %15 = vsyncpa [#allocation5], 0 }
   0x2   :  { %17 = vsyncpa [#allocation5 + $0x1], 0  ;;  %s4677_s30 = smov 0   ;;  %s4679_s10 = smov 0  }
   0x3   :  { %s4681_s11 = smov 0   ;;  %s4683_s12 = smov 0  }
   0x4 LB: > { %s4698_s13 = sadd.s32 4294967295, %s4618_s12   ;;  %s4068_s14 = sadd.s32 4294967294, %s4618_s12   ;;  %s4618_s12 = sphi %s4683_s12, %s6898_s12   ;;  %s4614_s11 = sphi %s4681_s11, %s6897_s11   ;;  %s4610_s10 = sphi %s4679_s10, %s6896_s10   ;;  %s4606_s30 = sphi %s4677_s30, %s6895_s30  }
   0x5   : > { %s4702_s15 = sadd.s32 1, %s4618_s12   ;;  %s224_s16 = sadd.s32 1, %s4614_s11 }
   0x6   : > { %s221_s17 = ssub.s32 %s4618_s12, %s4702_s15  ;;  %p234_p0 = scmp.ne.s32.totalorder %s4614_s11, %s4610_s10 }
   0x7   : > { %p222_p1 = scmp.eq.s32.totalorder %s221_s17, 0  ;;  %p235_p2 = scmp.eq.s32.totalorder %s4698_s13, 1 }
   0x8   : > { %p240_p3 = scmp.ne.s32.totalorder %s4610_s10, %s4606_s30  ;;  %p241_p4 = scmp.eq.s32.totalorder %s4068_s14, 1 }
   0x9   : > { %s4713_s18 = scalar_select %p222_p1, %s4614_s11, %s224_s16  }
   0xa   : > { %p4715_p5 = por %p235_p2, %p234_p0  ;;  %p4719_p6 = por %p241_p4, %p240_p3 }
   0xb   : > { %p4069_p7 = scmp.ge.s32.totalorder %s4618_s12, 1  ;;  %p248_p8 = scmp.lt.s32.totalorder %s4618_s12, 3 }
   0xc   : > { %p4430_p9 = scmp.eq.s32.totalorder %s4698_s13, 0  ;;  %s262_s23 = sshll.u32 %s6568_s2, 4  ;;  %s263_s23 = int_to_ptr.hbm [resolvable:$true] %s262_s23 }
   0xd   : > { %p249_p10 = pnand %p4069_p7, %p248_p8  ;;  %s4620_s24 = smov [#allocation3]  }
   0xe   : > { %s264_s25 = sshll.u32 %s4620_s24, 4  ;;  %s4621_s26 = smov 128   ;;  %s265_s25 = int_to_ptr.vmem [resolvable:$true] %s264_s25 }
   0xf   : > { %p4422_p11 = pneg %p249_p10  ;;  %s4622_s27 = smov 8  }
  0x10   : > { %306 = sbr.rel (%p249_p10) target bundleno = 1222 (0x4c6), region = 56 }
  0x11   : > { %p4423_p12 = pnand %p4430_p9, %p4422_p11 }
  0x13   : > { %4425 = dma.hbm_to_vmem [thread:$0]  (!%p4423_p12), %s263_s23, 4608, %s265_s25, [#allocation4], %s4621_s26, %s4621_s26, %s4622_s27  }
  0x15   : > { %4597 = dma.done.wait (%p4430_p9), [#allocation4], 4608  }
  0x16   : > { %4599 = vsyncadd (%p4430_p9), [#allocation4], 4294962688  ;;  %v4623_v0 = vmov 0   ;;  %v595_v1 = vld [vmem:[%s6573_s7 + $0x58] sm:$0xff]  ;;  %v593_v2 = vld [vmem:[%s6573_s7 + $0x48] sm:$0xff]  ;;  %p343_p13 = scmp.lt.s32.totalorder %s4698_s13, 1 }
  0x17   : > { %4474 = vset.pattern.permute.xlu2 %v4623_v0  ;;  %4473 = vset.pattern.permute.xlu1 %v4623_v0  ;;  %v591_v3 = vld [vmem:[%s6573_s7 + $0x38] sm:$0xff]  ;;  %v394_v5 = vld [vmem:[%s6567_s1 + $0x70] sm:$0xff]  ;;  %v393_v6 = vld [vmem:[%s6567_s1 + $0x68] sm:$0xff]  ;;  %vm545_vm0 = vcmask 261120   ;;  %s340_s28 = sand.u32 1, %s4610_s10   ;;  %s4403_s21 = sshll.u32 %s4698_s13, 8 }
  0x18   : > { %4472 = vset.pattern.permute.xlu0 %v4623_v0  ;;  %673 = vperm.xlu2 %4474, %v595_v1   ;;  %v395_v4 = vld [vmem:[%s6567_s1 + $0x78] sm:$0xff]  ;;  %v392_v7 = vld [vmem:[%s6567_s1 + $0x60] sm:$0xff]  ;;  %v594_v9 = vld [vmem:[%s6573_s7 + $0x50] sm:$0xff]  ;;  %s344_s17 = scalar_select %p343_p13, %s4698_s13, 1 }
  0x19   : > { %663 = vperm.xlu1 %4473, %v593_v2   ;;  %653 = vperm.xlu0 %4472, %v591_v3   ;;  %v596_v8 = vld [vmem:[%s6573_s7 + $0x60] sm:$0xff]  ;;  %v391_v11 = vld [vmem:[%s6567_s1 + $0x58] sm:$0xff]  ;;  %v390_v12 = vld [vmem:[%s6567_s1 + $0x50] sm:$0xff]  ;;  %s4074_s29 = sshll.u32 %s340_s28, 8  ;;  %s3990_s23 = scalar_lea.hbm %s6575_s9, %s4403_s21 }
  0x1a   : > { %400 = vmatpush.msra.mxu0 %v395_v4  ;;  %v592_v10 = vld [vmem:[%s6573_s7 + $0x40] sm:$0xff]  ;;  %v389_v13 = vld [vmem:[%s6567_s1 + $0x48] sm:$0xff]  ;;  %v599_v15 = vld [vmem:[%s6573_s7 + $0x78] sm:$0xff]  ;;  %s4402_s16 = sshll.u32 %s344_s17, 8  ;;  %s6382_s14 = scalar_lea.vmem [#allocation6], %s4074_s29 }
  0x1b   : > { %v388_v14 = vld [vmem:[%s6567_s1 + $0x40] sm:$0xff]  ;;  %v598_v16 = vld [vmem:[%s6573_s7 + $0x70] sm:$0xff]  ;;  %v597_v17 = vld [vmem:[%s6573_s7 + $0x68] sm:$0xff]  ;;  %s4821_s27 = scalar_lea.vmem %s6566_s0, %s4402_s16  ;;  %s3991_s24 = sshll.u32 %s6382_s14, 4  ;;  %s3992_s24 = int_to_ptr.vmem [resolvable:$true] %s3991_s24 }
  0x1c   : > { %401 = vmatpush.msra.mxu0 %v394_v5  ;;  %v387_v18 = vld [vmem:[%s6567_s1 + $0x38] sm:$0xff]  ;;  %v386_v19 = vld [vmem:[%s6567_s1 + $0x30] sm:$0xff]  ;;  %v385_v20 = vld [vmem:[%s6567_s1 + $0x28] sm:$0xff]  ;;  %s3993_s25 = sshll.u32 %s3990_s23, 4  ;;  %s3979_s13 = scalar_lea.sflag [#allocation5], %s340_s28  ;;  %s3994_s25 = int_to_ptr.hbm [resolvable:$true] %s3993_s25 }
  0x1d   : > { %v384_v21 = vld [vmem:[%s6567_s1 + $0x20] sm:$0xff]  ;;  %v602_v22 = vld [vmem:[%s6573_s7 + $0x90] sm:$0xff]  ;;  %v601_v23 = vld [vmem:[%s6573_s7 + $0x88] sm:$0xff]  ;;  %s4566_s26 = sshra.s32 %s3994_s25, 4  ;;  %s4572_s22 = scalar_lea.hbm %s6575_s9, 512  ;;  %s4567_s26 = int_to_ptr.hbm [resolvable:$true] %s4566_s26 }
  0x1e   : > { %402 = vmatpush.msra.mxu0 %v393_v6  ;;  %v600_v24 = vld [vmem:[%s6573_s7 + $0x80] sm:$0xff]  ;;  %v383_v25 = vld [vmem:[%s6567_s1 + $0x18] sm:$0xff]  ;;  %v382_v26 = vld [vmem:[%s6567_s1 + $0x10] sm:$0xff]  ;;  %s4568_s17 = scalar_lea.hbm %s4567_s26, 256  ;;  %p4573_p3 = scmp.lt.s32.totalorder %s4567_s26, %s6575_s9 }
  0x1f   : > { %v381_v27 = vld [vmem:[%s6567_s1 + $0x8] sm:$0xff]  ;;  %v380_v28 = vld [vmem:[%s6567_s1] sm:$0xff]  ;;  %v603_v32 = vld [vmem:[%s6573_s7 + $0x98] sm:$0xff]  ;;  %p4569_p0 = scmp.ne.s32.totalorder %s4567_s26, %s4568_s17  ;;  %p4574_p4 = scmp.lt.s32.totalorder %s4572_s22, %s4568_s17 }
  0x20   : > { %403 = vmatpush.msra.mxu0 %v392_v7  ;;  %678 = vperm.xlu2 %4474, %v596_v8   ;;  %v348_v29 = vld [vmem:[%s4821_s27] sm:$0xff]  ;;  %v605_v30 = vld [vmem:[%s6573_s7 + $0xa8] sm:$0xff]  ;;  %v607_v35 = vld [vmem:[%s6573_s7 + $0xb8] sm:$0xff] }
  0x21   : > { %668 = vperm.xlu1 %4473, %v594_v9   ;;  %658 = vperm.xlu0 %4472, %v592_v10   ;;  %v604_v31 = vld [vmem:[%s6573_s7 + $0xa0] sm:$0xff]  ;;  %v349_v33 = vld [vmem:[%s4821_s27 + $0x8] sm:$0xff]  ;;  %v606_v36 = vld [vmem:[%s6573_s7 + $0xb0] sm:$0xff]  ;;  %p4570_p1 = pnand %p4569_p0, %p4715_p5  ;;  %p4575_p7 = por %p4574_p4, %p4573_p3 }
  0x22   : > { %404 = vmatpush.msra.mxu0 %v391_v11  ;;  %v608_v34 = vld [vmem:[%s6573_s7 + $0xc0] sm:$0xff]  ;;  %v350_v37 = vld [vmem:[%s4821_s27 + $0x10] sm:$0xff]  ;;  %v609_v39 = vld [vmem:[%s6573_s7 + $0xc8] sm:$0xff] }
  0x23   : > { %v784_v38 = vld [vmem:[%s6574_s8 + $0x40] sm:$0xff]  ;;  %v783_v40 = vld [vmem:[%s6574_s8 + $0x38] sm:$0xff]  ;;  %v785_v43 = vld [vmem:[%s6574_s8 + $0x48] sm:$0xff]  ;;  %p4571_p2 = pneg %p4570_p1 }
  0x24   : > { %405 = vmatpush.msra.mxu0 %v390_v12  ;;  %v351_v41 = vld [vmem:[%s4821_s27 + $0x18] sm:$0xff]  ;;  %v610_v44 = vld [vmem:[%s6573_s7 + $0xd0] sm:$0xff]  ;;  %v352_v45 = vld [vmem:[%s4821_s27 + $0x20] sm:$0xff] }
  0x25   : > { %v611_v42 = vld [vmem:[%s6573_s7 + $0xd8] sm:$0xff]  ;;  %v612_v47 = vld [vmem:[%s6573_s7 + $0xe0] sm:$0xff]  ;;  %v786_v48 = vld [vmem:[%s6574_s8 + $0x50] sm:$0xff]  ;;  %p4576_p8 = pnand %p4575_p7, %p4571_p2 }
  0x26   : > { %406 = vmatpush.msra.mxu0 %v389_v13  ;;  %v787_v46 = vld [vmem:[%s6574_s8 + $0x58] sm:$0xff]  ;;  %v353_v49 = vld [vmem:[%s4821_s27 + $0x28] sm:$0xff]  ;;  %v614_v50 = vld [vmem:[%s6573_s7 + $0xf0] sm:$0xff] }
  0x27   : > { %v788_v51 = vld [vmem:[%s6574_s8 + $0x60] sm:$0xff]  ;;  %v613_v52 = vld [vmem:[%s6573_s7 + $0xe8] sm:$0xff]  ;;  %v354_v53 = vld [vmem:[%s4821_s27 + $0x30] sm:$0xff] }
  0x28   : > { %407 = vmatpush.msra.mxu0 %v388_v14  ;;  %693 = vperm.xlu2 %4474, %v599_v15   ;;  %v790_v54 = vld [vmem:[%s6574_s8 + $0x70] sm:$0xff]  ;;  %v615_v55 = vld [vmem:[%s6573_s7 + $0xf8] sm:$0xff]  ;;  %v789_v56 = vld [vmem:[%s6574_s8 + $0x68] sm:$0xff] }
  0x29   : > { %688 = vperm.xlu1 %4473, %v598_v16   ;;  %683 = vperm.xlu0 %4472, %v597_v17   ;;  %v355_v57 = vld [vmem:[%s4821_s27 + $0x38] sm:$0xff]  ;;  %v792_v58 = vld [vmem:[%s6574_s8 + $0x80] sm:$0xff]  ;;  %v586_v63 = vld [vmem:[%s6573_s7 + $0x10] sm:$0xff] }
  0x2a   : > { %408 = vmatpush.msra.mxu0 %v387_v18  ;;  %v791_v59 = vld [vmem:[%s6574_s8 + $0x78] sm:$0xff]  ;;  %v584_v60 = vld [vmem:[%s6573_s7] sm:$0xff]  ;;  %v585_v0 = vld [vmem:[%s6573_s7 + $0x8] sm:$0xff] }
  0x2b   : > { %v356_v62 = vld [vmem:[%s4821_s27 + $0x40] sm:$0xff]  ;;  %v793_v1 = vld [vmem:[%s6574_s8 + $0x88] sm:$0xff]  ;;  %v795_v4 = vld [vmem:[%s6574_s8 + $0x98] sm:$0xff] }
  0x2c   : > { %409 = vmatpush.msra.mxu0 %v386_v19  ;;  %v357_v3 = vld [vmem:[%s4821_s27 + $0x48] sm:$0xff]  ;;  %v794_v5 = vld [vmem:[%s6574_s8 + $0x90] sm:$0xff]  ;;  %v587_v6 = vld [vmem:[%s6573_s7 + $0x18] sm:$0xff] }
  0x2d   : > { %v358_v8 = vld [vmem:[%s4821_s27 + $0x50] sm:$0xff]  ;;  %v589_v9 = vld [vmem:[%s6573_s7 + $0x28] sm:$0xff]  ;;  %v588_v10 = vld [vmem:[%s6573_s7 + $0x20] sm:$0xff] }
  0x2e   : > { %410 = vmatpush.msra.mxu0 %v385_v20  ;;  %v796_v11 = vld [vmem:[%s6574_s8 + $0xa0] sm:$0xff]  ;;  %v359_v15 = vld [vmem:[%s4821_s27 + $0x58] sm:$0xff]  ;;  %v798_v16 = vld [vmem:[%s6574_s8 + $0xb0] sm:$0xff] }
  0x2f   : > { %v797_v17 = vld [vmem:[%s6574_s8 + $0xa8] sm:$0xff]  ;;  %v590_v18 = vld [vmem:[%s6573_s7 + $0x30] sm:$0xff] }
  0x30   : > { %411 = vmatpush.msra.mxu0 %v384_v21  ;;  %708 = vperm.xlu2 %4474, %v602_v22   ;;  %v360_v22 = vld [vmem:[%s4821_s27 + $0x60] sm:$0xff] }
  0x31   : > { %703 = vperm.xlu1 %4473, %v601_v23   ;;  %698 = vperm.xlu0 %4472, %v600_v24   ;;  %v801_v23 = vld [vmem:[%s6574_s8 + $0xc8] sm:$0xff]  ;;  %v799_v24 = vld [vmem:[%s6574_s8 + $0xb8] sm:$0xff] }
  0x32   : > { %412 = vmatpush.msra.mxu0 %v383_v25  ;;  %v800_v25 = vld [vmem:[%s6574_s8 + $0xc0] sm:$0xff] }
  0x34   : > { %413 = vmatpush.msra.mxu0 %v382_v26 }
  0x36   : > { %414 = vmatpush.msra.mxu0 %v381_v27 }
  0x38   : > { %415 = vmatpush.msra.mxu0 %v380_v28  ;;  %723 = vperm.xlu2 %4474, %v605_v30   ;;  %v4624_v28 = vmov 0.0   ;;  %v361_v30 = vld [vmem:[%s4821_s27 + $0x68] sm:$0xff] }
  0x39   : > { %416 = vmatmul.f32.vlgmr.msra.gmra.mxu0 %v348_v29  ;;  %718 = vperm.xlu1 %4473, %v604_v31   ;;  %548 = vst.msk [vmem:[#allocation2 + $0x10] sm:$0xff] %vm545_vm0, %v4624_v28  ;;  %v804_v31 = vld [vmem:[%s6574_s8 + $0xe0] sm:$0xff] }
  0x3a   : > { %713 = vperm.xlu0 %4472, %v603_v32   ;;  %546 = vst.msk [vmem:[#allocation2] sm:$0xff] %vm545_vm0, %v4624_v28  ;;  %v802_v32 = vld [vmem:[%s6574_s8 + $0xd0] sm:$0xff] }
  0x3b   : > { %547 = vst.msk [vmem:[#allocation2 + $0x8] sm:$0xff] %vm545_vm0, %v4624_v28 }
  0x3c   : > { %549 = vst.msk [vmem:[#allocation2 + $0x118] sm:$0xff] %vm545_vm0, %v4624_v28 }
  0x3d   : > { %550 = vst.msk [vmem:[#allocation2 + $0x120] sm:$0xff] %vm545_vm0, %v4624_v28 }
  0x3e   : > { %551 = vst.msk [vmem:[#allocation2 + $0x128] sm:$0xff] %vm545_vm0, %v4624_v28 }
  0x40   : > { %738 = vperm.xlu2 %4474, %v608_v34  }
  0x41   : > { %419 = vmatmul.f32.gmra.mxu0 %v349_v33  ;;  %733 = vperm.xlu1 %4473, %v607_v35   ;;  %v803_v33 = vld [vmem:[%s6574_s8 + $0xd8] sm:$0xff] }
  0x42   : > { %728 = vperm.xlu0 %4472, %v606_v36  }
  0x48   : > { %850 = vperm.xlu2 %4474, %v784_v38   ;;  %v807_v38 = vld [vmem:[%s6574_s8 + $0xf8] sm:$0xff] }
  0x49   : > { %422 = vmatmul.f32.gmra.mxu0 %v350_v37  ;;  %743 = vperm.xlu1 %4473, %v609_v39   ;;  %v362_v37 = vld [vmem:[%s4821_s27 + $0x70] sm:$0xff]  ;;  %v805_v39 = vld [vmem:[%s6574_s8 + $0xe8] sm:$0xff] }
  0x4a   : > { %845 = vperm.xlu0 %4472, %v783_v40   ;;  %v806_v40 = vld [vmem:[%s6574_s8 + $0xf0] sm:$0xff] }
  0x50   : > { %753 = vperm.xlu2 %4474, %v611_v42  }
  0x51   : > { %425 = vmatmul.f32.gmra.mxu0 %v351_v41  ;;  %855 = vperm.xlu1 %4473, %v785_v43  }
  0x52   : > { %748 = vperm.xlu0 %4472, %v610_v44   ;;  %v363_v44 = vld [vmem:[%s4821_s27 + $0x78] sm:$0xff] }
  0x58   : > { %865 = vperm.xlu2 %4474, %v787_v46   ;;  %v776_v46 = vld [vmem:[%s6574_s8] sm:$0xff] }
  0x59   : > { %428 = vmatmul.f32.gmra.mxu0 %v352_v45  ;;  %758 = vperm.xlu1 %4473, %v612_v47   ;;  %v778_v45 = vld [vmem:[%s6574_s8 + $0x10] sm:$0xff]  ;;  %v777_v47 = vld [vmem:[%s6574_s8 + $0x8] sm:$0xff] }
  0x5a   : > { %860 = vperm.xlu0 %4472, %v786_v48  }
  0x60   : > { %768 = vperm.xlu2 %4474, %v614_v50  }
  0x61   : > { %431 = vmatmul.f32.gmra.mxu0 %v353_v49  ;;  %870 = vperm.xlu1 %4473, %v788_v51   ;;  %v5033_v49 = vld [vmem:[%s6570_s4] ss:$0 sm:$0xff] }
  0x62   : > { %763 = vperm.xlu0 %4472, %v613_v52  }
  0x68   : > { %880 = vperm.xlu2 %4474, %v790_v54   ;;  %v781_v54 = vld [vmem:[%s6574_s8 + $0x28] sm:$0xff] }
  0x69   : > { %434 = vmatmul.f32.gmra.mxu0 %v354_v53  ;;  %773 = vperm.xlu1 %4473, %v615_v55   ;;  %v364_v53 = vld [vmem:[%s4821_s27 + $0x80] sm:$0xff] }
  0x6a   : > { %875 = vperm.xlu0 %4472, %v789_v56   ;;  %v779_v56 = vld [vmem:[%s6574_s8 + $0x18] sm:$0xff] }
  0x70   : > { %890 = vperm.xlu2 %4474, %v792_v58  }
  0x71   : > { %437 = vmatmul.f32.gmra.mxu0 %v355_v57  ;;  %618 = vperm.xlu1 %4473, %v584_v60   ;;  %v780_v57 = vld [vmem:[%s6574_s8 + $0x20] sm:$0xff] }
  0x72   : > { %885 = vperm.xlu0 %4472, %v791_v59   ;;  %v4906_v61 = vpop.permute.xlu2 %673 }
  0x73   : > { %6669 = vst [vmem:[#allocation9_spill] sm:$0xff] %v4906_v61 }
  0x78   : > { %628 = vperm.xlu2 %4474, %v586_v63  }
  0x79   : > { %440 = vmatmul.f32.gmra.mxu0 %v356_v62  ;;  %895 = vperm.xlu1 %4473, %v793_v1  }
  0x7a   : > { %623 = vperm.xlu0 %4472, %v585_v0   ;;  %v4918_v2 = vpop.permute.xlu2 %678  ;;  %v365_v0 = vld [vmem:[%s4821_s27 + $0x88] sm:$0xff] }
  0x7b   : > { %6670 = vst [vmem:[#allocation10_spill] sm:$0xff] %v4918_v2 }
  0x80   : > { %905 = vperm.xlu2 %4474, %v795_v4  }
  0x81   : > { %443 = vmatmul.f32.gmra.mxu0 %v357_v3  ;;  %633 = vperm.xlu1 %4473, %v587_v6   ;;  %v782_v3 = vld [vmem:[%s6574_s8 + $0x30] sm:$0xff]  ;;  %v1072_v6 = vld [vmem:[#allocation3 + $0x38] sm:$0xff] }
  0x82   : > { %900 = vperm.xlu0 %4472, %v794_v5   ;;  %v4930_v7 = vpop.permute.xlu2 %693  ;;  %4404 = vmatpush.msra.mxu1 %v1072_v6 }
  0x83   : > { %6671 = vst [vmem:[#allocation11_spill] sm:$0xff] %v4930_v7  ;;  %1181 = vmatpush.msrb.mxu0 %v1072_v6  ;;  %v369_v6 = vld [vmem:[%s4821_s27 + $0xa8] sm:$0xff] }
  0x88   : > { %643 = vperm.xlu2 %4474, %v589_v9  }
  0x89   : > { %446 = vmatmul.f32.gmra.mxu0 %v358_v8  ;;  %910 = vperm.xlu1 %4473, %v796_v11   ;;  %v1035_v11 = vld [vmem:[#allocation3 + $0x18] sm:$0xff] }
  0x8a   : > { %638 = vperm.xlu0 %4472, %v588_v10   ;;  %v4942_v12 = vpop.permute.xlu2 %708  ;;  %v1071_v10 = vld [vmem:[#allocation3 + $0x30] sm:$0xff]  ;;  %4408 = vmatpush.msra.mxu2 %v1035_v11 }
  0x8b   : > { %v4944_v13 = vpop.permute.xlu1 %663  ;;  %v4946_v14 = vpop.permute.xlu0 %653  ;;  %4405 = vmatpush.msra.mxu1 %v1071_v10  ;;  %1182 = vmatpush.msrb.mxu0 %v1071_v10 }
  0x8c   : > { %6672 = vst [vmem:[#allocation12_spill] sm:$0xff] %v4944_v13 }
  0x8d   : > { %6673 = vst [vmem:[#allocation13_spill] sm:$0xff] %v4946_v14 }
  0x90   : > { %920 = vperm.xlu2 %4474, %v798_v16   ;;  %v366_v16 = vld [vmem:[%s4821_s27 + $0x90] sm:$0xff] }
  0x91   : > { %449 = vmatmul.f32.gmra.mxu0 %v359_v15  ;;  %648 = vperm.xlu1 %4473, %v590_v18   ;;  %v1070_v18 = vld [vmem:[#allocation3 + $0x28] sm:$0xff] }
  0x92   : > { %915 = vperm.xlu0 %4472, %v797_v17   ;;  %v4958_v19 = vpop.permute.xlu2 %723  ;;  %4406 = vmatpush.msra.mxu1 %v1070_v18 }
  0x93   : > { %6674 = vst [vmem:[#allocation14_spill] sm:$0xff] %v4958_v19  ;;  %v4960_v20 = vpop.permute.xlu1 %668  ;;  %v4962_v21 = vpop.permute.xlu0 %658  ;;  %1183 = vmatpush.msrb.mxu0 %v1070_v18 }
  0x94   : > { %6675 = vst [vmem:[#allocation15_spill] sm:$0xff] %v4960_v20 }
  0x95   : > { %6676 = vst [vmem:[#allocation16_spill] sm:$0xff] %v4962_v21 }
  0x98   : > { %935 = vperm.xlu2 %4474, %v801_v23  }
  0x99   : > { %452 = vmatmul.f32.gmra.mxu0 %v360_v22  ;;  %930 = vperm.xlu1 %4473, %v800_v25   ;;  %v1034_v22 = vld [vmem:[#allocation3 + $0x10] sm:$0xff]  ;;  %v1033_v25 = vld [vmem:[#allocation3 + $0x8] sm:$0xff] }
  0x9a   : > { %925 = vperm.xlu0 %4472, %v799_v24   ;;  %v4974_v26 = vpop.permute.xlu2 %738  ;;  %4409 = vmatpush.msra.mxu2 %v1034_v22  ;;  %v1069_v24 = vld [vmem:[#allocation3 + $0x20] sm:$0xff] }
  0x9b   : > { %v4976_v27 = vpop.permute.xlu1 %688  ;;  %v4979_v29 = vpop.permute.xlu0 %683  ;;  %4407 = vmatpush.msra.mxu1 %v1069_v24  ;;  %1184 = vmatpush.msrb.mxu0 %v1069_v24  ;;  %v370_v24 = vld [vmem:[%s4821_s27 + $0xb0] sm:$0xff] }
  0x9c   : > { %6677 = vst [vmem:[#allocation17_spill] sm:$0xff] %v4976_v27  ;;  %4410 = vmatpush.msra.mxu2 %v1033_v25 }
  0x9d   : > { %6678 = vst [vmem:[#allocation18_spill] sm:$0xff] %v4979_v29  ;;  %1390 = vmatpush.msra.mxu0 %v1035_v11 }
  0x9f   : > { %1391 = vmatpush.msra.mxu0 %v1034_v22 }
  0xa0   : > { %950 = vperm.xlu2 %4474, %v804_v31  }
  0xa1   : > { %455 = vmatmul.f32.gmra.mxu0 %v361_v30  ;;  %945 = vperm.xlu1 %4473, %v803_v33   ;;  %v1032_v30 = vld [vmem:[#allocation3] sm:$0xff]  ;;  %v2147_v33 = vld [vmem:[#allocation3 + $0x98] sm:$0xff] }
  0xa2   : > { %940 = vperm.xlu0 %4472, %v802_v32   ;;  %v4996_v34 = vpop.permute.xlu2 %850  ;;  %4411 = vmatpush.msra.mxu2 %v1032_v30 }
  0xa3   : > { %6679 = vst [vmem:[#allocation19_spill] sm:$0xff] %v4996_v34  ;;  %v4998_v35 = vpop.permute.xlu1 %703  ;;  %v5000_v36 = vpop.permute.xlu0 %698  ;;  %1392 = vmatpush.msra.mxu0 %v1033_v25 }
  0xa4   : > { %2256 = vmatpush.msrb.mxu2 %v2147_v33 }
  0xa5   : > { %1393 = vmatpush.msra.mxu0 %v1032_v30 }
  0xa8   : > { %965 = vperm.xlu2 %4474, %v807_v38  }
  0xa9   : > { %458 = vmatmul.f32.gmra.mxu0 %v362_v37  ;;  %960 = vperm.xlu1 %4473, %v806_v40   ;;  %v5078_v37 = vld [vmem:[#allocation3 + $0x58] sm:$0xff] }
  0xaa   : > { %955 = vperm.xlu0 %4472, %v805_v39   ;;  %v5012_v41 = vpop.permute.xlu2 %753  ;;  %v367_v39 = vld [vmem:[%s4821_s27 + $0x98] sm:$0xff]  ;;  %4412 = vmatpush.msra.mxu3 %v5078_v37 }
  0xab   : > { %v5014_v42 = vpop.permute.xlu1 %718 }
  0xac   : > { %6680 = vst [vmem:[#allocation20_spill] sm:$0xff] %v5014_v42  ;;  %v5016_v43 = vpop.permute.xlu0 %713 }
  0xb0   : > { %820 = vperm.xlu2 %4474, %v778_v45  }
  0xb1   : > { %461 = vmatmul.f32.gmra.mxu0 %v363_v44  ;;  %815 = vperm.xlu1 %4473, %v777_v47   ;;  %v5083_v44 = vld [vmem:[#allocation3 + $0x50] sm:$0xff] }
  0xb2   : > { %810 = vperm.xlu0 %4472, %v776_v46   ;;  %v5028_v48 = vpop.permute.xlu2 %865  ;;  %4413 = vmatpush.msra.mxu3 %v5083_v44  ;;  %v5086_v46 = vld [vmem:[#allocation3 + $0x48] sm:$0xff] }
  0xb3   : > { %6681 = vst [vmem:[#allocation21_spill] sm:$0xff] %v5028_v48  ;;  %v5035_v50 = vpop.permute.xlu1 %733 }
  0xb4   : > { %6682 = vst [vmem:[#allocation22_spill] sm:$0xff] %v5035_v50  ;;  %v5037_v51 = vpop.permute.xlu0 %728  ;;  %4414 = vmatpush.msra.mxu3 %v5086_v46 }
  0xb5   : > { %6683 = vst [vmem:[#allocation23_spill] sm:$0xff] %v5037_v51 }
  0xb6   : > { %v417_v52 = vpop.f32.mrf.mxu0 }
  0xb7   : > { %v418_v55 = vadd.f32 %v5033_v49, %v417_v52  ;;  %v1869_v52 = vld [vmem:[#allocation3 + $0x78] sm:$0xff] }
  0xb8   : > { %835 = vperm.xlu2 %4474, %v781_v54   ;;  %1978 = vmatpush.msrb.mxu1 %v1869_v52 }
  0xb9   : > { %v513_v58 = vmax.f32 %v418_v55, 0.0  ;;  %464 = vmatmul.f32.gmra.mxu0 %v364_v53  ;;  %830 = vperm.xlu1 %4473, %v780_v57   ;;  %v5092_v53 = vld [vmem:[#allocation3 + $0x40] sm:$0xff]  ;;  %v368_v57 = vld [vmem:[%s4821_s27 + $0xa0] sm:$0xff] }
  0xba   : > { %825 = vperm.xlu0 %4472, %v779_v56   ;;  %v5051_v59 = vpop.permute.xlu2 %768  ;;  %4415 = vmatpush.msra.mxu3 %v5092_v53 }
  0xbb   : > { %552 = vst.msk [vmem:[#allocation2 + $0x18] sm:$0xff] %vm545_vm0, %v513_v58  ;;  %v5053_v60 = vpop.permute.xlu1 %743 }
  0xbc   : > { %6684 = vst [vmem:[#allocation24_spill] sm:$0xff] %v5051_v59  ;;  %v5055_v62 = vpop.permute.xlu0 %845 }
  0xbd   : > { %6685 = vst [vmem:[#allocation25_spill] sm:$0xff] %v5055_v62 }
  0xbe   : > { %v420_v63 = vpop.f32.mrf.mxu0 }
  0xbf   : > { %v421_v1 = vadd.f32 %v5033_v49, %v420_v63 }
  0xc1   : > { %v514_v4 = vmax.f32 %v421_v1, 0.0  ;;  %467 = vmatmul.f32.gmra.mxu0 %v365_v0 }
  0xc2   : > { %840 = vperm.xlu0 %4472, %v782_v3   ;;  %v5063_v5 = vpop.permute.xlu2 %880 }
  0xc3   : > { %553 = vst.msk [vmem:[#allocation2 + $0x20] sm:$0xff] %vm545_vm0, %v514_v4  ;;  %v5065_v8 = vpop.permute.xlu1 %855 }
  0xc4   : > { %6686 = vst [vmem:[#allocation26_spill] sm:$0xff] %v5063_v5  ;;  %v5067_v9 = vpop.permute.xlu0 %748 }
  0xc5   : > { %6687 = vst [vmem:[#allocation27_spill] sm:$0xff] %v5065_v8 }
  0xc6   : > { %6688 = vst [vmem:[#allocation28_spill] sm:$0xff] %v5067_v9  ;;  %v423_v15 = vpop.f32.mrf.mxu0 }
  0xc7   : > { %v424_v17 = vadd.f32 %v5033_v49, %v423_v15 }
  0xc9   : > { %v515_v23 = vmax.f32 %v424_v17, 0.0  ;;  %470 = vmatmul.f32.gmra.mxu0 %v366_v16 }
  0xca   : > { %v5072_v28 = vpop.permute.xlu2 %890 }
  0xcb   : > { %554 = vst.msk [vmem:[#allocation2 + $0x28] sm:$0xff] %vm545_vm0, %v515_v23  ;;  %v5074_v31 = vpop.permute.xlu1 %758 }
  0xcc   : > { %v5076_v32 = vpop.permute.xlu0 %860 }
  0xcd   : > { %6689 = vst [vmem:[#allocation29_spill] sm:$0xff] %v5076_v32 }
  0xce   : > { %v426_v38 = vpop.f32.mrf.mxu0 }
  0xcf   : > { %v427_v40 = vadd.f32 %v5033_v49, %v426_v38 }
  0xd1   : > { %v516_v45 = vmax.f32 %v427_v40, 0.0  ;;  %473 = vmatmul.f32.gmra.mxu0 %v367_v39 }
  0xd2   : > { %v5090_v47 = vpop.permute.xlu2 %628  ;;  %v5113_v16 = vld [vmem:[#allocation2 + $0x27] sm:$0xff] }
  0xd3   : > { %555 = vst.msk [vmem:[#allocation2 + $0x30] sm:$0xff] %vm545_vm0, %v516_v45  ;;  %v5094_v54 = vpop.permute.xlu1 %870 }
  0xd4   : > { %6690 = vst [vmem:[#allocation30_spill] sm:$0xff] %v5094_v54  ;;  %v5096_v55 = vpop.permute.xlu0 %763 }
  0xd5   : > { %6691 = vst [vmem:[#allocation31_spill] sm:$0xff] %v5096_v55 }
  0xd6   : > { %v429_v56 = vpop.f32.mrf.mxu0 }
  0xd7   : > { %v430_v58 = vadd.f32 %v5033_v49, %v429_v56 }
  0xd9   : > { %v517_v63 = vmax.f32 %v430_v58, 0.0  ;;  %476 = vmatmul.f32.gmra.mxu0 %v368_v57 }
  0xda   : > { %v5102_v0 = vpop.permute.xlu2 %905  ;;  %v5133_v52 = vld [vmem:[#allocation2 + $0x2f] sm:$0xff] }
  0xdb   : > { %556 = vst.msk [vmem:[#allocation2 + $0x38] sm:$0xff] %vm545_vm0, %v517_v63  ;;  %v5104_v1 = vpop.permute.xlu1 %773 }
  0xdc   : > { %6692 = vst [vmem:[#allocation32_spill] sm:$0xff] %v5102_v0  ;;  %v5106_v3 = vpop.permute.xlu0 %875 }
  0xdd   : > { %6693 = vst [vmem:[#allocation33_spill] sm:$0xff] %v5104_v1  ;;  %v1868_v1 = vld [vmem:[#allocation3 + $0x70] sm:$0xff] }
  0xde   : > { %6694 = vst [vmem:[#allocation34_spill] sm:$0xff] %v5106_v3  ;;  %v432_v4 = vpop.f32.mrf.mxu0  ;;  %1979 = vmatpush.msrb.mxu1 %v1868_v1 }
  0xdf   : > { %v433_v10 = vadd.f32 %v5033_v49, %v432_v4  ;;  %v371_v4 = vld [vmem:[%s4821_s27 + $0xb8] sm:$0xff] }
  0xe1   : > { %v518_v11 = vmax.f32 %v433_v10, 0.0  ;;  %479 = vmatmul.f32.gmra.mxu0 %v369_v6 }
  0xe2   : > { %v5111_v15 = vpop.permute.xlu2 %643 }
  0xe3   : > { %557 = vst.msk [vmem:[#allocation2 + $0x40] sm:$0xff] %vm545_vm0, %v518_v11  ;;  %v5117_v18 = vpop.permute.xlu1 %618 }
  0xe4   : > { %v5115_v17 = vpop.permute.xlu0 %885  ;;  %v5121_v22 = vmul.f32 %v5113_v16, %v5117_v18 }
  0xe6   : > { %6695 = vst [vmem:[#allocation35_spill] sm:$0xff] %v5121_v22  ;;  %v435_v23 = vpop.f32.mrf.mxu0 }
  0xe7   : > { %v436_v25 = vadd.f32 %v5033_v49, %v435_v23 }
  0xe9   : > { %v519_v30 = vmax.f32 %v436_v25, 0.0  ;;  %482 = vmatmul.f32.gmra.mxu0 %v370_v24 }
  0xea   : > { %v1806_v33 = vld [vmem:[#allocation2 + $0x3f] sm:$0xff]  ;;  %v5130_v40 = vpop.permute.xlu2 %920 }
  0xeb   : > { %v1043_v38 = vld [vmem:[#allocation2 + $0x40] sm:$0xff]  ;;  %v5126_v39 = vmul.f32 %v1806_v33, %v5111_v15  ;;  %558 = vst.msk [vmem:[#allocation2 + $0x48] sm:$0xff] %vm545_vm0, %v519_v30  ;;  %v1007_v45 = vmul.f32 %v1806_v33, %v4946_v14  ;;  %v5137_v57 = vpop.permute.xlu1 %895 }
  0xec   : > { %4084 = vmatmul.msk.f32.vlgmr.msra.gmra.mxu1 %vm545_vm0, %v1043_v38  ;;  %6697 = vst [vmem:[#allocation37_spill] sm:$0xff] %v5130_v40  ;;  %v5135_v56 = vpop.permute.xlu0 %623 }
  0xed   : > { %6696 = vst [vmem:[#allocation36_spill] sm:$0xff] %v5126_v39  ;;  %v5141_v58 = vmul.f32 %v5133_v52, %v5135_v56  ;;  %4116 = vmatmul.msk.f32.vlgmr.msra.gmra.mxu2 %vm545_vm0, %v1007_v45 }
  0xee   : > { %v438_v63 = vpop.f32.mrf.mxu0 }
  0xef   : > { %6698 = vst [vmem:[#allocation38_spill] sm:$0xff] %v5141_v58  ;;  %v439_v6 = vadd.f32 %v5033_v49, %v438_v63 }
  0xf1   : > { %v520_v10 = vmax.f32 %v439_v6, 0.0  ;;  %485 = vmatmul.f32.gmra.mxu0 %v371_v4 }
  0xf2   : > { %v1044_v11 = vld [vmem:[#allocation2 + $0x48] sm:$0xff]  ;;  %v5150_v25 = vpop.permute.xlu2 %935 }
  0xf3   : > { %v976_v23 = vld [vmem:[#allocation2 + $0x47] sm:$0xff]  ;;  %559 = vst.msk [vmem:[#allocation2 + $0x50] sm:$0xff] %vm545_vm0, %v520_v10  ;;  %v5157_v63 = vpop.permute.xlu1 %633 }
  0xf4   : > { %v5146_v24 = vld [vmem:[#allocation2 + $0x41] sm:$0xff]  ;;  %4085 = vmatmul.msk.f32.gmra.mxu1 %vm545_vm0, %v1044_v11  ;;  %6699 = vst [vmem:[#allocation39_spill] sm:$0xff] %v5150_v25  ;;  %v1008_v30 = vmul.f32 %v976_v23, %v4962_v21  ;;  %v5155_v45 = vpop.permute.xlu0 %900  ;;  %v5160_v4 = vmul.f32 %v1806_v33, %v5157_v63 }
  0xf5   : > { %v1530_v38 = vmul.f32 %v5146_v24, %v5055_v62  ;;  %6700 = vst [vmem:[#allocation40_spill] sm:$0xff] %v5155_v45  ;;  %v372_v10 = vld [vmem:[%s4821_s27 + $0xc0] sm:$0xff] }
  0xf6   : > { %6701 = vst [vmem:[#allocation41_spill] sm:$0xff] %v5160_v4  ;;  %4117 = vmatmul.msk.f32.gmra.mxu2 %vm545_vm0, %v1008_v30  ;;  %v441_v6 = vpop.f32.mrf.mxu0 }
  0xf7   : > { %4148 = vmatmul.msk.f32.vlgmr.msra.gmra.mxu3 %vm545_vm0, %v1530_v38  ;;  %v442_v11 = vadd.f32 %v5033_v49, %v441_v6 }
  0xf9   : > { %v521_v14 = vmax.f32 %v442_v11, 0.0  ;;  %488 = vmatmul.f32.gmra.mxu0 %v372_v10 }
  0xfa   : > { %v1045_v21 = vld [vmem:[#allocation2 + $0x50] sm:$0xff]  ;;  %v5170_v33 = vpop.permute.xlu2 %950 }
  0xfb   : > { %v977_v62 = vld [vmem:[#allocation2 + $0x4f] sm:$0xff]  ;;  %560 = vst.msk [vmem:[#allocation2 + $0x58] sm:$0xff] %vm545_vm0, %v521_v14  ;;  %v5177_v6 = vpop.permute.xlu1 %910 }
  0xfc   : > { %v5166_v58 = vld [vmem:[#allocation2 + $0x49] sm:$0xff]  ;;  %4086 = vmatmul.msk.f32.gmra.mxu1 %vm545_vm0, %v1045_v21  ;;  %6702 = vst [vmem:[#allocation42_spill] sm:$0xff] %v5170_v33  ;;  %v1009_v30 = vmul.f32 %v977_v62, %v4944_v13  ;;  %v5175_v4 = vpop.permute.xlu0 %638 }
  0xfd   : > { %v1531_v38 = vmul.f32 %v5166_v58, %v4996_v34  ;;  %6703 = vst [vmem:[#allocation43_spill] sm:$0xff] %v5177_v6  ;;  %v5180_v10 = vmul.f32 %v976_v23, %v5175_v4  ;;  %v373_v21 = vld [vmem:[%s4821_s27 + $0xc8] sm:$0xff] }
  0xfe   : > { %4118 = vmatmul.msk.f32.gmra.mxu2 %vm545_vm0, %v1009_v30  ;;  %v444_v14 = vpop.f32.mrf.mxu0 }
  0xff   : > { %6704 = vst [vmem:[#allocation44_spill] sm:$0xff] %v5180_v10  ;;  %4149 = vmatmul.msk.f32.gmra.mxu3 %vm545_vm0, %v1531_v38  ;;  %v445_v11 = vadd.f32 %v5033_v49, %v444_v14  ;;  %v2146_v10 = vld [vmem:[#allocation3 + $0x90] sm:$0xff] }
 0x100   : > { %2257 = vmatpush.msrb.mxu2 %v2146_v10 }
 0x101   : > { %v522_v22 = vmax.f32 %v445_v11, 0.0  ;;  %491 = vmatmul.f32.gmra.mxu0 %v373_v21 }
 0x102   : > { %v1046_v62 = vld [vmem:[#allocation2 + $0x58] sm:$0xff]  ;;  %v5188_v39 = vpop.permute.xlu2 %965 }
 0x103   : > { %v2705_v13 = vld [vmem:[#allocation2 + $0x57] sm:$0xff]  ;;  %561 = vst.msk [vmem:[#allocation2 + $0x60] sm:$0xff] %vm545_vm0, %v522_v22  ;;  %v5194_v14 = vpop.permute.xlu1 %648 }
 0x104   : > { %v1500_v34 = vld [vmem:[#allocation2 + $0x51] sm:$0xff]  ;;  %4087 = vmatmul.msk.f32.gmra.mxu1 %vm545_vm0, %v1046_v62  ;;  %6705 = vst [vmem:[#allocation45_spill] sm:$0xff] %v5188_v39  ;;  %v1010_v30 = vmul.f32 %v2705_v13, %v4960_v20  ;;  %v5192_v59 = vpop.permute.xlu0 %915  ;;  %v5197_v21 = vmul.f32 %v976_v23, %v5194_v14  ;;  %v5200_v22 = vmul.f32 %v2705_v13, %v5194_v14  ;;  %v5212_v23 = vld [vmem:[#allocation2 + $0x39] sm:$0xff] }
 0x105   : > { %v1532_v38 = vmul.f32 %v1500_v34, %v5065_v8  ;;  %6706 = vst [vmem:[#allocation46_spill] sm:$0xff] %v5192_v59  ;;  %v374_v62 = vld [vmem:[%s4821_s27 + $0xd0] sm:$0xff] }
 0x106   : > { %6707 = vst [vmem:[#allocation47_spill] sm:$0xff] %v5197_v21  ;;  %4119 = vmatmul.msk.f32.gmra.mxu2 %vm545_vm0, %v1010_v30  ;;  %v447_v11 = vpop.f32.mrf.mxu0 }
 0x107   : > { %6708 = vst [vmem:[#allocation48_spill] sm:$0xff] %v5200_v22  ;;  %4150 = vmatmul.msk.f32.gmra.mxu3 %vm545_vm0, %v1532_v38  ;;  %v448_v8 = vadd.f32 %v5033_v49, %v447_v11 }
 0x108   : > { %6710 = vst [vmem:[#allocation50_spill] sm:$0xff] %v5212_v23 }
 0x109   : > { %v523_v20 = vmax.f32 %v448_v8, 0.0  ;;  %494 = vmatmul.f32.gmra.mxu0 %v374_v62 }
 0x10a   : > { %v1047_v39 = vld [vmem:[#allocation2 + $0x60] sm:$0xff]  ;;  %v5210_v13 = vpop.permute.xlu2 %820 }
 0x10b   : > { %v979_v10 = vld [vmem:[#allocation2 + $0x5f] sm:$0xff]  ;;  %562 = vst.msk [vmem:[#allocation2 + $0x68] sm:$0xff] %vm545_vm0, %v523_v20  ;;  %v5219_v8 = vmul.f32 %v5212_v23, %v5210_v13  ;;  %v5223_v62 = vpop.permute.xlu1 %930 }
 0x10c   : > { %v5206_v1 = vld [vmem:[#allocation2 + $0x59] sm:$0xff]  ;;  %4088 = vmatmul.msk.f32.gmra.mxu1 %vm545_vm0, %v1047_v39  ;;  %6709 = vst [vmem:[#allocation49_spill] sm:$0xff] %v5210_v13  ;;  %v1011_v30 = vmul.f32 %v979_v10, %v4906_v61  ;;  %v5221_v11 = vpop.permute.xlu0 %925 }
 0x10d   : > { %v1533_v38 = vmul.f32 %v5206_v1, %v5076_v32  ;;  %6711 = vst [vmem:[#allocation51_spill] sm:$0xff] %v5219_v8  ;;  %v375_v39 = vld [vmem:[%s4821_s27 + $0xd8] sm:$0xff] }
 0x10e   : > { %6712 = vst [vmem:[#allocation52_spill] sm:$0xff] %v5221_v11  ;;  %4120 = vmatmul.msk.f32.gmra.mxu2 %vm545_vm0, %v1011_v30  ;;  %v450_v20 = vpop.f32.mrf.mxu0 }
 0x10f   : > { %6713 = vst [vmem:[#allocation53_spill] sm:$0xff] %v5223_v62  ;;  %4151 = vmatmul.msk.f32.gmra.mxu3 %vm545_vm0, %v1533_v38  ;;  %v451_v22 = vadd.f32 %v5033_v49, %v450_v20 }
 0x111   : > { %v524_v10 = vmax.f32 %v451_v22, 0.0  ;;  %497 = vmatmul.f32.gmra.mxu0 %v375_v39 }
 0x112   : > { %v1048_v32 = vld [vmem:[#allocation2 + $0x68] sm:$0xff]  ;;  %v5231_v8 = vpop.permute.xlu2 %835 }
 0x113   : > { %v980_v61 = vld [vmem:[#allocation2 + $0x67] sm:$0xff]  ;;  %563 = vst.msk [vmem:[#allocation2 + $0x70] sm:$0xff] %vm545_vm0, %v524_v10  ;;  %v5236_v23 = vmul.f32 %v1500_v34, %v5231_v8  ;;  %v5240_v22 = vpop.permute.xlu1 %945 }
 0x114   : > { %v1502_v21 = vld [vmem:[#allocation2 + $0x61] sm:$0xff]  ;;  %4089 = vmatmul.msk.f32.gmra.mxu1 %vm545_vm0, %v1048_v32  ;;  %6714 = vst [vmem:[#allocation54_spill] sm:$0xff] %v5231_v8  ;;  %v1012_v30 = vmul.f32 %v980_v61, %v4918_v2  ;;  %v5238_v20 = vpop.permute.xlu0 %940 }
 0x115   : > { %v1534_v38 = vmul.f32 %v1502_v21, %v5028_v48  ;;  %6715 = vst [vmem:[#allocation55_spill] sm:$0xff] %v5236_v23  ;;  %v376_v10 = vld [vmem:[%s4821_s27 + $0xe0] sm:$0xff] }
 0x116   : > { %6716 = vst [vmem:[#allocation56_spill] sm:$0xff] %v5238_v20  ;;  %4121 = vmatmul.msk.f32.gmra.mxu2 %vm545_vm0, %v1012_v30  ;;  %v453_v39 = vpop.f32.mrf.mxu0 }
 0x117   : > { %6717 = vst [vmem:[#allocation57_spill] sm:$0xff] %v5240_v22  ;;  %4152 = vmatmul.msk.f32.gmra.mxu3 %vm545_vm0, %v1534_v38  ;;  %v454_v32 = vadd.f32 %v5033_v49, %v453_v39 }
 0x119   : > { %v525_v13 = vmax.f32 %v454_v32, 0.0  ;;  %500 = vmatmul.f32.gmra.mxu0 %v376_v10  ;;  %v377_v10 = vld [vmem:[%s4821_s27 + $0xe8] sm:$0xff] }
 0x11a   : > { %v1049_v61 = vld [vmem:[#allocation2 + $0x70] sm:$0xff] }
 0x11b   : > { %v981_v21 = vld [vmem:[#allocation2 + $0x6f] sm:$0xff]  ;;  %564 = vst.msk [vmem:[#allocation2 + $0x78] sm:$0xff] %vm545_vm0, %v525_v13  ;;  %v5252_v38 = vpop.permute.xlu1 %960 }
 0x11c   : > { %v1503_v48 = vld [vmem:[#allocation2 + $0x69] sm:$0xff]  ;;  %4090 = vmatmul.msk.f32.gmra.mxu1 %vm545_vm0, %v1049_v61  ;;  %v1013_v34 = vmul.f32 %v981_v21, %v4979_v29  ;;  %v5250_v23 = vpop.permute.xlu0 %955  ;;  %6719 = vst [vmem:[#allocation59_spill] sm:$0xff] %v5252_v38 }
 0x11d   : > { %v1535_v30 = vmul.f32 %v1503_v48, %v5094_v54  ;;  %6718 = vst [vmem:[#allocation58_spill] sm:$0xff] %v5250_v23  ;;  %v5262_v54 = vld [vmem:[#allocation2 + $0x29] sm:$0xff] }
 0x11e   : > { %4122 = vmatmul.msk.f32.gmra.mxu2 %vm545_vm0, %v1013_v34  ;;  %v456_v39 = vpop.f32.mrf.mxu0 }
 0x11f   : > { %4153 = vmatmul.msk.f32.gmra.mxu3 %vm545_vm0, %v1535_v30  ;;  %v457_v32 = vadd.f32 %v5033_v49, %v456_v39  ;;  %v5268_v39 = vld [vmem:[#allocation2 + $0x31] sm:$0xff] }
 0x121   : > { %v526_v2 = vmax.f32 %v457_v32, 0.0  ;;  %503 = vmatmul.f32.gmra.mxu0 %v377_v10 }
 0x122   : > { %v1050_v13 = vld [vmem:[#allocation2 + $0x78] sm:$0xff] }
 0x123   : > { %v982_v61 = vld [vmem:[#allocation2 + $0x77] sm:$0xff]  ;;  %565 = vst.msk [vmem:[#allocation2 + $0x80] sm:$0xff] %vm545_vm0, %v526_v2  ;;  %v5266_v29 = vpop.permute.xlu1 %815 }
 0x124   : > { %v1504_v21 = vld [vmem:[#allocation2 + $0x71] sm:$0xff]  ;;  %4091 = vmatmul.msk.f32.gmra.mxu1 %vm545_vm0, %v1050_v13  ;;  %v1014_v48 = vmul.f32 %v982_v61, %v4976_v27  ;;  %v5264_v30 = vpop.permute.xlu0 %810  ;;  %v5277_v2 = vmul.f32 %v5268_v39, %v5266_v29 }
 0x125   : > { %v1536_v34 = vmul.f32 %v1504_v21, %v5106_v3  ;;  %v5272_v10 = vmul.f32 %v5262_v54, %v5264_v30  ;;  %v378_v13 = vld [vmem:[%s4821_s27 + $0xf0] sm:$0xff] }
 0x126   : > { %4123 = vmatmul.msk.f32.gmra.mxu2 %vm545_vm0, %v1014_v48  ;;  %6721 = vst [vmem:[#allocation61_spill] sm:$0xff] %v5277_v2  ;;  %v459_v32 = vpop.f32.mrf.mxu0 }
 0x127   : > { %6720 = vst [vmem:[#allocation60_spill] sm:$0xff] %v5272_v10  ;;  %4154 = vmatmul.msk.f32.gmra.mxu3 %vm545_vm0, %v1536_v34  ;;  %v460_v61 = vadd.f32 %v5033_v49, %v459_v32 }
 0x129   : > { %v527_v21 = vmax.f32 %v460_v61, 0.0  ;;  %506 = vmatmul.f32.gmra.mxu0 %v378_v13 }
 0x12a   : > { %v1051_v3 = vld [vmem:[#allocation2 + $0x80] sm:$0xff] }
 0x12b   : > { %v983_v27 = vld [vmem:[#allocation2 + $0x7f] sm:$0xff]  ;;  %566 = vst.msk [vmem:[#allocation2 + $0x88] sm:$0xff] %vm545_vm0, %v527_v21  ;;  %v5288_v34 = vpop.permute.xlu1 %830 }
 0x12c   : > { %v1505_v8 = vld [vmem:[#allocation2 + $0x79] sm:$0xff]  ;;  %4092 = vmatmul.msk.f32.gmra.mxu1 %vm545_vm0, %v1051_v3  ;;  %v1015_v48 = vmul.f32 %v983_v27, %v4930_v7  ;;  %v5286_v10 = vpop.permute.xlu0 %825  ;;  %v5297_v13 = vmul.f32 %v5166_v58, %v5288_v34 }
 0x12d   : > { %v1537_v2 = vmul.f32 %v1505_v8, %v5063_v5  ;;  %v5292_v32 = vmul.f32 %v5146_v24, %v5286_v10  ;;  %v379_v27 = vld [vmem:[%s4821_s27 + $0xf8] sm:$0xff] }
 0x12e   : > { %4124 = vmatmul.msk.f32.gmra.mxu2 %vm545_vm0, %v1015_v48  ;;  %6723 = vst [vmem:[#allocation63_spill] sm:$0xff] %v5297_v13  ;;  %v462_v3 = vpop.f32.mrf.mxu0  ;;  %v2145_v48 = vld [vmem:[#allocation3 + $0x88] sm:$0xff] }
 0x12f   : > { %6722 = vst [vmem:[#allocation62_spill] sm:$0xff] %v5292_v32  ;;  %4155 = vmatmul.msk.f32.gmra.mxu3 %vm545_vm0, %v1537_v2  ;;  %v463_v8 = vadd.f32 %v5033_v49, %v462_v3  ;;  %2258 = vmatpush.msrb.mxu2 %v2145_v48 }
 0x131   : > { %v528_v61 = vmax.f32 %v463_v8, 0.0  ;;  %509 = vmatmul.f32.gmra.mxu0 %v379_v27  ;;  %v1036_v27 = vld [vmem:[#allocation2 + $0x8] sm:$0xff]  ;;  %v1867_v8 = vld [vmem:[#allocation3 + $0x68] sm:$0xff] }
 0x132   : > { %v1052_v21 = vld [vmem:[#allocation2 + $0x88] sm:$0xff]  ;;  %1980 = vmatpush.msrb.mxu1 %v1867_v8 }
 0x133   : > { %v984_v5 = vld [vmem:[#allocation2 + $0x87] sm:$0xff]  ;;  %567 = vst.msk [vmem:[#allocation2 + $0x90] sm:$0xff] %vm545_vm0, %v528_v61 }
 0x134   : > { %v1506_v7 = vld [vmem:[#allocation2 + $0x81] sm:$0xff]  ;;  %4093 = vmatmul.msk.f32.gmra.mxu1 %vm545_vm0, %v1052_v21  ;;  %v1016_v24 = vmul.f32 %v984_v5, %v5000_v36  ;;  %v5306_v13 = vpop.permute.xlu0 %840 }
 0x135   : > { %v1538_v58 = vmul.f32 %v1506_v7, %v5115_v17  ;;  %v5310_v2 = vmul.f32 %v5206_v1, %v5306_v13 }
 0x136   : > { %4125 = vmatmul.msk.f32.gmra.mxu2 %vm545_vm0, %v1016_v24  ;;  %v465_v3 = vpop.f32.mrf.mxu0 }
 0x137   : > { %6724 = vst [vmem:[#allocation64_spill] sm:$0xff] %v5310_v2  ;;  %4156 = vmatmul.msk.f32.gmra.mxu3 %vm545_vm0, %v1538_v58  ;;  %v466_v61 = vadd.f32 %v5033_v49, %v465_v3  ;;  %v1037_v3 = vld [vmem:[#allocation2 + $0x10] sm:$0xff] }
 0x139   : > { %v529_v5 = vmax.f32 %v466_v61, 0.0  ;;  %4077 = vmatmul.msk.f32.vlgmr.msrb.gmra.mxu0 %vm545_vm0, %v1036_v27 }
 0x13a   : > { %v1053_v7 = vld [vmem:[#allocation2 + $0x90] sm:$0xff]  ;;  %1668 = vmatpush.msrb.mxu0 %v5078_v37 }
 0x13b   : > { %v5316_v21 = vld [vmem:[#allocation2 + $0x8f] sm:$0xff]  ;;  %568 = vst.msk [vmem:[#allocation2 + $0x98] sm:$0xff] %vm545_vm0, %v529_v5 }
 0x13c   : > { %v5318_v48 = vld [vmem:[#allocation2 + $0x89] sm:$0xff]  ;;  %4094 = vmatmul.msk.f32.gmra.mxu1 %vm545_vm0, %v1053_v7  ;;  %v1017_v1 = vmul.f32 %v5316_v21, %v4998_v35  ;;  %1669 = vmatpush.msrb.mxu0 %v5083_v44 }
 0x13d   : > { %v1539_v24 = vmul.f32 %v5318_v48, %v5072_v28 }
 0x13e   : > { %4126 = vmatmul.msk.f32.gmra.mxu2 %vm545_vm0, %v1017_v1  ;;  %v468_v58 = vpop.f32.mrf.mxu0  ;;  %1670 = vmatpush.msrb.mxu0 %v5086_v46  ;;  %v5347_v1 = vld [vmem:[#allocation2 + $0x18] sm:$0xff] }
 0x13f   : > { %4157 = vmatmul.msk.f32.gmra.mxu3 %vm545_vm0, %v1539_v24  ;;  %v469_v37 = vadd.f32 %v5033_v49, %v468_v58 }
 0x140   : > { %1671 = vmatpush.msrb.mxu0 %v5092_v53 }
 0x141   : > { %v530_v27 = vmax.f32 %v469_v37, 0.0  ;;  %4078 = vmatmul.msk.f32.gmra.mxu0 %vm545_vm0, %v1037_v3 }
 0x142   : > { %v1054_v8 = vld [vmem:[#allocation2 + $0x98] sm:$0xff] }
 0x143   : > { %v5334_v61 = vld [vmem:[#allocation2 + $0x97] sm:$0xff]  ;;  %569 = vst.msk [vmem:[#allocation2 + $0xa0] sm:$0xff] %vm545_vm0, %v530_v27 }
 0x144   : > { %v5336_v5 = vld [vmem:[#allocation2 + $0x91] sm:$0xff]  ;;  %4095 = vmatmul.msk.f32.gmra.mxu1 %vm545_vm0, %v1054_v8  ;;  %v1018_v44 = vmul.f32 %v5334_v61, %v4942_v12 }
 0x145   : > { %v1540_v46 = vmul.f32 %v5336_v5, %v5137_v57 }
 0x146   : > { %4127 = vmatmul.msk.f32.gmra.mxu2 %vm545_vm0, %v1018_v44  ;;  %v471_v53 = vpop.f32.mrf.mxu0 }
 0x147   : > { %4158 = vmatmul.msk.f32.gmra.mxu3 %vm545_vm0, %v1540_v46  ;;  %v472_v7 = vadd.f32 %v5033_v49, %v471_v53  ;;  %v5361_v53 = vld [vmem:[#allocation2 + $0x20] sm:$0xff] }
 0x149   : > { %v531_v24 = vmax.f32 %v472_v7, 0.0  ;;  %4079 = vmatmul.msk.f32.gmra.mxu0 %vm545_vm0, %v5347_v1 }
 0x14a   : > { %v1055_v58 = vld [vmem:[#allocation2 + $0xa0] sm:$0xff] }
 0x14b   : > { %v5351_v3 = vld [vmem:[#allocation2 + $0x9f] sm:$0xff]  ;;  %570 = vst.msk [vmem:[#allocation2 + $0xa8] sm:$0xff] %vm545_vm0, %v531_v24 }
 0x14c   : > { %v1509_v37 = vld [vmem:[#allocation2 + $0x99] sm:$0xff]  ;;  %4096 = vmatmul.msk.f32.gmra.mxu1 %vm545_vm0, %v1055_v58  ;;  %v1019_v27 = vmul.f32 %v5351_v3, %v5016_v43 }
 0x14d   : > { %v1541_v8 = vmul.f32 %v1509_v37, %v5155_v45 }
 0x14e   : > { %4128 = vmatmul.msk.f32.gmra.mxu2 %vm545_vm0, %v1019_v27  ;;  %v474_v44 = vpop.f32.mrf.mxu0 }
 0x14f   : > { %4159 = vmatmul.msk.f32.gmra.mxu3 %vm545_vm0, %v1541_v8  ;;  %v475_v46 = vadd.f32 %v5033_v49, %v474_v44 }
 0x151   : > { %v532_v7 = vmax.f32 %v475_v46, 0.0  ;;  %4080 = vmatmul.msk.f32.gmra.mxu0 %vm545_vm0, %v5361_v53  ;;  %v5372_v46 = vld [vmem:[#allocation2 + $0x28] sm:$0xff] }
 0x152   : > { %v1056_v24 = vld [vmem:[#allocation2 + $0xa8] sm:$0xff] }
 0x153   : > { %v988_v58 = vld [vmem:[#allocation2 + $0xa7] sm:$0xff]  ;;  %571 = vst.msk [vmem:[#allocation2 + $0xb0] sm:$0xff] %vm545_vm0, %v532_v7 }
 0x154   : > { %v1510_v2 = vld [vmem:[#allocation2 + $0xa1] sm:$0xff]  ;;  %4097 = vmatmul.msk.f32.gmra.mxu1 %vm545_vm0, %v1056_v24  ;;  %v1020_v37 = vmul.f32 %v988_v58, %v5014_v42 }
 0x155   : > { %v1542_v27 = vmul.f32 %v1510_v2, %v5102_v0 }
 0x156   : > { %4129 = vmatmul.msk.f32.gmra.mxu2 %vm545_vm0, %v1020_v37  ;;  %v477_v8 = vpop.f32.mrf.mxu0  ;;  %v2457_v37 = vld [vmem:[#allocation3 + $0xb8] sm:$0xff] }
 0x157   : > { %4160 = vmatmul.msk.f32.gmra.mxu3 %vm545_vm0, %v1542_v27  ;;  %v478_v44 = vadd.f32 %v5033_v49, %v477_v8 }
 0x158   : > { %2566 = vmatpush.msrb.mxu3 %v2457_v37 }
 0x159   : > { %v533_v32 = vmax.f32 %v478_v44, 0.0  ;;  %4081 = vmatmul.msk.f32.gmra.mxu0 %vm545_vm0, %v5372_v46  ;;  %v5383_v44 = vld [vmem:[#allocation2 + $0x30] sm:$0xff] }
 0x15a   : > { %v1057_v7 = vld [vmem:[#allocation2 + $0xb0] sm:$0xff] }
 0x15b   : > { %v989_v45 = vld [vmem:[#allocation2 + $0xaf] sm:$0xff]  ;;  %572 = vst.msk [vmem:[#allocation2 + $0xb8] sm:$0xff] %vm545_vm0, %v533_v32 }
 0x15c   : > { %v1511_v24 = vld [vmem:[#allocation2 + $0xa9] sm:$0xff]  ;;  %4098 = vmatmul.msk.f32.gmra.mxu1 %vm545_vm0, %v1057_v7  ;;  %v1021_v2 = vmul.f32 %v989_v45, %v4958_v19 }
 0x15d   : > { %v1543_v58 = vmul.f32 %v1511_v24, %v5177_v6  ;;  %v5394_v6 = vld [vmem:[#allocation2 + $0x38] sm:$0xff] }
 0x15e   : > { %4130 = vmatmul.msk.f32.gmra.mxu2 %vm545_vm0, %v1021_v2  ;;  %v480_v27 = vpop.f32.mrf.mxu0 }
 0x15f   : > { %4161 = vmatmul.msk.f32.gmra.mxu3 %vm545_vm0, %v1543_v58  ;;  %v481_v8 = vadd.f32 %v5033_v49, %v480_v27  ;;  %v2144_v58 = vld [vmem:[#allocation3 + $0x80] sm:$0xff] }
 0x160   : > { %2259 = vmatpush.msrb.mxu2 %v2144_v58  ;;  %v968_v58 = vld [vmem:[#allocation2 + $0x7] sm:$0xff] }
 0x161   : > { %v534_v0 = vmax.f32 %v481_v8, 0.0  ;;  %4082 = vmatmul.msk.f32.gmra.mxu0 %vm545_vm0, %v5383_v44 }
 0x162   : > { %v1058_v32 = vld [vmem:[#allocation2 + $0xb8] sm:$0xff] }
 0x163   : > { %v990_v7 = vld [vmem:[#allocation2 + $0xb7] sm:$0xff]  ;;  %573 = vst.msk [vmem:[#allocation2 + $0xc0] sm:$0xff] %vm545_vm0, %v534_v0 }
 0x164   : > { %v1512_v45 = vld [vmem:[#allocation2 + $0xb1] sm:$0xff]  ;;  %4099 = vmatmul.msk.f32.gmra.mxu1 %vm545_vm0, %v1058_v32  ;;  %v1022_v24 = vmul.f32 %v990_v7, %v5037_v51 }
 0x165   : > { %v1544_v2 = vmul.f32 %v1512_v45, %v5192_v59 }
 0x166   : > { %4131 = vmatmul.msk.f32.gmra.mxu2 %vm545_vm0, %v1022_v24  ;;  %v483_v37 = vpop.f32.mrf.mxu0 }
 0x167   : > { %4162 = vmatmul.msk.f32.gmra.mxu3 %vm545_vm0, %v1544_v2  ;;  %v484_v27 = vadd.f32 %v5033_v49, %v483_v37  ;;  %v1866_v2 = vld [vmem:[#allocation3 + $0x60] sm:$0xff] }
 0x168   : > { %1981 = vmatpush.msrb.mxu1 %v1866_v2  ;;  %v969_v2 = vld [vmem:[#allocation2 + $0xf] sm:$0xff] }
 0x169   : > { %v1207_v8 = vpop.f32.mrf.mxu1  ;;  %v535_v19 = vmax.f32 %v484_v27, 0.0  ;;  %4083 = vmatmul.msk.f32.gmra.mxu0 %vm545_vm0, %v5394_v6  ;;  %v1000_v27 = vmul.f32 %v968_v58, %v5117_v18 }
 0x16a   : > { %v1059_v0 = vld [vmem:[#allocation2 + $0xc0] sm:$0xff] }
 0x16b   : > { %v991_v32 = vld [vmem:[#allocation2 + $0xbf] sm:$0xff]  ;;  %574 = vst.msk [vmem:[#allocation2 + $0xc8] sm:$0xff] %vm545_vm0, %v535_v19 }
 0x16c   : > { %v1513_v7 = vld [vmem:[#allocation2 + $0xb9] sm:$0xff]  ;;  %4100 = vmatmul.msk.f32.gmra.mxu1 %vm545_vm0, %v1059_v0  ;;  %v1023_v45 = vmul.f32 %v991_v32, %v5035_v50 }
 0x16d   : > { %v1545_v24 = vmul.f32 %v1513_v7, %v5130_v40 }
 0x16e   : > { %4132 = vmatmul.msk.f32.gmra.mxu2 %vm545_vm0, %v1023_v45  ;;  %v486_v37 = vpop.f32.mrf.mxu0 }
 0x16f   : > { %4163 = vmatmul.msk.f32.gmra.mxu3 %vm545_vm0, %v1545_v24  ;;  %v487_v59 = vadd.f32 %v5033_v49, %v486_v37 }
 0x170   : > { %v1416_v19 = vpop.f32.mrf.mxu2 }
 0x171   : > { %v1210_v51 = vpop.f32.mrf.mxu1  ;;  %v536_v42 = vmax.f32 %v487_v59, 0.0  ;;  %v1417_v0 = vadd.f32 %v1416_v19, %v1207_v8  ;;  %4109 = vmatmul.msk.f32.vlgmr.msra.gmra.mxu0 %vm545_vm0, %v1000_v27  ;;  %v1001_v8 = vmul.f32 %v969_v2, %v5135_v56  ;;  %v5423_v2 = vld [vmem:[#allocation2 + $0x17] sm:$0xff] }
 0x172   : > { %v1060_v32 = vld [vmem:[#allocation2 + $0xc8] sm:$0xff] }
 0x173   : > { %v992_v7 = vld [vmem:[#allocation2 + $0xc7] sm:$0xff]  ;;  %575 = vst.msk [vmem:[#allocation2 + $0xd0] sm:$0xff] %vm545_vm0, %v536_v42 }
 0x174   : > { %v1514_v40 = vld [vmem:[#allocation2 + $0xc1] sm:$0xff]  ;;  %4101 = vmatmul.msk.f32.gmra.mxu1 %vm545_vm0, %v1060_v32  ;;  %v1024_v45 = vmul.f32 %v992_v7, %v4974_v26 }
 0x175   : > { %v1546_v24 = vmul.f32 %v1514_v40, %v5221_v11 }
 0x176   : > { %4133 = vmatmul.msk.f32.gmra.mxu2 %vm545_vm0, %v1024_v45  ;;  %v489_v59 = vpop.f32.mrf.mxu0 }
 0x177   : > { %4164 = vmatmul.msk.f32.gmra.mxu3 %vm545_vm0, %v1546_v24  ;;  %v490_v58 = vadd.f32 %v5033_v49, %v489_v59 }
 0x179   : > { %v1213_v37 = vpop.f32.mrf.mxu1  ;;  %v1419_v27 = vpop.f32.mrf.mxu2  ;;  %v537_v19 = vmax.f32 %v490_v58, 0.0  ;;  %4110 = vmatmul.msk.f32.gmra.mxu0 %vm545_vm0, %v1001_v8 }
 0x17a   : > { %v1420_v42 = vadd.f32 %v1419_v27, %v1210_v51  ;;  %v1694_v50 = vpop.f32.mrf.mxu3  ;;  %v1061_v40 = vld [vmem:[#allocation2 + $0xd0] sm:$0xff] }
 0x17b   : > { %v5416_v32 = vadd.f32 %v1694_v50, %v1417_v0  ;;  %v993_v7 = vld [vmem:[#allocation2 + $0xcf] sm:$0xff]  ;;  %576 = vst.msk [vmem:[#allocation2 + $0xd8] sm:$0xff] %vm545_vm0, %v537_v19  ;;  %v1002_v50 = vmul.f32 %v5423_v2, %v5090_v47 }
 0x17c   : > { %v1515_v11 = vld [vmem:[#allocation2 + $0xc9] sm:$0xff]  ;;  %4102 = vmatmul.msk.f32.gmra.mxu1 %vm545_vm0, %v1061_v40  ;;  %v1025_v45 = vmul.f32 %v993_v7, %v5053_v60 }
 0x17d   : > { %v1547_v24 = vmul.f32 %v1515_v11, %v5223_v62 }
 0x17e   : > { %4134 = vmatmul.msk.f32.gmra.mxu2 %vm545_vm0, %v1025_v45  ;;  %v492_v51 = vpop.f32.mrf.mxu0 }
 0x17f   : > { %4165 = vmatmul.msk.f32.gmra.mxu3 %vm545_vm0, %v1547_v24  ;;  %v493_v0 = vadd.f32 %v5033_v49, %v492_v51 }
 0x181   : > { %v1216_v59 = vpop.f32.mrf.mxu1  ;;  %v1422_v8 = vpop.f32.mrf.mxu2  ;;  %v538_v58 = vmax.f32 %v493_v0, 0.0  ;;  %4111 = vmatmul.msk.f32.gmra.mxu0 %vm545_vm0, %v1002_v50  ;;  %v5437_v0 = vld [vmem:[#allocation2 + $0x1f] sm:$0xff] }
 0x182   : > { %v1423_v27 = vadd.f32 %v1422_v8, %v1213_v37  ;;  %v1697_v19 = vpop.f32.mrf.mxu3  ;;  %v1062_v40 = vld [vmem:[#allocation2 + $0xd8] sm:$0xff] }
 0x183   : > { %v5430_v11 = vadd.f32 %v1697_v19, %v1420_v42  ;;  %v994_v7 = vld [vmem:[#allocation2 + $0xd7] sm:$0xff]  ;;  %577 = vst.msk [vmem:[#allocation2 + $0xe0] sm:$0xff] %vm545_vm0, %v538_v58  ;;  %v1003_v42 = vmul.f32 %v5437_v0, %v5157_v63 }
 0x184   : > { %v1516_v45 = vld [vmem:[#allocation2 + $0xd1] sm:$0xff]  ;;  %4103 = vmatmul.msk.f32.gmra.mxu1 %vm545_vm0, %v1062_v40  ;;  %v1026_v24 = vmul.f32 %v994_v7, %v5067_v9  ;;  %v2456_v9 = vld [vmem:[#allocation3 + $0xb0] sm:$0xff] }
 0x185   : > { %v1548_v51 = vmul.f32 %v1516_v45, %v5150_v25  ;;  %2567 = vmatpush.msrb.mxu3 %v2456_v9 }
 0x186   : > { %4135 = vmatmul.msk.f32.gmra.mxu2 %vm545_vm0, %v1026_v24  ;;  %v495_v37 = vpop.f32.mrf.mxu0 }
 0x187   : > { %4166 = vmatmul.msk.f32.gmra.mxu3 %vm545_vm0, %v1548_v51  ;;  %v496_v50 = vadd.f32 %v5033_v49, %v495_v37 }
 0x189   : > { %v1219_v8 = vpop.f32.mrf.mxu1  ;;  %v1425_v58 = vpop.f32.mrf.mxu2  ;;  %v539_v19 = vmax.f32 %v496_v50, 0.0  ;;  %4112 = vmatmul.msk.f32.gmra.mxu0 %vm545_vm0, %v1003_v42 }
 0x18a   : > { %v1426_v40 = vadd.f32 %v1425_v58, %v1216_v59  ;;  %v1700_v62 = vpop.f32.mrf.mxu3  ;;  %v1063_v45 = vld [vmem:[#allocation2 + $0xe0] sm:$0xff] }
 0x18b   : > { %v5444_v7 = vadd.f32 %v1700_v62, %v1423_v27  ;;  %v995_v24 = vld [vmem:[#allocation2 + $0xdf] sm:$0xff]  ;;  %578 = vst.msk [vmem:[#allocation2 + $0xe8] sm:$0xff] %vm545_vm0, %v539_v19  ;;  %v1004_v62 = vmul.f32 %v5113_v16, %v5175_v4 }
 0x18c   : > { %v1517_v25 = vld [vmem:[#allocation2 + $0xd9] sm:$0xff]  ;;  %4104 = vmatmul.msk.f32.gmra.mxu1 %vm545_vm0, %v1063_v45  ;;  %v1027_v51 = vmul.f32 %v995_v24, %v5012_v41 }
 0x18d   : > { %v1549_v37 = vmul.f32 %v1517_v25, %v5238_v20 }
 0x18e   : > { %4136 = vmatmul.msk.f32.gmra.mxu2 %vm545_vm0, %v1027_v51  ;;  %v498_v59 = vpop.f32.mrf.mxu0 }
 0x18f   : > { %4167 = vmatmul.msk.f32.gmra.mxu3 %vm545_vm0, %v1549_v37  ;;  %v499_v27 = vadd.f32 %v5033_v49, %v498_v59 }
 0x191   : > { %v1222_v42 = vpop.f32.mrf.mxu1  ;;  %v1428_v50 = vpop.f32.mrf.mxu2  ;;  %v540_v58 = vmax.f32 %v499_v27, 0.0  ;;  %4113 = vmatmul.msk.f32.gmra.mxu0 %vm545_vm0, %v1004_v62  ;;  %v3355_v27 = vld [vmem:[#allocation3 + $0x118] sm:$0xff] }
 0x192   : > { %v1429_v19 = vadd.f32 %v1428_v50, %v1219_v8  ;;  %v1703_v45 = vpop.f32.mrf.mxu3  ;;  %v1064_v9 = vld [vmem:[#allocation2 + $0xe8] sm:$0xff]  ;;  %3464 = vmatpush.msra.mxu2 %v3355_v27  ;;  %v2455_v27 = vld [vmem:[#allocation3 + $0xa8] sm:$0xff] }
 0x193   : > { %v5456_v25 = vadd.f32 %v1703_v45, %v1426_v40  ;;  %v996_v24 = vld [vmem:[#allocation2 + $0xe7] sm:$0xff]  ;;  %579 = vst.msk [vmem:[#allocation2 + $0xf0] sm:$0xff] %vm545_vm0, %v540_v58  ;;  %v1005_v40 = vmul.f32 %v5133_v52, %v5111_v15  ;;  %2568 = vmatpush.msrb.mxu3 %v2455_v27 }
 0x194   : > { %v1518_v51 = vld [vmem:[#allocation2 + $0xe1] sm:$0xff]  ;;  %4105 = vmatmul.msk.f32.gmra.mxu1 %vm545_vm0, %v1064_v9  ;;  %v1028_v37 = vmul.f32 %v996_v24, %v5074_v31 }
 0x195   : > { %v1550_v59 = vmul.f32 %v1518_v51, %v5240_v22 }
 0x196   : > { %4137 = vmatmul.msk.f32.gmra.mxu2 %vm545_vm0, %v1028_v37  ;;  %v501_v8 = vpop.f32.mrf.mxu0 }
 0x197   : > { %4168 = vmatmul.msk.f32.gmra.mxu3 %vm545_vm0, %v1550_v59  ;;  %v502_v62 = vadd.f32 %v5033_v49, %v501_v8  ;;  %v3045_v8 = vld [vmem:[#allocation3 + $0xf8] sm:$0xff] }
 0x198   : > { %3154 = vmatpush.msra.mxu1 %v3045_v8 }
 0x199   : > { %v1225_v50 = vpop.f32.mrf.mxu1  ;;  %v1431_v58 = vpop.f32.mrf.mxu2  ;;  %v541_v45 = vmax.f32 %v502_v62, 0.0  ;;  %4114 = vmatmul.msk.f32.gmra.mxu0 %vm545_vm0, %v1005_v40  ;;  %v4478_v62 = vld [vmem:[%s6570_s4] ss:$0 sm:$0xff] }
 0x19a   : > { %v1432_v9 = vadd.f32 %v1431_v58, %v1222_v42  ;;  %v1706_v20 = vpop.f32.mrf.mxu3  ;;  %v1065_v51 = vld [vmem:[#allocation2 + $0xf0] sm:$0xff] }
 0x19b   : > { %v5468_v24 = vadd.f32 %v1706_v20, %v1429_v19  ;;  %v997_v37 = vld [vmem:[#allocation2 + $0xef] sm:$0xff]  ;;  %580 = vst.msk [vmem:[#allocation2 + $0xf8] sm:$0xff] %vm545_vm0, %v541_v45  ;;  %v5475_v20 = vld [vmem:[#allocation2 + $0x37] sm:$0xff] }
 0x19c   : > { %v1519_v59 = vld [vmem:[#allocation2 + $0xe9] sm:$0xff]  ;;  %4106 = vmatmul.msk.f32.gmra.mxu1 %vm545_vm0, %v1065_v51  ;;  %v1029_v22 = vmul.f32 %v997_v37, %v5096_v55  ;;  %v1006_v40 = vmul.f32 %v5475_v20, %v5194_v14 }
 0x19d   : > { %v1551_v49 = vmul.f32 %v1519_v59, %v5170_v33  ;;  %v2454_v42 = vld [vmem:[#allocation3 + $0xa0] sm:$0xff]  ;;  %v6726_v14 = vld [vmem:[#allocation24_spill] sm:$0xff] }
 0x19e   : > { %4138 = vmatmul.msk.f32.gmra.mxu2 %vm545_vm0, %v1029_v22  ;;  %v504_v19 = vpop.f32.mrf.mxu0  ;;  %2569 = vmatpush.msrb.mxu3 %v2454_v42 }
 0x19f   : > { %4169 = vmatmul.msk.f32.gmra.mxu3 %vm545_vm0, %v1551_v49  ;;  %v505_v58 = vadd.f32 %v4478_v62, %v504_v19  ;;  %v1491_v19 = vld [vmem:[#allocation2 + $0x9] sm:$0xff] }
 0x1a1   : > { %v1228_v45 = vpop.f32.mrf.mxu1  ;;  %v1434_v51 = vpop.f32.mrf.mxu2  ;;  %v542_v37 = vmax.f32 %v505_v58, 0.0  ;;  %4115 = vmatmul.msk.f32.gmra.mxu0 %vm545_vm0, %v1006_v40 }
 0x1a2   : > { %v1435_v59 = vadd.f32 %v1434_v51, %v1225_v50  ;;  %v1709_v8 = vpop.f32.mrf.mxu3  ;;  %v1066_v49 = vld [vmem:[#allocation2 + $0xf8] sm:$0xff] }
 0x1a3   : > { %v5484_v22 = vadd.f32 %v1709_v8, %v1432_v9  ;;  %v998_v27 = vld [vmem:[#allocation2 + $0xf7] sm:$0xff]  ;;  %581 = vst.msk [vmem:[#allocation2 + $0x100] sm:$0xff] %vm545_vm0, %v542_v37  ;;  %v1523_v9 = vmul.f32 %v1491_v19, %v5264_v30 }
 0x1a4   : > { %v1520_v33 = vld [vmem:[#allocation2 + $0xf1] sm:$0xff]  ;;  %4107 = vmatmul.msk.f32.gmra.mxu1 %vm545_vm0, %v1066_v49  ;;  %v1030_v55 = vmul.f32 %v998_v27, %v6726_v14 }
 0x1a5   : > { %6725 = vst [vmem:[#allocation65_spill] sm:$0xff] %v5484_v22  ;;  %v1552_v42 = vmul.f32 %v1520_v33, %v5250_v23 }
 0x1a6   : > { %4139 = vmatmul.msk.f32.gmra.mxu2 %vm545_vm0, %v1030_v55  ;;  %v507_v50 = vpop.f32.mrf.mxu0  ;;  %v6727_v55 = vld [vmem:[#allocation33_spill] sm:$0xff] }
 0x1a7   : > { %4170 = vmatmul.msk.f32.gmra.mxu3 %vm545_vm0, %v1552_v42  ;;  %v508_v40 = vadd.f32 %v4478_v62, %v507_v50  ;;  %v1492_v50 = vld [vmem:[#allocation2 + $0x11] sm:$0xff] }
 0x1a9   : > { %v1231_v58 = vpop.f32.mrf.mxu1  ;;  %v1437_v51 = vpop.f32.mrf.mxu2  ;;  %v543_v8 = vmax.f32 %v508_v40, 0.0  ;;  %4141 = vmatmul.msk.f32.vlgmr.msrb.gmra.mxu0 %vm545_vm0, %v1523_v9 }
 0x1aa   : > { %v1438_v22 = vadd.f32 %v1437_v51, %v1228_v45  ;;  %v1712_v37 = vpop.f32.mrf.mxu3  ;;  %v1067_v27 = vld [vmem:[#allocation2 + $0x100] sm:$0xff] }
 0x1ab   : > { %v5494_v49 = vadd.f32 %v1712_v37, %v1435_v59  ;;  %v999_v33 = vld [vmem:[#allocation2 + $0xff] sm:$0xff]  ;;  %582 = vst.msk [vmem:[#allocation2 + $0x108] sm:$0xff] %vm545_vm0, %v543_v8  ;;  %v1524_v59 = vmul.f32 %v1492_v50, %v5266_v29  ;;  %v1833_v8 = vmul.f32 %v5423_v2, %v5117_v18  ;;  %v6729_v2 = vld [vmem:[#allocation49_spill] sm:$0xff] }
 0x1ac   : > { %v1521_v23 = vld [vmem:[#allocation2 + $0xf9] sm:$0xff]  ;;  %4108 = vmatmul.msk.f32.gmra.mxu1 %vm545_vm0, %v1067_v27  ;;  %v1031_v42 = vmul.f32 %v999_v33, %v6727_v55 }
 0x1ad   : > { %v1553_v19 = vmul.f32 %v1521_v23, %v5252_v38 }
 0x1ae   : > { %4140 = vmatmul.msk.f32.gmra.mxu2 %vm545_vm0, %v1031_v42  ;;  %v510_v45 = vpop.f32.mrf.mxu0  ;;  %v6728_v42 = vld [vmem:[#allocation45_spill] sm:$0xff] }
 0x1af   : > { %4171 = vmatmul.msk.f32.gmra.mxu3 %vm545_vm0, %v1553_v19  ;;  %v511_v9 = vadd.f32 %v4478_v62, %v510_v45  ;;  %v1493_v62 = vld [vmem:[#allocation2 + $0x19] sm:$0xff] }
 0x1b1   : > { %v1234_v40 = vpop.f32.mrf.mxu1  ;;  %v1440_v51 = vpop.f32.mrf.mxu2  ;;  %v544_v37 = vmax.f32 %v511_v9, 0.0  ;;  %4142 = vmatmul.msk.f32.gmra.mxu0 %vm545_vm0, %v1524_v59 }
 0x1b2   : > { %v1441_v27 = vadd.f32 %v1440_v51, %v1231_v58  ;;  %v1715_v14 = vpop.f32.mrf.mxu3  ;;  %v1522_v33 = vld [vmem:[#allocation2 + $0x101] sm:$0xff]  ;;  %v1525_v58 = vmul.f32 %v1493_v62, %v6729_v2 }
 0x1b3   : > { %v5506_v23 = vadd.f32 %v1715_v14, %v1438_v22  ;;  %583 = vst.msk [vmem:[#allocation2 + $0x110] sm:$0xff] %vm545_vm0, %v544_v37  ;;  %v1554_v19 = vmul.f32 %v1522_v33, %v6728_v42  ;;  %v1834_v14 = vmul.f32 %v5437_v0, %v5135_v56  ;;  %v2767_v51 = vld [vmem:[#allocation3 + $0xd8] sm:$0xff]  ;;  %v2765_v0 = vld [vmem:[#allocation3 + $0xc8] sm:$0xff] }
 0x1b4   : > { %4173 = vmatmul.msk.f32.vlgmr.msrb.gmra.mxu1 %vm545_vm0, %v1833_v8  ;;  %2876 = vmatpush.msra.mxu0 %v2767_v51  ;;  %v2421_v8 = vmul.f32 %v1493_v62, %v5264_v30  ;;  %v2390_v37 = vld [vmem:[#allocation2 + $0x21] sm:$0xff]  ;;  %v6764_v42 = vld [vmem:[#allocation30_spill] sm:$0xff] }
 0x1b6   : > { %4205 = vmatmul.msk.f32.vlgmr.msrb.gmra.mxu2 %vm545_vm0, %v5347_v1  ;;  %v5514_v18 = vpop.f32.mrf.mxu0  ;;  %v2766_v1 = vld [vmem:[#allocation3 + $0xd0] sm:$0xff] }
 0x1b7   : > { %4172 = vmatmul.msk.f32.gmra.mxu3 %vm545_vm0, %v1554_v19  ;;  %2877 = vmatpush.msra.mxu0 %v2766_v1  ;;  %v2764_v19 = vld [vmem:[#allocation3 + $0xc0] sm:$0xff] }
 0x1b9   : > { %v1237_v50 = vpop.f32.mrf.mxu1  ;;  %v1443_v22 = vpop.f32.mrf.mxu2  ;;  %4143 = vmatmul.msk.f32.gmra.mxu0 %vm545_vm0, %v1525_v58  ;;  %v1835_v58 = vmul.f32 %v5113_v16, %v5090_v47  ;;  %v1527_v16 = vmul.f32 %v5262_v54, %v5288_v34 }
 0x1ba   : > { %v1444_v45 = vadd.f32 %v1443_v22, %v1234_v40  ;;  %v1718_v59 = vpop.f32.mrf.mxu3  ;;  %v1526_v40 = vmul.f32 %v2390_v37, %v5286_v10  ;;  %2878 = vmatpush.msra.mxu0 %v2765_v0  ;;  %v2422_v22 = vmul.f32 %v2390_v37, %v5266_v29  ;;  %v6733_v37 = vld [vmem:[#allocation54_spill] sm:$0xff] }
 0x1bb   : > { %v5520_v9 = vadd.f32 %v1718_v59, %v1441_v27 }
 0x1bc   : > { %4174 = vmatmul.msk.f32.gmra.mxu1 %vm545_vm0, %v1834_v14  ;;  %2879 = vmatpush.msra.mxu0 %v2764_v19  ;;  %v3354_v19 = vld [vmem:[#allocation3 + $0x110] sm:$0xff] }
 0x1bd   : > { %6730 = vst [vmem:[#allocation33_spill] sm:$0xff] %v5520_v9  ;;  %3465 = vmatpush.msra.mxu2 %v3354_v19 }
 0x1be   : > { %4206 = vmatmul.msk.f32.gmra.mxu2 %vm545_vm0, %v5361_v53  ;;  %v5527_v56 = vpop.f32.mrf.mxu0 }
 0x1bf   : > { %4237 = vmatmul.msk.f32.vlgmr.msrb.gmra.mxu3 %vm545_vm0, %v2421_v8 }
 0x1c1   : > { %v1240_v27 = vpop.f32.mrf.mxu1  ;;  %v1446_v33 = vpop.f32.mrf.mxu2  ;;  %4144 = vmatmul.msk.f32.gmra.mxu0 %vm545_vm0, %v1526_v40  ;;  %v1837_v40 = vmul.f32 %v5475_v20, %v5175_v4  ;;  %v6735_v4 = vld [vmem:[#allocation50_spill] sm:$0xff] }
 0x1c2   : > { %v1447_v30 = vadd.f32 %v1446_v33, %v1237_v50  ;;  %v1721_v62 = vpop.f32.mrf.mxu3  ;;  %v1529_v20 = vmul.f32 %v6735_v4, %v5306_v13 }
 0x1c3   : > { %v5533_v53 = vadd.f32 %v1721_v62, %v1444_v45  ;;  %v1836_v45 = vmul.f32 %v5133_v52, %v5157_v63  ;;  %v1528_v52 = vmul.f32 %v5268_v39, %v6733_v37 }
 0x1c4   : > { %4175 = vmatmul.msk.f32.gmra.mxu1 %vm545_vm0, %v1835_v58 }
 0x1c5   : > { %6731 = vst [vmem:[#allocation49_spill] sm:$0xff] %v5533_v53 }
 0x1c6   : > { %4207 = vmatmul.msk.f32.gmra.mxu2 %vm545_vm0, %v5372_v46  ;;  %v5540_v14 = vpop.f32.mrf.mxu0  ;;  %v2423_v46 = vmul.f32 %v5262_v54, %v6729_v2 }
 0x1c7   : > { %4238 = vmatmul.msk.f32.gmra.mxu3 %vm545_vm0, %v2422_v22 }
 0x1c9   : > { %v1243_v50 = vpop.f32.mrf.mxu1  ;;  %v1449_v59 = vpop.f32.mrf.mxu2  ;;  %4145 = vmatmul.msk.f32.gmra.mxu0 %vm545_vm0, %v1527_v16 }
 0x1ca   : > { %v1450_v51 = vadd.f32 %v1449_v59, %v1240_v27  ;;  %v1724_v1 = vpop.f32.mrf.mxu3 }
 0x1cb   : > { %v5547_v29 = vadd.f32 %v1724_v1, %v1447_v30 }
 0x1cc   : > { %4176 = vmatmul.msk.f32.gmra.mxu1 %vm545_vm0, %v1836_v45 }
 0x1cd   : > { %6732 = vst [vmem:[#allocation66_spill] sm:$0xff] %v5547_v29 }
 0x1ce   : > { %4208 = vmatmul.msk.f32.gmra.mxu2 %vm545_vm0, %v5383_v44  ;;  %v5555_v8 = vpop.f32.mrf.mxu0  ;;  %v2424_v44 = vmul.f32 %v5268_v39, %v5286_v10  ;;  %v3044_v39 = vld [vmem:[#allocation3 + $0xf0] sm:$0xff]  ;;  %v6737_v10 = vld [vmem:[#allocation36_spill] sm:$0xff] }
 0x1cf   : > { %4239 = vmatmul.msk.f32.gmra.mxu3 %vm545_vm0, %v2423_v46  ;;  %3155 = vmatpush.msra.mxu1 %v3044_v39  ;;  %v4480_v39 = vld [vmem:[#allocation2 + $0x49] sm:$0xff] }
 0x1d1   : > { %v1246_v63 = vpop.f32.mrf.mxu1  ;;  %v1452_v0 = vpop.f32.mrf.mxu2  ;;  %4146 = vmatmul.msk.f32.gmra.mxu0 %vm545_vm0, %v1528_v52  ;;  %v6738_v52 = vld [vmem:[#allocation35_spill] sm:$0xff] }
 0x1d2   : > { %v1453_v27 = vadd.f32 %v1452_v0, %v1243_v50  ;;  %v1727_v33 = vpop.f32.mrf.mxu3  ;;  %v2116_v50 = vld [vmem:[#allocation2 + $0x40] sm:$0xff] }
 0x1d3   : > { %v5562_v54 = vadd.f32 %v1727_v33, %v1450_v51  ;;  %v6740_v0 = vld [vmem:[#allocation47_spill] sm:$0xff] }
 0x1d4   : > { %4177 = vmatmul.msk.f32.gmra.mxu1 %vm545_vm0, %v1837_v40 }
 0x1d5   : > { %6734 = vst [vmem:[#allocation54_spill] sm:$0xff] %v5562_v54  ;;  %v6759_v54 = vld [vmem:[#allocation48_spill] sm:$0xff] }
 0x1d6   : > { %4209 = vmatmul.msk.f32.gmra.mxu2 %vm545_vm0, %v5394_v6  ;;  %v5570_v2 = vpop.f32.mrf.mxu0  ;;  %v2425_v6 = vmul.f32 %v6735_v4, %v5288_v34  ;;  %v4479_v34 = vld [vmem:[#allocation2 + $0x41] sm:$0xff] }
 0x1d7   : > { %4240 = vmatmul.msk.f32.gmra.mxu3 %vm545_vm0, %v2424_v44  ;;  %v2426_v40 = vmul.f32 %v4479_v34, %v6733_v37  ;;  %v5596_v44 = vld [vmem:[#allocation2 + $0x4f] sm:$0xff] }
 0x1d9   : > { %v1249_v58 = vpop.f32.mrf.mxu1  ;;  %v1455_v30 = vpop.f32.mrf.mxu2  ;;  %4147 = vmatmul.msk.f32.gmra.mxu0 %vm545_vm0, %v1529_v20 }
 0x1da   : > { %v1456_v62 = vadd.f32 %v1455_v30, %v1246_v63  ;;  %v1730_v22 = vpop.f32.mrf.mxu3  ;;  %v6741_v30 = vld [vmem:[#allocation38_spill] sm:$0xff] }
 0x1db   : > { %v5575_v16 = vadd.f32 %v1730_v22, %v1453_v27  ;;  %v2117_v27 = vld [vmem:[#allocation2 + $0x48] sm:$0xff] }
 0x1dc   : > { %4178 = vmatmul.msk.f32.gmra.mxu1 %vm545_vm0, %v6737_v10  ;;  %v2427_v10 = vmul.f32 %v4480_v39, %v5306_v13  ;;  %v2396_v13 = vld [vmem:[#allocation2 + $0x51] sm:$0xff] }
 0x1dd   : > { %6736 = vst [vmem:[#allocation50_spill] sm:$0xff] %v5575_v16 }
 0x1de   : > { %4210 = vmatmul.msk.f32.gmra.mxu2 %vm545_vm0, %v2116_v50  ;;  %v5583_v59 = vpop.f32.mrf.mxu0  ;;  %v2701_v50 = vld [vmem:[#allocation2 + $0x37] sm:$0xff] }
 0x1df   : > { %4241 = vmatmul.msk.f32.gmra.mxu3 %vm545_vm0, %v2425_v6  ;;  %v2118_v6 = vld [vmem:[#allocation2 + $0x50] sm:$0xff] }
 0x1e1   : > { %v1252_v45 = vpop.f32.mrf.mxu1  ;;  %v1458_v51 = vpop.f32.mrf.mxu2  ;;  %4269 = vmatmul.msk.f32.vlgmr.msra.gmra.mxu0 %vm545_vm0, %v6738_v52 }
 0x1e2   : > { %v1459_v1 = vadd.f32 %v1458_v51, %v1249_v58  ;;  %v1733_v46 = vpop.f32.mrf.mxu3  ;;  %v1809_v51 = vld [vmem:[#allocation2 + $0x57] sm:$0xff] }
 0x1e3   : > { %v5587_v63 = vadd.f32 %v1733_v46, %v1456_v62  ;;  %v6742_v62 = vld [vmem:[#allocation13_spill] sm:$0xff]  ;;  %v2733_v46 = vmul.f32 %v2701_v50, %v5090_v47 }
 0x1e4   : > { %4179 = vmatmul.msk.f32.gmra.mxu1 %vm545_vm0, %v6740_v0  ;;  %v1840_v22 = vmul.f32 %v5596_v44, %v6742_v62 }
 0x1e5   : > { %6739 = vst [vmem:[#allocation36_spill] sm:$0xff] %v5587_v63 }
 0x1e6   : > { %4211 = vmatmul.msk.f32.gmra.mxu2 %vm545_vm0, %v2117_v27  ;;  %v5594_v33 = vpop.f32.mrf.mxu0 }
 0x1e7   : > { %4242 = vmatmul.msk.f32.gmra.mxu3 %vm545_vm0, %v2426_v40  ;;  %v6744_v40 = vld [vmem:[#allocation16_spill] sm:$0xff] }
 0x1e8   : > { %v1841_v27 = vmul.f32 %v1809_v51, %v6744_v40  ;;  %v6747_v51 = vld [vmem:[#allocation41_spill] sm:$0xff] }
 0x1e9   : > { %v1255_v19 = vpop.f32.mrf.mxu1  ;;  %v1461_v4 = vpop.f32.mrf.mxu2  ;;  %4270 = vmatmul.msk.f32.gmra.mxu0 %vm545_vm0, %v6741_v30  ;;  %v6746_v30 = vld [vmem:[#allocation25_spill] sm:$0xff] }
 0x1ea   : > { %v1462_v20 = vadd.f32 %v1461_v4, %v1252_v45  ;;  %v1736_v58 = vpop.f32.mrf.mxu3 }
 0x1eb   : > { %v5602_v37 = vadd.f32 %v1736_v58, %v1459_v1  ;;  %v2119_v58 = vld [vmem:[#allocation2 + $0x58] sm:$0xff] }
 0x1ec   : > { %4180 = vmatmul.msk.f32.gmra.mxu1 %vm545_vm0, %v1840_v22  ;;  %v2428_v22 = vmul.f32 %v2396_v13, %v6746_v30  ;;  %v6750_v13 = vld [vmem:[#allocation19_spill] sm:$0xff] }
 0x1ed   : > { %6743 = vst [vmem:[#allocation35_spill] sm:$0xff] %v5602_v37  ;;  %v6751_v37 = vld [vmem:[#allocation44_spill] sm:$0xff] }
 0x1ee   : > { %4212 = vmatmul.msk.f32.gmra.mxu2 %vm545_vm0, %v2118_v6  ;;  %v5608_v45 = vpop.f32.mrf.mxu0 }
 0x1ef   : > { %4243 = vmatmul.msk.f32.gmra.mxu3 %vm545_vm0, %v2427_v10 }
 0x1f1   : > { %v1258_v52 = vpop.f32.mrf.mxu1  ;;  %v1464_v0 = vpop.f32.mrf.mxu2  ;;  %4271 = vmatmul.msk.f32.gmra.mxu0 %vm545_vm0, %v2733_v46 }
 0x1f2   : > { %v1465_v1 = vadd.f32 %v1464_v0, %v1255_v19  ;;  %v1739_v34 = vpop.f32.mrf.mxu3  ;;  %v1810_v19 = vld [vmem:[#allocation2 + $0x5f] sm:$0xff] }
 0x1f3   : > { %v5613_v4 = vadd.f32 %v1739_v34, %v1462_v20  ;;  %v6748_v20 = vld [vmem:[#allocation12_spill] sm:$0xff]  ;;  %v2397_v0 = vld [vmem:[#allocation2 + $0x59] sm:$0xff] }
 0x1f4   : > { %4181 = vmatmul.msk.f32.gmra.mxu1 %vm545_vm0, %v1841_v27  ;;  %v1842_v46 = vmul.f32 %v1810_v19, %v6748_v20  ;;  %v2120_v27 = vld [vmem:[#allocation2 + $0x60] sm:$0xff] }
 0x1f5   : > { %6745 = vst [vmem:[#allocation47_spill] sm:$0xff] %v5613_v4 }
 0x1f6   : > { %4213 = vmatmul.msk.f32.gmra.mxu2 %vm545_vm0, %v2119_v58  ;;  %v5619_v47 = vpop.f32.mrf.mxu0  ;;  %v2429_v58 = vmul.f32 %v2397_v0, %v6750_v13 }
 0x1f7   : > { %4244 = vmatmul.msk.f32.gmra.mxu3 %vm545_vm0, %v2428_v22 }
 0x1f9   : > { %v1261_v39 = vpop.f32.mrf.mxu1  ;;  %v1467_v10 = vpop.f32.mrf.mxu2  ;;  %4272 = vmatmul.msk.f32.gmra.mxu0 %vm545_vm0, %v6747_v51 }
 0x1fa   : > { %v1468_v6 = vadd.f32 %v1467_v10, %v1258_v52  ;;  %v1742_v50 = vpop.f32.mrf.mxu3  ;;  %v5632_v52 = vld [vmem:[#allocation2 + $0x67] sm:$0xff] }
 0x1fb   : > { %v5624_v34 = vadd.f32 %v1742_v50, %v1465_v1  ;;  %v6752_v1 = vld [vmem:[#allocation15_spill] sm:$0xff] }
 0x1fc   : > { %4182 = vmatmul.msk.f32.gmra.mxu1 %vm545_vm0, %v1842_v46  ;;  %v1843_v50 = vmul.f32 %v5632_v52, %v6752_v1  ;;  %v2398_v46 = vld [vmem:[#allocation2 + $0x61] sm:$0xff] }
 0x1fd   : > { %6749 = vst [vmem:[#allocation38_spill] sm:$0xff] %v5624_v34 }
 0x1fe   : > { %4214 = vmatmul.msk.f32.gmra.mxu2 %vm545_vm0, %v2120_v27  ;;  %v5630_v22 = vpop.f32.mrf.mxu0  ;;  %v2121_v27 = vld [vmem:[#allocation2 + $0x68] sm:$0xff] }
 0x1ff   : > { %4245 = vmatmul.msk.f32.gmra.mxu3 %vm545_vm0, %v2429_v58  ;;  %v6754_v58 = vld [vmem:[#allocation27_spill] sm:$0xff] }
 0x200   : > { %v2430_v13 = vmul.f32 %v2398_v46, %v6754_v58  ;;  %v5653_v58 = vld [vmem:[#allocation2 + $0x69] sm:$0xff] }
 0x201   : > { %v1264_v10 = vpop.f32.mrf.mxu1  ;;  %v1470_v51 = vpop.f32.mrf.mxu2  ;;  %4273 = vmatmul.msk.f32.gmra.mxu0 %vm545_vm0, %v6751_v37  ;;  %v2736_v37 = vmul.f32 %v5596_v44, %v5111_v15  ;;  %6756 = vst [vmem:[#allocation16_spill] sm:$0xff] %v5653_v58 }
 0x202   : > { %v1471_v30 = vadd.f32 %v1470_v51, %v1261_v39  ;;  %v1745_v4 = vpop.f32.mrf.mxu3  ;;  %v5646_v51 = vld [vmem:[#allocation2 + $0x6f] sm:$0xff] }
 0x203   : > { %v5638_v0 = vadd.f32 %v1745_v4, %v1468_v6 }
 0x204   : > { %4183 = vmatmul.msk.f32.gmra.mxu1 %vm545_vm0, %v1843_v50  ;;  %v6755_v50 = vld [vmem:[#allocation9_spill] sm:$0xff] }
 0x205   : > { %6753 = vst [vmem:[#allocation13_spill] sm:$0xff] %v5638_v0  ;;  %v1844_v46 = vmul.f32 %v5646_v51, %v6755_v50  ;;  %v6758_v0 = vld [vmem:[#allocation29_spill] sm:$0xff] }
 0x206   : > { %4215 = vmatmul.msk.f32.gmra.mxu2 %vm545_vm0, %v2121_v27  ;;  %v5644_v39 = vpop.f32.mrf.mxu0  ;;  %v2431_v16 = vmul.f32 %v5653_v58, %v6758_v0  ;;  %v2123_v0 = vld [vmem:[#allocation2 + $0x78] sm:$0xff]  ;;  %v6762_v58 = vld [vmem:[#allocation21_spill] sm:$0xff] }
 0x207   : > { %4246 = vmatmul.msk.f32.gmra.mxu3 %vm545_vm0, %v2430_v13  ;;  %v2122_v13 = vld [vmem:[#allocation2 + $0x70] sm:$0xff] }
 0x209   : > { %v1267_v34 = vpop.f32.mrf.mxu1  ;;  %v1473_v63 = vpop.f32.mrf.mxu2  ;;  %4274 = vmatmul.msk.f32.gmra.mxu0 %vm545_vm0, %v2736_v37 }
 0x20a   : > { %v1474_v4 = vadd.f32 %v1473_v63, %v1264_v10  ;;  %v1748_v6 = vpop.f32.mrf.mxu3 }
 0x20b   : > { %v5655_v27 = vadd.f32 %v1748_v6, %v1471_v30  ;;  %v4481_v30 = vld [vmem:[#allocation2 + $0x77] sm:$0xff] }
 0x20c   : > { %4184 = vmatmul.msk.f32.gmra.mxu1 %vm545_vm0, %v1844_v46  ;;  %v6760_v6 = vld [vmem:[#allocation10_spill] sm:$0xff] }
 0x20d   : > { %6757 = vst [vmem:[#allocation41_spill] sm:$0xff] %v5655_v27  ;;  %v1845_v46 = vmul.f32 %v4481_v30, %v6760_v6 }
 0x20e   : > { %4216 = vmatmul.msk.f32.gmra.mxu2 %vm545_vm0, %v2122_v13  ;;  %v5662_v15 = vpop.f32.mrf.mxu0  ;;  %v4482_v13 = vld [vmem:[#allocation2 + $0x71] sm:$0xff] }
 0x20f   : > { %4247 = vmatmul.msk.f32.gmra.mxu3 %vm545_vm0, %v2431_v16  ;;  %v2432_v16 = vmul.f32 %v4482_v13, %v6762_v58  ;;  %v4484_v58 = vld [vmem:[#allocation2 + $0x79] sm:$0xff] }
 0x210   : > { %v2433_v9 = vmul.f32 %v4484_v58, %v6764_v42  ;;  %v4485_v58 = vld [vmem:[#allocation2 + $0x87] sm:$0xff] }
 0x211   : > { %v1270_v63 = vpop.f32.mrf.mxu1  ;;  %v1476_v44 = vpop.f32.mrf.mxu2  ;;  %4275 = vmatmul.msk.f32.gmra.mxu0 %vm545_vm0, %v6759_v54  ;;  %v2738_v54 = vmul.f32 %v1810_v19, %v6742_v62  ;;  %v2739_v19 = vmul.f32 %v5632_v52, %v6744_v40  ;;  %v6766_v40 = vld [vmem:[#allocation34_spill] sm:$0xff] }
 0x212   : > { %v1477_v10 = vadd.f32 %v1476_v44, %v1267_v34  ;;  %v1751_v37 = vpop.f32.mrf.mxu3  ;;  %v3353_v44 = vld [vmem:[#allocation3 + $0x108] sm:$0xff] }
 0x213   : > { %v5667_v27 = vadd.f32 %v1751_v37, %v1474_v4  ;;  %3466 = vmatpush.msra.mxu2 %v3353_v44 }
 0x214   : > { %4185 = vmatmul.msk.f32.gmra.mxu1 %vm545_vm0, %v1845_v46  ;;  %v4483_v46 = vld [vmem:[#allocation2 + $0x7f] sm:$0xff] }
 0x215   : > { %6761 = vst [vmem:[#allocation12_spill] sm:$0xff] %v5667_v27  ;;  %v6763_v27 = vld [vmem:[#allocation18_spill] sm:$0xff] }
 0x216   : > { %4217 = vmatmul.msk.f32.gmra.mxu2 %vm545_vm0, %v2123_v0  ;;  %v5673_v34 = vpop.f32.mrf.mxu0  ;;  %v1846_v53 = vmul.f32 %v4483_v46, %v6763_v27  ;;  %v3043_v0 = vld [vmem:[#allocation3 + $0xe8] sm:$0xff]  ;;  %v4486_v46 = vld [vmem:[#allocation2 + $0x81] sm:$0xff] }
 0x217   : > { %4248 = vmatmul.msk.f32.gmra.mxu3 %vm545_vm0, %v2432_v16  ;;  %v2124_v16 = vld [vmem:[#allocation2 + $0x80] sm:$0xff]  ;;  %3156 = vmatpush.msra.mxu1 %v3043_v0  ;;  %v2434_v52 = vmul.f32 %v4486_v46, %v6766_v40  ;;  %v4487_v0 = vld [vmem:[#allocation2 + $0x88] sm:$0xff]  ;;  %v6768_v46 = vld [vmem:[#allocation26_spill] sm:$0xff] }
 0x218   : > { %v4488_v40 = vld [vmem:[#allocation2 + $0x90] sm:$0xff] }
 0x219   : > { %v1273_v29 = vpop.f32.mrf.mxu1  ;;  %v1479_v30 = vpop.f32.mrf.mxu2  ;;  %4276 = vmatmul.msk.f32.gmra.mxu0 %vm545_vm0, %v2738_v54 }
 0x21a   : > { %v1480_v4 = vadd.f32 %v1479_v30, %v1270_v63  ;;  %v1754_v37 = vpop.f32.mrf.mxu3  ;;  %v3668_v63 = vld [vmem:[%s6569_s3 + $0x18] sm:$0xff]  ;;  %v6765_v30 = vld [vmem:[#allocation17_spill] sm:$0xff] }
 0x21b   : > { %v5678_v13 = vadd.f32 %v1754_v37, %v1477_v10  ;;  %3781 = vmatpush.msra.mxu3 %v3668_v63  ;;  %v1847_v37 = vmul.f32 %v4485_v58, %v6765_v30 }
 0x21c   : > { %4186 = vmatmul.msk.f32.gmra.mxu1 %vm545_vm0, %v1846_v53 }
 0x21e   : > { %4218 = vmatmul.msk.f32.gmra.mxu2 %vm545_vm0, %v2124_v16  ;;  %v5684_v62 = vpop.f32.mrf.mxu0 }
 0x21f   : > { %4249 = vmatmul.msk.f32.gmra.mxu3 %vm545_vm0, %v2433_v9 }
 0x221   : > { %v1276_v10 = vpop.f32.mrf.mxu1  ;;  %v1482_v53 = vpop.f32.mrf.mxu2  ;;  %4277 = vmatmul.msk.f32.gmra.mxu0 %vm545_vm0, %v2739_v19 }
 0x222   : > { %v1483_v44 = vadd.f32 %v1482_v53, %v1273_v29  ;;  %v1757_v54 = vpop.f32.mrf.mxu3  ;;  %v2740_v29 = vmul.f32 %v5646_v51, %v6748_v20 }
 0x223   : > { %v5693_v9 = vadd.f32 %v1757_v54, %v1480_v4  ;;  %v6767_v4 = vld [vmem:[#allocation11_spill] sm:$0xff] }
 0x224   : > { %4187 = vmatmul.msk.f32.gmra.mxu1 %vm545_vm0, %v1847_v37  ;;  %v1848_v54 = vmul.f32 %v5316_v21, %v6767_v4 }
 0x226   : > { %4219 = vmatmul.msk.f32.gmra.mxu2 %vm545_vm0, %v4487_v0  ;;  %v1673_v16 = vpop.f32.mrf.mxu0  ;;  %v2709_v0 = vld [vmem:[#allocation2 + $0x77] sm:$0xff] }
 0x227   : > { %4250 = vmatmul.msk.f32.gmra.mxu3 %vm545_vm0, %v2434_v52  ;;  %v2435_v52 = vmul.f32 %v5318_v48, %v6768_v46  ;;  %v2741_v51 = vmul.f32 %v2709_v0, %v6752_v1  ;;  %v1396_v48 = vadd.f32 %v5608_v45, %v5514_v18  ;;  %v2710_v1 = vld [vmem:[#allocation2 + $0x7f] sm:$0xff] }
 0x228   : > { %v5728_v45 = vld [vmem:[#allocation2 + $0x99] sm:$0xff] }
 0x229   : > { %v1279_v19 = vpop.f32.mrf.mxu1  ;;  %v1485_v63 = vpop.f32.mrf.mxu2  ;;  %4278 = vmatmul.msk.f32.gmra.mxu0 %vm545_vm0, %v2740_v29 }
 0x22a   : > { %v1486_v53 = vadd.f32 %v1485_v63, %v1276_v10  ;;  %v1760_v58 = vpop.f32.mrf.mxu3 }
 0x22b   : > { %v5704_v37 = vadd.f32 %v1760_v58, %v1483_v44  ;;  %v1849_v44 = vmul.f32 %v5334_v61, %v5000_v36  ;;  %v2742_v61 = vmul.f32 %v2710_v1, %v6755_v50  ;;  %v5735_v50 = vld [vmem:[#allocation2 + $0xa0] sm:$0xff] }
 0x22c   : > { %4188 = vmatmul.msk.f32.gmra.mxu1 %vm545_vm0, %v1848_v54  ;;  %v1769_v54 = vadd.f32 %v1673_v16, %v1396_v48 }
 0x22e   : > { %4220 = vmatmul.msk.f32.gmra.mxu2 %vm545_vm0, %v4488_v40  ;;  %v1676_v20 = vpop.f32.mrf.mxu0  ;;  %v2436_v40 = vmul.f32 %v5336_v5, %v5115_v17  ;;  %v1850_v5 = vmul.f32 %v5351_v3, %v4998_v35  ;;  %v5742_v3 = vld [vmem:[#allocation2 + $0xa7] sm:$0xff] }
 0x22f   : > { %4251 = vmatmul.msk.f32.gmra.mxu3 %vm545_vm0, %v2435_v52  ;;  %v4489_v52 = vld [vmem:[#allocation2 + $0x98] sm:$0xff] }
 0x231   : > { %v1488_v10 = vpop.f32.mrf.mxu2  ;;  %v1983_v29 = vpop.f32.mrf.mxu1  ;;  %4279 = vmatmul.msk.f32.gmra.mxu0 %vm545_vm0, %v2741_v51 }
 0x232   : > { %v1489_v63 = vadd.f32 %v1488_v10, %v1279_v19  ;;  %v1763_v21 = vpop.f32.mrf.mxu3  ;;  %v2079_v19 = vadd.f32 %v1983_v29, %v1769_v54  ;;  %v2437_v29 = vmul.f32 %v5728_v45, %v5072_v28 }
 0x233   : > { %v5715_v58 = vadd.f32 %v1763_v21, %v1486_v53  ;;  %v1399_v21 = vadd.f32 %v5619_v47, %v5527_v56 }
 0x234   : > { %4189 = vmatmul.msk.f32.gmra.mxu1 %vm545_vm0, %v1849_v44  ;;  %v2711_v44 = vld [vmem:[#allocation2 + $0x87] sm:$0xff] }
 0x235   : > { %v1770_v48 = vadd.f32 %v1676_v20, %v1399_v21  ;;  %v5748_v20 = vld [vmem:[#allocation2 + $0xa1] sm:$0xff] }
 0x236   : > { %4221 = vmatmul.msk.f32.gmra.mxu2 %vm545_vm0, %v4489_v52  ;;  %v1679_v51 = vpop.f32.mrf.mxu0  ;;  %v1851_v52 = vmul.f32 %v5742_v3, %v4942_v12 }
 0x237   : > { %4252 = vmatmul.msk.f32.gmra.mxu3 %vm545_vm0, %v2436_v40  ;;  %v2743_v40 = vmul.f32 %v2711_v44, %v6760_v6  ;;  %v5755_v6 = vld [vmem:[#allocation2 + $0xa8] sm:$0xff] }
 0x239   : > { %v1986_v53 = vpop.f32.mrf.mxu1  ;;  %v2261_v0 = vpop.f32.mrf.mxu2  ;;  %4280 = vmatmul.msk.f32.gmra.mxu0 %vm545_vm0, %v2742_v61  ;;  %v1402_v61 = vadd.f32 %v5630_v22, %v5540_v14 }
 0x23a   : > { %v1766_v10 = vpop.f32.mrf.mxu3  ;;  %v2357_v18 = vadd.f32 %v2261_v0, %v2079_v19 }
 0x23b   : > { %v5730_v16 = vadd.f32 %v1766_v10, %v1489_v63  ;;  %v2080_v63 = vadd.f32 %v1986_v53, %v1770_v48  ;;  %v2438_v53 = vmul.f32 %v5748_v20, %v5137_v57  ;;  %v2712_v10 = vld [vmem:[#allocation2 + $0x8f] sm:$0xff] }
 0x23c   : > { %4190 = vmatmul.msk.f32.gmra.mxu1 %vm545_vm0, %v1850_v5  ;;  %v1771_v5 = vadd.f32 %v1679_v51, %v1402_v61  ;;  %v2744_v14 = vmul.f32 %v2712_v10, %v6763_v27  ;;  %v5768_v51 = vld [vmem:[#allocation2 + $0xa9] sm:$0xff] }
 0x23d   : > { %v6769_v27 = vld [vmem:[#allocation40_spill] sm:$0xff] }
 0x23e   : > { %4222 = vmatmul.msk.f32.gmra.mxu2 %vm545_vm0, %v5735_v50  ;;  %v1682_v0 = vpop.f32.mrf.mxu0 }
 0x23f   : > { %4253 = vmatmul.msk.f32.gmra.mxu3 %vm545_vm0, %v2437_v29 }
 0x241   : > { %v1989_v56 = vpop.f32.mrf.mxu1  ;;  %v2264_v47 = vpop.f32.mrf.mxu2  ;;  %4281 = vmatmul.msk.f32.gmra.mxu0 %vm545_vm0, %v2743_v40 }
 0x242   : > { %v2358_v1 = vadd.f32 %v2264_v47, %v2080_v63  ;;  %v2571_v54 = vpop.f32.mrf.mxu3  ;;  %v2081_v21 = vadd.f32 %v1989_v56, %v1771_v5  ;;  %v1405_v47 = vadd.f32 %v5644_v39, %v5555_v8  ;;  %v5775_v56 = vld [vmem:[#allocation2 + $0xb0] sm:$0xff] }
 0x243   : > { %v5750_v19 = vadd.f32 %v2571_v54, %v2357_v18  ;;  %v5762_v18 = vld [vmem:[#allocation2 + $0xaf] sm:$0xff]  ;;  %v2439_v54 = vmul.f32 %v5768_v51, %v6769_v27 }
 0x244   : > { %4191 = vmatmul.msk.f32.gmra.mxu1 %vm545_vm0, %v1851_v52  ;;  %v1852_v63 = vmul.f32 %v5762_v18, %v5016_v43  ;;  %v2713_v52 = vld [vmem:[#allocation2 + $0x97] sm:$0xff]  ;;  %v1772_v61 = vadd.f32 %v1682_v0, %v1405_v47  ;;  %v1408_v47 = vadd.f32 %v5662_v15, %v5570_v2 }
 0x245   : > { %v2745_v8 = vmul.f32 %v2713_v52, %v6765_v30  ;;  %v6772_v30 = vld [vmem:[#allocation32_spill] sm:$0xff]  ;;  %v2714_v52 = vld [vmem:[#allocation2 + $0x9f] sm:$0xff]  ;;  %v3042_v27 = vld [vmem:[#allocation3 + $0xe0] sm:$0xff] }
 0x246   : > { %4223 = vmatmul.msk.f32.gmra.mxu2 %vm545_vm0, %v5755_v6  ;;  %v2746_v2 = vmul.f32 %v2714_v52, %v6767_v4  ;;  %v5815_v4 = vld [vmem:[#allocation2 + $0xc0] sm:$0xff]  ;;  %3157 = vmatpush.msra.mxu1 %v3042_v27 }
 0x247   : > { %4254 = vmatmul.msk.f32.gmra.mxu3 %vm545_vm0, %v2438_v53  ;;  %v1685_v53 = vpop.f32.mrf.mxu0  ;;  %v6774_v52 = vld [vmem:[#allocation43_spill] sm:$0xff] }
 0x249   : > { %v1992_v22 = vpop.f32.mrf.mxu1  ;;  %v2267_v29 = vpop.f32.mrf.mxu2  ;;  %4282 = vmatmul.msk.f32.gmra.mxu0 %vm545_vm0, %v2744_v14 }
 0x24a   : > { %v2359_v44 = vadd.f32 %v2267_v29, %v2081_v21  ;;  %v2574_v48 = vpop.f32.mrf.mxu3  ;;  %v2082_v10 = vadd.f32 %v1992_v22, %v1772_v61  ;;  %v6770_v29 = vld [vmem:[#allocation20_spill] sm:$0xff]  ;;  %v5795_v22 = vld [vmem:[#allocation2 + $0xb8] sm:$0xff]  ;;  %v1773_v61 = vadd.f32 %v1685_v53, %v1408_v47 }
 0x24b   : > { %v5770_v40 = vadd.f32 %v2574_v48, %v2358_v1  ;;  %v5782_v1 = vld [vmem:[#allocation2 + $0xb7] sm:$0xff] }
 0x24c   : > { %4192 = vmatmul.msk.f32.gmra.mxu1 %vm545_vm0, %v1852_v63  ;;  %v1853_v0 = vmul.f32 %v5782_v1, %v6770_v29  ;;  %v5788_v48 = vld [vmem:[#allocation2 + $0xb1] sm:$0xff] }
 0x24d   : > { %v6773_v53 = vld [vmem:[#allocation14_spill] sm:$0xff] }
 0x24e   : > { %4224 = vmatmul.msk.f32.gmra.mxu2 %vm545_vm0, %v5775_v56 }
 0x24f   : > { %4255 = vmatmul.msk.f32.gmra.mxu3 %vm545_vm0, %v2439_v54  ;;  %v2440_v54 = vmul.f32 %v5788_v48, %v6772_v30  ;;  %v5808_v30 = vld [vmem:[#allocation2 + $0xb9] sm:$0xff] }
 0x251   : > { %v1995_v39 = vpop.f32.mrf.mxu1  ;;  %v2270_v5 = vpop.f32.mrf.mxu2  ;;  %4283 = vmatmul.msk.f32.gmra.mxu0 %vm545_vm0, %v2745_v8 }
 0x252   : > { %v2360_v21 = vadd.f32 %v2270_v5, %v2082_v10  ;;  %v2577_v14 = vpop.f32.mrf.mxu3  ;;  %v5802_v10 = vld [vmem:[#allocation2 + $0xbf] sm:$0xff]  ;;  %v1688_v8 = vpop.f32.mrf.mxu0  ;;  %v2083_v5 = vadd.f32 %v1995_v39, %v1773_v61  ;;  %v1411_v39 = vadd.f32 %v5673_v34, %v5583_v59  ;;  %v2441_v61 = vmul.f32 %v5808_v30, %v6774_v52  ;;  %v3667_v34 = vld [vmem:[%s6569_s3 + $0x10] sm:$0xff] }
 0x253   : > { %v5790_v63 = vadd.f32 %v2577_v14, %v2359_v44  ;;  %v3352_v44 = vld [vmem:[#allocation3 + $0x100] sm:$0xff]  ;;  %v1854_v47 = vmul.f32 %v5802_v10, %v6773_v53  ;;  %v2747_v59 = vmul.f32 %v5742_v3, %v5000_v36  ;;  %3782 = vmatpush.msra.mxu3 %v3667_v34  ;;  %v1414_v36 = vadd.f32 %v5684_v62, %v5594_v33  ;;  %v5839_v3 = vld [vmem:[#allocation2 + $0xc8] sm:$0xff] }
 0x254   : > { %4193 = vmatmul.msk.f32.gmra.mxu1 %vm545_vm0, %v1853_v0  ;;  %3467 = vmatpush.msra.mxu2 %v3352_v44  ;;  %v1774_v44 = vadd.f32 %v1688_v8, %v1411_v39  ;;  %v5832_v39 = vld [vmem:[#allocation2 + $0xc1] sm:$0xff] }
 0x255   : > { %6771 = vst [vmem:[#allocation44_spill] sm:$0xff] %v5790_v63 }
 0x256   : > { %4225 = vmatmul.msk.f32.gmra.mxu2 %vm545_vm0, %v5795_v22 }
 0x257   : > { %4256 = vmatmul.msk.f32.gmra.mxu3 %vm545_vm0, %v2440_v54 }
 0x259   : > { %v1998_v15 = vpop.f32.mrf.mxu1  ;;  %v2273_v14 = vpop.f32.mrf.mxu2  ;;  %4284 = vmatmul.msk.f32.gmra.mxu0 %vm545_vm0, %v2746_v2 }
 0x25a   : > { %v2361_v0 = vadd.f32 %v2273_v14, %v2083_v5  ;;  %v2580_v63 = vpop.f32.mrf.mxu3  ;;  %v6775_v14 = vld [vmem:[#allocation23_spill] sm:$0xff] }
 0x25b   : > { %v5810_v54 = vadd.f32 %v2580_v63, %v2360_v21  ;;  %v5822_v21 = vld [vmem:[#allocation2 + $0xc7] sm:$0xff]  ;;  %v2084_v63 = vadd.f32 %v1998_v15, %v1774_v44  ;;  %v1691_v15 = vpop.f32.mrf.mxu0  ;;  %v6777_v44 = vld [vmem:[#allocation46_spill] sm:$0xff] }
 0x25c   : > { %4194 = vmatmul.msk.f32.gmra.mxu1 %vm545_vm0, %v1854_v47  ;;  %v1855_v47 = vmul.f32 %v5822_v21, %v6775_v14  ;;  %v1775_v34 = vadd.f32 %v1691_v15, %v1414_v36  ;;  %v5853_v36 = vld [vmem:[#allocation2 + $0xc9] sm:$0xff] }
 0x25e   : > { %4226 = vmatmul.msk.f32.gmra.mxu2 %vm545_vm0, %v5815_v4 }
 0x25f   : > { %4257 = vmatmul.msk.f32.gmra.mxu3 %vm545_vm0, %v2441_v61 }
 0x261   : > { %v2001_v5 = vpop.f32.mrf.mxu1  ;;  %v2276_v2 = vpop.f32.mrf.mxu2  ;;  %4285 = vmatmul.msk.f32.gmra.mxu0 %vm545_vm0, %v2747_v59  ;;  %v5846_v59 = vld [vmem:[#allocation2 + $0xcf] sm:$0xff] }
 0x262   : > { %v2362_v27 = vadd.f32 %v2276_v2, %v2084_v63  ;;  %v2583_v8 = vpop.f32.mrf.mxu3  ;;  %v2442_v63 = vmul.f32 %v5832_v39, %v6777_v44  ;;  %v2748_v2 = vmul.f32 %v5762_v18, %v4998_v35  ;;  %v1825_v18 = vld [vmem:[#allocation2 + $0xd7] sm:$0xff] }
 0x263   : > { %v5834_v61 = vadd.f32 %v2583_v8, %v2361_v0  ;;  %v2085_v0 = vadd.f32 %v2001_v5, %v1775_v34  ;;  %v6780_v5 = vld [vmem:[#allocation37_spill] sm:$0xff] }
 0x264   : > { %4195 = vmatmul.msk.f32.gmra.mxu1 %vm545_vm0, %v1855_v47  ;;  %v2443_v35 = vmul.f32 %v5853_v36, %v6780_v5  ;;  %v5870_v5 = vld [vmem:[#allocation2 + $0xd1] sm:$0xff] }
 0x265   : > { %6776 = vst [vmem:[#allocation15_spill] sm:$0xff] %v5834_v61  ;;  %v6778_v61 = vld [vmem:[#allocation22_spill] sm:$0xff] }
 0x266   : > { %4227 = vmatmul.msk.f32.gmra.mxu2 %vm545_vm0, %v5839_v3  ;;  %v1856_v15 = vmul.f32 %v5846_v59, %v6778_v61 }
 0x267   : > { %4258 = vmatmul.msk.f32.gmra.mxu3 %vm545_vm0, %v2442_v63  ;;  %v5858_v63 = vld [vmem:[#allocation2 + $0xd0] sm:$0xff] }
 0x269   : > { %v2004_v33 = vpop.f32.mrf.mxu1  ;;  %v2279_v62 = vpop.f32.mrf.mxu2  ;;  %4286 = vmatmul.msk.f32.gmra.mxu0 %vm545_vm0, %v2748_v2 }
 0x26a   : > { %v2363_v8 = vadd.f32 %v2279_v62, %v2085_v0  ;;  %v2586_v47 = vpop.f32.mrf.mxu3  ;;  %v2086_v34 = vadd.f32 %v2004_v33, %v5416_v32  ;;  %v2749_v0 = vmul.f32 %v5782_v1, %v4942_v12  ;;  %v6782_v32 = vld [vmem:[#allocation52_spill] sm:$0xff]  ;;  %v1826_v12 = vld [vmem:[#allocation2 + $0xdf] sm:$0xff] }
 0x26b   : > { %v5855_v44 = vadd.f32 %v2586_v47, %v2362_v27  ;;  %v2444_v33 = vmul.f32 %v5870_v5, %v6782_v32  ;;  %v5889_v32 = vld [vmem:[#allocation2 + $0xd9] sm:$0xff] }
 0x26c   : > { %4196 = vmatmul.msk.f32.gmra.mxu1 %vm545_vm0, %v1856_v15  ;;  %v1857_v15 = vmul.f32 %v1825_v18, %v4974_v26 }
 0x26d   : > { %6779 = vst [vmem:[#allocation9_spill] sm:$0xff] %v5855_v44 }
 0x26e   : > { %4228 = vmatmul.msk.f32.gmra.mxu2 %vm545_vm0, %v5858_v63 }
 0x26f   : > { %4259 = vmatmul.msk.f32.gmra.mxu3 %vm545_vm0, %v2443_v35  ;;  %v5875_v35 = vld [vmem:[#allocation2 + $0xd8] sm:$0xff] }
 0x271   : > { %v2007_v27 = vpop.f32.mrf.mxu1  ;;  %v2282_v2 = vpop.f32.mrf.mxu2  ;;  %4287 = vmatmul.msk.f32.gmra.mxu0 %vm545_vm0, %v2749_v0 }
 0x272   : > { %v2364_v62 = vadd.f32 %v2282_v2, %v2086_v34  ;;  %v2589_v47 = vpop.f32.mrf.mxu3  ;;  %v2087_v1 = vadd.f32 %v2007_v27, %v5430_v11  ;;  %v2750_v34 = vmul.f32 %v5802_v10, %v5016_v43  ;;  %v6784_v11 = vld [vmem:[#allocation53_spill] sm:$0xff]  ;;  %v1827_v10 = vld [vmem:[#allocation2 + $0xe7] sm:$0xff] }
 0x273   : > { %v5872_v44 = vadd.f32 %v2589_v47, %v2363_v8  ;;  %v2445_v43 = vmul.f32 %v5889_v32, %v6784_v11  ;;  %v5908_v11 = vld [vmem:[#allocation2 + $0xe1] sm:$0xff] }
 0x274   : > { %4197 = vmatmul.msk.f32.gmra.mxu1 %vm545_vm0, %v1857_v15  ;;  %v1858_v15 = vmul.f32 %v1826_v12, %v5053_v60 }
 0x275   : > { %6781 = vst [vmem:[#allocation48_spill] sm:$0xff] %v5872_v44 }
 0x276   : > { %4229 = vmatmul.msk.f32.gmra.mxu2 %vm545_vm0, %v5875_v35 }
 0x277   : > { %4260 = vmatmul.msk.f32.gmra.mxu3 %vm545_vm0, %v2444_v33  ;;  %v5894_v33 = vld [vmem:[#allocation2 + $0xe0] sm:$0xff] }
 0x279   : > { %v2010_v8 = vpop.f32.mrf.mxu1  ;;  %v2285_v0 = vpop.f32.mrf.mxu2  ;;  %4288 = vmatmul.msk.f32.gmra.mxu0 %vm545_vm0, %v2750_v34 }
 0x27a   : > { %v5885_v2 = vadd.f32 %v2285_v0, %v2087_v1  ;;  %v2592_v47 = vpop.f32.mrf.mxu3  ;;  %v2088_v27 = vadd.f32 %v2010_v8, %v5444_v7  ;;  %v2751_v1 = vmul.f32 %v5822_v21, %v6770_v29  ;;  %v5918_v29 = vld [vmem:[#allocation2 + $0xef] sm:$0xff]  ;;  %v2752_v8 = vmul.f32 %v5846_v59, %v6773_v53  ;;  %v1829_v53 = vld [vmem:[#allocation2 + $0xf7] sm:$0xff] }
 0x27b   : > { %v5891_v44 = vadd.f32 %v2592_v47, %v2364_v62  ;;  %v6786_v47 = vld [vmem:[#allocation28_spill] sm:$0xff] }
 0x27c   : > { %6783 = vst [vmem:[#allocation10_spill] sm:$0xff] %v5885_v2  ;;  %4198 = vmatmul.msk.f32.gmra.mxu1 %vm545_vm0, %v1858_v15  ;;  %v1859_v15 = vmul.f32 %v1827_v10, %v6786_v47  ;;  %v5911_v2 = vld [vmem:[#allocation2 + $0xe8] sm:$0xff] }
 0x27d   : > { %6787 = vst [vmem:[#allocation30_spill] sm:$0xff] %v5911_v2 }
 0x27e   : > { %4230 = vmatmul.msk.f32.gmra.mxu2 %vm545_vm0, %v5894_v33 }
 0x27f   : > { %4261 = vmatmul.msk.f32.gmra.mxu3 %vm545_vm0, %v2445_v43  ;;  %v6788_v43 = vld [vmem:[#allocation39_spill] sm:$0xff] }
 0x280   : > { %v2446_v7 = vmul.f32 %v5908_v11, %v6788_v43  ;;  %v5928_v43 = vld [vmem:[#allocation2 + $0xe9] sm:$0xff] }
 0x281   : > { %v2013_v62 = vpop.f32.mrf.mxu1  ;;  %v2288_v34 = vpop.f32.mrf.mxu2  ;;  %4289 = vmatmul.msk.f32.gmra.mxu0 %vm545_vm0, %v2751_v1  ;;  %6790 = vst [vmem:[#allocation11_spill] sm:$0xff] %v5928_v43 }
 0x282   : > { %v5904_v0 = vadd.f32 %v2288_v34, %v2088_v27  ;;  %v2089_v21 = vadd.f32 %v2013_v62, %v5456_v25  ;;  %v2753_v62 = vmul.f32 %v1825_v18, %v6775_v14  ;;  %v1830_v14 = vld [vmem:[#allocation2 + $0xff] sm:$0xff]  ;;  %v6796_v18 = vld [vmem:[#allocation65_spill] sm:$0xff] }
 0x284   : > { %6785 = vst [vmem:[#allocation18_spill] sm:$0xff] %v5904_v0  ;;  %4199 = vmatmul.msk.f32.gmra.mxu1 %vm545_vm0, %v1859_v15  ;;  %v1860_v15 = vmul.f32 %v5918_v29, %v5012_v41  ;;  %v6792_v0 = vld [vmem:[#allocation56_spill] sm:$0xff] }
 0x285   : > { %v2447_v25 = vmul.f32 %v5928_v43, %v6792_v0  ;;  %v5946_v0 = vpop.f32.mrf.mxu0 }
 0x286   : > { %4231 = vmatmul.msk.f32.gmra.mxu2 %vm545_vm0, %v5911_v2  ;;  %v5962_v2 = vld [vmem:[#allocation2 + $0xf9] sm:$0xff] }
 0x287   : > { %4262 = vmatmul.msk.f32.gmra.mxu3 %vm545_vm0, %v2446_v7  ;;  %v5931_v7 = vld [vmem:[#allocation2 + $0xf0] sm:$0xff] }
 0x288   : > { %6791 = vst [vmem:[#allocation26_spill] sm:$0xff] %v5931_v7 }
 0x289   : > { %v2016_v27 = vpop.f32.mrf.mxu1  ;;  %v2291_v1 = vpop.f32.mrf.mxu2  ;;  %4290 = vmatmul.msk.f32.gmra.mxu0 %vm545_vm0, %v2752_v8 }
 0x28a   : > { %v5923_v34 = vadd.f32 %v2291_v1, %v2089_v21  ;;  %v2090_v59 = vadd.f32 %v2016_v27, %v5468_v24 }
 0x28c   : > { %6789 = vst [vmem:[#allocation17_spill] sm:$0xff] %v5923_v34  ;;  %4200 = vmatmul.msk.f32.gmra.mxu1 %vm545_vm0, %v1860_v15  ;;  %v1861_v15 = vmul.f32 %v1829_v53, %v5074_v31  ;;  %v5944_v34 = vld [vmem:[#allocation2 + $0xf1] sm:$0xff] }
 0x28e   : > { %4232 = vmatmul.msk.f32.gmra.mxu2 %vm545_vm0, %v5931_v7  ;;  %v6795_v7 = vld [vmem:[#allocation57_spill] sm:$0xff] }
 0x28f   : > { %4263 = vmatmul.msk.f32.gmra.mxu3 %vm545_vm0, %v2447_v25  ;;  %v5949_v25 = vld [vmem:[#allocation2 + $0xf8] sm:$0xff]  ;;  %v2448_v24 = vmul.f32 %v5944_v34, %v6795_v7  ;;  %v5965_v7 = vld [vmem:[#allocation2 + $0x100] sm:$0xff] }
 0x290   : > { %6794 = vst [vmem:[#allocation14_spill] sm:$0xff] %v5949_v25 }
 0x291   : > { %v2019_v21 = vpop.f32.mrf.mxu1  ;;  %v2294_v8 = vpop.f32.mrf.mxu2  ;;  %4291 = vmatmul.msk.f32.gmra.mxu0 %vm545_vm0, %v2753_v62  ;;  %6799 = vst [vmem:[#allocation23_spill] sm:$0xff] %v5965_v7 }
 0x292   : > { %v5940_v1 = vadd.f32 %v2294_v8, %v2090_v59  ;;  %v2091_v27 = vadd.f32 %v2019_v21, %v6796_v18  ;;  %v2754_v59 = vmul.f32 %v1826_v12, %v6778_v61  ;;  %v5969_v21 = vpop.f32.mrf.mxu0  ;;  %v1831_v61 = vld [vmem:[#allocation2 + $0x107] sm:$0xff]  ;;  %v2755_v18 = vmul.f32 %v1827_v10, %v4974_v26  ;;  %v6805_v26 = vld [vmem:[#allocation58_spill] sm:$0xff] }
 0x294   : > { %6793 = vst [vmem:[#allocation20_spill] sm:$0xff] %v5940_v1  ;;  %4201 = vmatmul.msk.f32.gmra.mxu1 %vm545_vm0, %v1861_v15  ;;  %v6798_v15 = vld [vmem:[#allocation31_spill] sm:$0xff] }
 0x295   : > { %v1862_v43 = vmul.f32 %v1830_v14, %v6798_v15 }
 0x296   : > { %4233 = vmatmul.msk.f32.gmra.mxu2 %vm545_vm0, %v5949_v25 }
 0x297   : > { %4264 = vmatmul.msk.f32.gmra.mxu3 %vm545_vm0, %v2448_v24  ;;  %v6800_v24 = vld [vmem:[#allocation42_spill] sm:$0xff] }
 0x298   : > { %v2449_v25 = vmul.f32 %v5962_v2, %v6800_v24  ;;  %v6802_v24 = vld [vmem:[#allocation24_spill] sm:$0xff] }
 0x299   : > { %v2022_v62 = vpop.f32.mrf.mxu1  ;;  %v2297_v8 = vpop.f32.mrf.mxu2  ;;  %4292 = vmatmul.msk.f32.gmra.mxu0 %vm545_vm0, %v2754_v59 }
 0x29a   : > { %v5958_v1 = vadd.f32 %v2297_v8, %v2091_v27  ;;  %v2092_v12 = vadd.f32 %v2022_v62, %v5494_v49  ;;  %v5986_v49 = vld [vmem:[#allocation2 + $0x108] sm:$0xff]  ;;  %v5993_v62 = vpop.f32.mrf.mxu0 }
 0x29b   : > { %6804 = vst [vmem:[#allocation65_spill] sm:$0xff] %v5986_v49 }
 0x29c   : > { %6797 = vst [vmem:[#allocation43_spill] sm:$0xff] %v5958_v1  ;;  %4202 = vmatmul.msk.f32.gmra.mxu1 %vm545_vm0, %v1862_v43  ;;  %v3666_v43 = vld [vmem:[%s6569_s3 + $0x8] sm:$0xff]  ;;  %v1863_v1 = vmul.f32 %v1831_v61, %v6802_v24 }
 0x29d   : > { %3783 = vmatpush.msra.mxu3 %v3666_v43 }
 0x29e   : > { %4234 = vmatmul.msk.f32.gmra.mxu2 %vm545_vm0, %v5965_v7  ;;  %v5983_v7 = vld [vmem:[#allocation2 + $0x101] sm:$0xff] }
 0x29f   : > { %4265 = vmatmul.msk.f32.gmra.mxu3 %vm545_vm0, %v2449_v25  ;;  %6803 = vst [vmem:[#allocation28_spill] sm:$0xff] %v5983_v7  ;;  %v2450_v10 = vmul.f32 %v5983_v7, %v6805_v26  ;;  %v1832_v25 = vld [vmem:[#allocation2 + $0x10f] sm:$0xff] }
 0x2a0   : > { %v1864_v26 = vmul.f32 %v1832_v25, %v6727_v55 }
 0x2a1   : > { %v2025_v27 = vpop.f32.mrf.mxu1  ;;  %v2300_v59 = vpop.f32.mrf.mxu2  ;;  %4293 = vmatmul.msk.f32.gmra.mxu0 %vm545_vm0, %v2755_v18  ;;  %v2756_v18 = vmul.f32 %v5918_v29, %v5053_v60  ;;  %v6809_v60 = vld [vmem:[#allocation33_spill] sm:$0xff] }
 0x2a2   : > { %v5979_v8 = vadd.f32 %v2300_v59, %v2092_v12  ;;  %v2093_v12 = vadd.f32 %v2025_v27, %v5506_v23  ;;  %v2757_v27 = vmul.f32 %v1829_v53, %v6786_v47  ;;  %v6814_v47 = vld [vmem:[#allocation49_spill] sm:$0xff] }
 0x2a4   : > { %6801 = vst [vmem:[#allocation22_spill] sm:$0xff] %v5979_v8  ;;  %4203 = vmatmul.msk.f32.gmra.mxu1 %vm545_vm0, %v1863_v1  ;;  %v6002_v8 = vld [vmem:[#allocation2 + $0x109] sm:$0xff] }
 0x2a5   : > { %6807 = vst [vmem:[#allocation24_spill] sm:$0xff] %v6002_v8  ;;  %v2451_v23 = vmul.f32 %v6002_v8, %v5252_v38  ;;  %v3009_v38 = vld [vmem:[#allocation2 + $0x28] sm:$0xff] }
 0x2a6   : > { %4235 = vmatmul.msk.f32.gmra.mxu2 %vm545_vm0, %v5986_v49  ;;  %v6813_v8 = vld [vmem:[#allocation60_spill] sm:$0xff] }
 0x2a7   : > { %4266 = vmatmul.msk.f32.gmra.mxu3 %vm545_vm0, %v2450_v10  ;;  %v6005_v10 = vld [vmem:[#allocation2 + $0x110] sm:$0xff] }
 0x2a8   : > { %6808 = vst [vmem:[#allocation67_spill] sm:$0xff] %v6005_v10 }
 0x2a9   : > { %v2028_v43 = vpop.f32.mrf.mxu1  ;;  %v2303_v1 = vpop.f32.mrf.mxu2  ;;  %4294 = vmatmul.msk.f32.gmra.mxu0 %vm545_vm0, %v2756_v18 }
 0x2aa   : > { %v5998_v59 = vadd.f32 %v2303_v1, %v2093_v12  ;;  %v2094_v29 = vadd.f32 %v2028_v43, %v6809_v60  ;;  %v6014_v1 = vpop.f32.mrf.mxu0  ;;  %v2758_v43 = vmul.f32 %v1830_v14, %v5012_v41 }
 0x2ac   : > { %6806 = vst [vmem:[#allocation31_spill] sm:$0xff] %v5998_v59  ;;  %4204 = vmatmul.msk.f32.gmra.mxu1 %vm545_vm0, %v1864_v26  ;;  %v6019_v26 = vld [vmem:[#allocation2 + $0x111] sm:$0xff] }
 0x2ad   : > { %6811 = vst [vmem:[#allocation68_spill] sm:$0xff] %v6019_v26 }
 0x2ae   : > { %4236 = vmatmul.msk.f32.gmra.mxu2 %vm545_vm0, %v6005_v10  ;;  %v6812_v10 = vld [vmem:[#allocation45_spill] sm:$0xff] }
 0x2af   : > { %4267 = vmatmul.msk.f32.gmra.mxu3 %vm545_vm0, %v2451_v23  ;;  %v2452_v23 = vmul.f32 %v6019_v26, %v6812_v10  ;;  %v3016_v10 = vld [vmem:[#allocation2 + $0x60] sm:$0xff] }
 0x2b1   : > { %v2031_v12 = vpop.f32.mrf.mxu1  ;;  %v2306_v18 = vpop.f32.mrf.mxu2  ;;  %4295 = vmatmul.msk.f32.gmra.mxu0 %vm545_vm0, %v2757_v27 }
 0x2b2   : > { %v6016_v59 = vadd.f32 %v2306_v18, %v2094_v29  ;;  %v2095_v53 = vadd.f32 %v2031_v12, %v6814_v47  ;;  %v3010_v18 = vld [vmem:[#allocation2 + $0x30] sm:$0xff]  ;;  %v2759_v12 = vmul.f32 %v1831_v61, %v5074_v31 }
 0x2b4   : > { %6810 = vst [vmem:[#allocation33_spill] sm:$0xff] %v6016_v59  ;;  %4301 = vmatmul.msk.f32.vlgmr.msra.gmra.mxu1 %vm545_vm0, %v3009_v38  ;;  %v6032_v38 = vpop.f32.mrf.mxu0  ;;  %v6816_v59 = vld [vmem:[#allocation61_spill] sm:$0xff] }
 0x2b6   : > { %4333 = vmatmul.msk.f32.vlgmr.msra.gmra.mxu2 %vm545_vm0, %v6813_v8  ;;  %v6817_v8 = vld [vmem:[#allocation66_spill] sm:$0xff] }
 0x2b7   : > { %4268 = vmatmul.msk.f32.gmra.mxu3 %vm545_vm0, %v2452_v23 }
 0x2b9   : > { %v2034_v60 = vpop.f32.mrf.mxu1  ;;  %v2309_v29 = vpop.f32.mrf.mxu2  ;;  %4296 = vmatmul.msk.f32.gmra.mxu0 %vm545_vm0, %v2758_v43 }
 0x2ba   : > { %v6029_v27 = vadd.f32 %v2309_v29, %v2095_v53  ;;  %v2096_v23 = vadd.f32 %v2034_v60, %v6817_v8  ;;  %v3011_v53 = vld [vmem:[#allocation2 + $0x38] sm:$0xff]  ;;  %v6819_v29 = vld [vmem:[#allocation51_spill] sm:$0xff]  ;;  %v2760_v60 = vmul.f32 %v1832_v25, %v6798_v15 }
 0x2bc   : > { %6815 = vst [vmem:[#allocation60_spill] sm:$0xff] %v6029_v27  ;;  %4302 = vmatmul.msk.f32.gmra.mxu1 %vm545_vm0, %v3010_v18  ;;  %v6043_v43 = vpop.f32.mrf.mxu0  ;;  %v6820_v18 = vld [vmem:[#allocation54_spill] sm:$0xff] }
 0x2be   : > { %4334 = vmatmul.msk.f32.gmra.mxu2 %vm545_vm0, %v6816_v59 }
 0x2c1   : > { %v2037_v47 = vpop.f32.mrf.mxu1  ;;  %v2312_v41 = vpop.f32.mrf.mxu2  ;;  %4297 = vmatmul.msk.f32.gmra.mxu0 %vm545_vm0, %v2759_v12  ;;  %v2729_v12 = vld [vmem:[#allocation2 + $0x117] sm:$0xff] }
 0x2c2   : > { %v6039_v14 = vadd.f32 %v2312_v41, %v2096_v23  ;;  %v2097_v59 = vadd.f32 %v2037_v47, %v6820_v18  ;;  %v3012_v23 = vld [vmem:[#allocation2 + $0x40] sm:$0xff]  ;;  %v6822_v41 = vld [vmem:[#allocation62_spill] sm:$0xff]  ;;  %v2761_v47 = vmul.f32 %v2729_v12, %v6802_v24 }
 0x2c4   : > { %6818 = vst [vmem:[#allocation49_spill] sm:$0xff] %v6039_v14  ;;  %4303 = vmatmul.msk.f32.gmra.mxu1 %vm545_vm0, %v3011_v53  ;;  %v6055_v53 = vpop.f32.mrf.mxu0 }
 0x2c6   : > { %4335 = vmatmul.msk.f32.gmra.mxu2 %vm545_vm0, %v6819_v29  ;;  %v6823_v29 = vld [vmem:[#allocation50_spill] sm:$0xff] }
 0x2c9   : > { %v2040_v8 = vpop.f32.mrf.mxu1  ;;  %v2315_v31 = vpop.f32.mrf.mxu2  ;;  %4298 = vmatmul.msk.f32.gmra.mxu0 %vm545_vm0, %v2760_v60 }
 0x2ca   : > { %v6049_v61 = vadd.f32 %v2315_v31, %v2097_v59  ;;  %v2098_v14 = vadd.f32 %v2040_v8, %v6823_v29  ;;  %v3013_v59 = vld [vmem:[#allocation2 + $0x48] sm:$0xff]  ;;  %v6062_v60 = vpop.f32.mrf.mxu3  ;;  %v2730_v31 = vld [vmem:[#allocation2 + $0x11f] sm:$0xff] }
 0x2cb   : > { %v6826_v8 = vld [vmem:[#allocation36_spill] sm:$0xff] }
 0x2cc   : > { %6821 = vst [vmem:[#allocation61_spill] sm:$0xff] %v6049_v61  ;;  %4304 = vmatmul.msk.f32.gmra.mxu1 %vm545_vm0, %v3012_v23  ;;  %v6825_v23 = vld [vmem:[#allocation63_spill] sm:$0xff]  ;;  %v6069_v61 = vpop.f32.mrf.mxu0 }
 0x2ce   : > { %4336 = vmatmul.msk.f32.gmra.mxu2 %vm545_vm0, %v6822_v41  ;;  %v2762_v41 = vmul.f32 %v2730_v31, %v6727_v55 }
 0x2d1   : > { %v2043_v15 = vpop.f32.mrf.mxu1  ;;  %v2318_v25 = vpop.f32.mrf.mxu2  ;;  %4299 = vmatmul.msk.f32.gmra.mxu0 %vm545_vm0, %v2761_v47  ;;  %v3014_v47 = vld [vmem:[#allocation2 + $0x50] sm:$0xff] }
 0x2d2   : > { %v6059_v18 = vadd.f32 %v2318_v25, %v2098_v14  ;;  %v2099_v29 = vadd.f32 %v2043_v15, %v6826_v8  ;;  %v6075_v25 = vpop.f32.mrf.mxu3  ;;  %v3665_v15 = vld [vmem:[%s6569_s3] sm:$0xff] }
 0x2d3   : > { %3784 = vmatpush.msra.mxu3 %v3665_v15 }
 0x2d4   : > { %6824 = vst [vmem:[#allocation66_spill] sm:$0xff] %v6059_v18  ;;  %4305 = vmatmul.msk.f32.gmra.mxu1 %vm545_vm0, %v3013_v59  ;;  %v6828_v59 = vld [vmem:[#allocation55_spill] sm:$0xff] }
 0x2d5   : > { %v3294_v18 = vld [vmem:[#allocation2 + $0x61] sm:$0xff] }
 0x2d6   : > { %4337 = vmatmul.msk.f32.gmra.mxu2 %vm545_vm0, %v6825_v23  ;;  %v6829_v23 = vld [vmem:[#allocation35_spill] sm:$0xff] }
 0x2d9   : > { %v2046_v24 = vpop.f32.mrf.mxu1  ;;  %v2321_v12 = vpop.f32.mrf.mxu2  ;;  %4300 = vmatmul.msk.f32.gmra.mxu0 %vm545_vm0, %v2762_v41  ;;  %v3015_v41 = vld [vmem:[#allocation2 + $0x58] sm:$0xff] }
 0x2da   : > { %v6071_v14 = vadd.f32 %v2321_v12, %v2099_v29  ;;  %v2100_v55 = vadd.f32 %v2046_v24, %v6829_v23  ;;  %v6831_v12 = vld [vmem:[#allocation64_spill] sm:$0xff] }
 0x2dc   : > { %6827 = vst [vmem:[#allocation51_spill] sm:$0xff] %v6071_v14  ;;  %4306 = vmatmul.msk.f32.gmra.mxu1 %vm545_vm0, %v3014_v47  ;;  %v6088_v47 = vpop.f32.mrf.mxu3 }
 0x2de   : > { %4338 = vmatmul.msk.f32.gmra.mxu2 %vm545_vm0, %v6828_v59  ;;  %v6832_v59 = vld [vmem:[#allocation47_spill] sm:$0xff] }
 0x2e1   : > { %v2049_v31 = vpop.f32.mrf.mxu1  ;;  %v2324_v8 = vpop.f32.mrf.mxu2 }
 0x2e2   : > { %v6083_v29 = vadd.f32 %v2324_v8, %v2100_v55  ;;  %v2101_v14 = vadd.f32 %v2049_v31, %v6832_v59  ;;  %v6834_v55 = vld [vmem:[#allocation25_spill] sm:$0xff]  ;;  %v6835_v8 = vld [vmem:[#allocation38_spill] sm:$0xff]  ;;  %v3017_v31 = vld [vmem:[#allocation2 + $0x68] sm:$0xff] }
 0x2e3   : > { %v3326_v15 = vmul.f32 %v3294_v18, %v6834_v55  ;;  %v6838_v59 = vld [vmem:[#allocation16_spill] sm:$0xff] }
 0x2e4   : > { %6830 = vst [vmem:[#allocation54_spill] sm:$0xff] %v6083_v29  ;;  %4307 = vmatmul.msk.f32.gmra.mxu1 %vm545_vm0, %v3015_v41  ;;  %v6097_v26 = vpop.f32.mrf.mxu3 }
 0x2e6   : > { %4339 = vmatmul.msk.f32.gmra.mxu2 %vm545_vm0, %v6831_v12 }
 0x2e9   : > { %v2052_v24 = vpop.f32.mrf.mxu1  ;;  %v2327_v23 = vpop.f32.mrf.mxu2 }
 0x2ea   : > { %v6091_v27 = vadd.f32 %v2327_v23, %v2101_v14  ;;  %v2102_v41 = vadd.f32 %v2052_v24, %v6835_v8  ;;  %v6837_v14 = vld [vmem:[#allocation19_spill] sm:$0xff]  ;;  %v3018_v8 = vld [vmem:[#allocation2 + $0x70] sm:$0xff] }
 0x2eb   : > { %v3327_v23 = vmul.f32 %v6838_v59, %v6837_v14 }
 0x2ec   : > { %6833 = vst [vmem:[#allocation62_spill] sm:$0xff] %v6091_v27  ;;  %4308 = vmatmul.msk.f32.gmra.mxu1 %vm545_vm0, %v3016_v10  ;;  %v6839_v10 = vld [vmem:[#allocation13_spill] sm:$0xff]  ;;  %v6108_v7 = vpop.f32.mrf.mxu3 }
 0x2ed   : > { %v3296_v27 = vld [vmem:[#allocation2 + $0x71] sm:$0xff]  ;;  %6841 = vst [vmem:[#allocation36_spill] sm:$0xff] %v6108_v7  ;;  %v3298_v7 = vld [vmem:[#allocation2 + $0x81] sm:$0xff] }
 0x2ee   : > { %4340 = vmatmul.msk.f32.gmra.mxu2 %vm545_vm0, %v3326_v15 }
 0x2f1   : > { %v2055_v29 = vpop.f32.mrf.mxu1  ;;  %v2330_v12 = vpop.f32.mrf.mxu2 }
 0x2f2   : > { %v6099_v49 = vadd.f32 %v2330_v12, %v2102_v41  ;;  %v2103_v18 = vadd.f32 %v2055_v29, %v6839_v10  ;;  %v6842_v41 = vld [vmem:[#allocation27_spill] sm:$0xff]  ;;  %v3019_v10 = vld [vmem:[#allocation2 + $0x78] sm:$0xff] }
 0x2f3   : > { %v3328_v12 = vmul.f32 %v3296_v27, %v6842_v41 }
 0x2f4   : > { %6836 = vst [vmem:[#allocation50_spill] sm:$0xff] %v6099_v49  ;;  %4309 = vmatmul.msk.f32.gmra.mxu1 %vm545_vm0, %v3017_v31  ;;  %v6843_v31 = vld [vmem:[#allocation41_spill] sm:$0xff]  ;;  %v3297_v49 = vld [vmem:[#allocation2 + $0x79] sm:$0xff] }
 0x2f6   : > { %4341 = vmatmul.msk.f32.gmra.mxu2 %vm545_vm0, %v3327_v23 }
 0x2f9   : > { %v2058_v55 = vpop.f32.mrf.mxu1  ;;  %v2333_v15 = vpop.f32.mrf.mxu2 }
 0x2fa   : > { %v6106_v24 = vadd.f32 %v2333_v15, %v2103_v18  ;;  %v2104_v14 = vadd.f32 %v2058_v55, %v6843_v31  ;;  %v6845_v18 = vld [vmem:[#allocation29_spill] sm:$0xff]  ;;  %v3020_v31 = vld [vmem:[#allocation2 + $0x80] sm:$0xff] }
 0x2fb   : > { %v3329_v15 = vmul.f32 %v3297_v49, %v6845_v18 }
 0x2fc   : > { %6840 = vst [vmem:[#allocation63_spill] sm:$0xff] %v6106_v24  ;;  %4310 = vmatmul.msk.f32.gmra.mxu1 %vm545_vm0, %v3018_v8  ;;  %v6118_v24 = vpop.f32.mrf.mxu3  ;;  %v6846_v8 = vld [vmem:[#allocation12_spill] sm:$0xff] }
 0x2fe   : > { %4342 = vmatmul.msk.f32.gmra.mxu2 %vm545_vm0, %v3328_v12 }
 0x301   : > { %v2061_v59 = vpop.f32.mrf.mxu1  ;;  %v2336_v23 = vpop.f32.mrf.mxu2 }
 0x302   : > { %v6114_v29 = vadd.f32 %v2336_v23, %v2104_v14  ;;  %v2105_v27 = vadd.f32 %v2061_v59, %v6846_v8  ;;  %v6847_v14 = vld [vmem:[#allocation21_spill] sm:$0xff]  ;;  %v3021_v8 = vld [vmem:[#allocation2 + $0x88] sm:$0xff] }
 0x303   : > { %v3330_v23 = vmul.f32 %v3298_v7, %v6847_v14  ;;  %v3300_v14 = vld [vmem:[#allocation2 + $0x91] sm:$0xff] }
 0x304   : > { %6844 = vst [vmem:[#allocation55_spill] sm:$0xff] %v6114_v29  ;;  %4311 = vmatmul.msk.f32.gmra.mxu1 %vm545_vm0, %v3019_v10  ;;  %v6127_v10 = vpop.f32.mrf.mxu3  ;;  %v3299_v29 = vld [vmem:[#allocation2 + $0x89] sm:$0xff] }
 0x306   : > { %4343 = vmatmul.msk.f32.gmra.mxu2 %vm545_vm0, %v3329_v15 }
 0x309   : > { %v2064_v41 = vpop.f32.mrf.mxu1  ;;  %v2339_v12 = vpop.f32.mrf.mxu2 }
 0x30a   : > { %v6122_v55 = vadd.f32 %v2339_v12, %v2105_v27  ;;  %v2106_v49 = vadd.f32 %v2064_v41, %v5678_v13  ;;  %v3331_v27 = vmul.f32 %v3299_v29, %v6764_v42  ;;  %v3022_v41 = vld [vmem:[#allocation2 + $0x90] sm:$0xff] }
 0x30c   : > { %4312 = vmatmul.msk.f32.gmra.mxu1 %vm545_vm0, %v3020_v31 }
 0x30e   : > { %4344 = vmatmul.msk.f32.gmra.mxu2 %vm545_vm0, %v3330_v23  ;;  %v6136_v23 = vpop.f32.mrf.mxu3 }
 0x311   : > { %v2067_v18 = vpop.f32.mrf.mxu1  ;;  %v2342_v15 = vpop.f32.mrf.mxu2 }
 0x312   : > { %v6130_v59 = vadd.f32 %v2342_v15, %v2106_v49  ;;  %v2107_v7 = vadd.f32 %v2067_v18, %v5693_v9  ;;  %v6848_v49 = vld [vmem:[#allocation34_spill] sm:$0xff] }
 0x313   : > { %v3332_v15 = vmul.f32 %v3300_v14, %v6848_v49  ;;  %v3023_v9 = vld [vmem:[#allocation2 + $0x98] sm:$0xff] }
 0x314   : > { %4313 = vmatmul.msk.f32.gmra.mxu1 %vm545_vm0, %v3021_v8 }
 0x316   : > { %4345 = vmatmul.msk.f32.gmra.mxu2 %vm545_vm0, %v3331_v27  ;;  %v6146_v18 = vpop.f32.mrf.mxu3 }
 0x319   : > { %v2070_v12 = vpop.f32.mrf.mxu1  ;;  %v2345_v31 = vpop.f32.mrf.mxu2 }
 0x31a   : > { %v6138_v13 = vadd.f32 %v2345_v31, %v2107_v7  ;;  %v2108_v42 = vadd.f32 %v2070_v12, %v5704_v37  ;;  %v3333_v7 = vmul.f32 %v5728_v45, %v6768_v46  ;;  %v3334_v37 = vmul.f32 %v5748_v20, %v5115_v17 }
 0x31c   : > { %4314 = vmatmul.msk.f32.gmra.mxu1 %vm545_vm0, %v3022_v41 }
 0x31e   : > { %4346 = vmatmul.msk.f32.gmra.mxu2 %vm545_vm0, %v3332_v15  ;;  %v6159_v12 = vpop.f32.mrf.mxu3 }
 0x321   : > { %v2073_v29 = vpop.f32.mrf.mxu1  ;;  %v2348_v8 = vpop.f32.mrf.mxu2 }
 0x322   : > { %v6144_v27 = vadd.f32 %v2348_v8, %v2108_v42  ;;  %v2109_v31 = vadd.f32 %v2073_v29, %v5715_v58  ;;  %v3335_v58 = vmul.f32 %v5768_v51, %v5072_v28  ;;  %v3336_v28 = vmul.f32 %v5788_v48, %v5137_v57  ;;  %v6849_v57 = vld [vmem:[#allocation40_spill] sm:$0xff] }
 0x323   : > { %v6850_v48 = vld [vmem:[#allocation44_spill] sm:$0xff] }
 0x324   : > { %4315 = vmatmul.msk.f32.gmra.mxu1 %vm545_vm0, %v3023_v9 }
 0x326   : > { %4347 = vmatmul.msk.f32.gmra.mxu2 %vm545_vm0, %v3333_v7  ;;  %v6172_v17 = vpop.f32.mrf.mxu3 }
 0x329   : > { %v2076_v14 = vpop.f32.mrf.mxu1  ;;  %v2351_v41 = vpop.f32.mrf.mxu2 }
 0x32a   : > { %v6153_v49 = vadd.f32 %v2351_v41, %v2109_v31  ;;  %v2110_v46 = vadd.f32 %v2076_v14, %v5730_v16  ;;  %v6177_v16 = vld [vmem:[%s6571_s5] ss:$0 sm:$0xff] }
 0x32c   : > { %4316 = vmatmul.msk.f32.gmra.mxu1 %vm545_vm0, %v5735_v50  ;;  %v2977_v50 = vadd.f32 %v5946_v0, %v5750_v19  ;;  %v2978_v19 = vadd.f32 %v5969_v21, %v5770_v40  ;;  %v3337_v40 = vmul.f32 %v5808_v30, %v6849_v57  ;;  %v2979_v21 = vadd.f32 %v5993_v62, %v6850_v48 }
 0x32d   : > { %v2980_v62 = vadd.f32 %v6014_v1, %v5810_v54  ;;  %v6852_v54 = vld [vmem:[#allocation15_spill] sm:$0xff] }
 0x32e   : > { %4348 = vmatmul.msk.f32.gmra.mxu2 %vm545_vm0, %v3334_v37  ;;  %v6188_v14 = vpop.f32.mrf.mxu3  ;;  %v6190_v37 = vpop.f32.mrf.mxu0 }
 0x331   : > { %v2354_v45 = vpop.f32.mrf.mxu2  ;;  %v3159_v15 = vpop.f32.mrf.mxu1 }
 0x332   : > { %v6163_v42 = vadd.f32 %v2354_v45, %v2110_v46  ;;  %v3255_v20 = vadd.f32 %v3159_v15, %v2977_v50 }
 0x334   : > { %4317 = vmatmul.msk.f32.gmra.mxu1 %vm545_vm0, %v5755_v6 }
 0x336   : > { %4349 = vmatmul.msk.f32.gmra.mxu2 %vm545_vm0, %v3335_v58 }
 0x339   : > { %v3162_v29 = vpop.f32.mrf.mxu1  ;;  %v3469_v8 = vpop.f32.mrf.mxu2 }
 0x33a   : > { %v3565_v9 = vadd.f32 %v3469_v8, %v3255_v20  ;;  %v3256_v0 = vadd.f32 %v3162_v29, %v2978_v19  ;;  %v6201_v20 = vpop.f32.mrf.mxu3  ;;  %v6210_v8 = vpop.f32.mrf.mxu0 }
 0x33c   : > { %v3601_v6 = vadd.f32 %v6177_v16, %v3565_v9  ;;  %4318 = vmatmul.msk.f32.gmra.mxu1 %vm545_vm0, %v5775_v56 }
 0x33e   : > { %v3633_v51 = vmax.f32 %v3601_v6, 0.0  ;;  %4350 = vmatmul.msk.f32.gmra.mxu2 %vm545_vm0, %v3336_v28 }
 0x340   : > { %4365 = vmatmul.msk.f32.vlgmr.msra.gmra.mxu3 %vm545_vm0, %v3633_v51 }
 0x341   : > { %v3165_v7 = vpop.f32.mrf.mxu1  ;;  %v3472_v31 = vpop.f32.mrf.mxu2 }
 0x342   : > { %v3566_v41 = vadd.f32 %v3472_v31, %v3256_v0  ;;  %v3257_v45 = vadd.f32 %v3165_v7, %v2979_v21  ;;  %v6221_v1 = vpop.f32.mrf.mxu3  ;;  %v6224_v31 = vpop.f32.mrf.mxu0 }
 0x344   : > { %v3602_v56 = vadd.f32 %v6177_v16, %v3566_v41  ;;  %4319 = vmatmul.msk.f32.gmra.mxu1 %vm545_vm0, %v5795_v22  ;;  %v6851_v22 = vld [vmem:[#allocation32_spill] sm:$0xff] }
 0x345   : > { %v3338_v30 = vmul.f32 %v5832_v39, %v6851_v22  ;;  %v2981_v39 = vadd.f32 %v6032_v38, %v6852_v54  ;;  %v6854_v38 = vld [vmem:[#allocation9_spill] sm:$0xff]  ;;  %v6856_v22 = vld [vmem:[#allocation48_spill] sm:$0xff] }
 0x346   : > { %v3634_v46 = vmax.f32 %v3602_v56, 0.0  ;;  %4351 = vmatmul.msk.f32.gmra.mxu2 %vm545_vm0, %v3337_v40  ;;  %v2982_v48 = vadd.f32 %v6043_v43, %v6854_v38 }
 0x348   : > { %4366 = vmatmul.msk.f32.gmra.mxu3 %vm545_vm0, %v3634_v46 }
 0x349   : > { %v3168_v15 = vpop.f32.mrf.mxu1  ;;  %v3475_v58 = vpop.f32.mrf.mxu2 }
 0x34a   : > { %v3567_v50 = vadd.f32 %v3475_v58, %v3257_v45  ;;  %v3258_v6 = vadd.f32 %v3168_v15, %v2980_v62  ;;  %v6235_v46 = vpop.f32.mrf.mxu3 }
 0x34c   : > { %v3603_v29 = vadd.f32 %v6177_v16, %v3567_v50  ;;  %4320 = vmatmul.msk.f32.gmra.mxu1 %vm545_vm0, %v5815_v4  ;;  %v3339_v4 = vmul.f32 %v5853_v36, %v6774_v52  ;;  %v6853_v52 = vld [vmem:[#allocation46_spill] sm:$0xff]  ;;  %v6238_v50 = vpop.f32.mrf.mxu0 }
 0x34d   : > { %v3340_v36 = vmul.f32 %v5870_v5, %v6853_v52  ;;  %v6855_v5 = vld [vmem:[#allocation37_spill] sm:$0xff] }
 0x34e   : > { %v3635_v9 = vmax.f32 %v3603_v29, 0.0  ;;  %4352 = vmatmul.msk.f32.gmra.mxu2 %vm545_vm0, %v3338_v30  ;;  %v3341_v43 = vmul.f32 %v5889_v32, %v6855_v5  ;;  %v2983_v30 = vadd.f32 %v6055_v53, %v6856_v22  ;;  %v6857_v32 = vld [vmem:[#allocation52_spill] sm:$0xff]  ;;  %v6863_v5 = vld [vmem:[#allocation26_spill] sm:$0xff] }
 0x34f   : > { %v3342_v53 = vmul.f32 %v5908_v11, %v6857_v32  ;;  %v6859_v11 = vld [vmem:[#allocation30_spill] sm:$0xff] }
 0x350   : > { %4367 = vmatmul.msk.f32.gmra.mxu3 %vm545_vm0, %v3635_v9 }
 0x351   : > { %v3171_v28 = vpop.f32.mrf.mxu1  ;;  %v3478_v19 = vpop.f32.mrf.mxu2 }
 0x352   : > { %v3568_v51 = vadd.f32 %v3478_v19, %v3258_v6  ;;  %v3259_v41 = vadd.f32 %v3171_v28, %v2981_v39  ;;  %v6249_v19 = vpop.f32.mrf.mxu3 }
 0x354   : > { %v3604_v0 = vadd.f32 %v6177_v16, %v3568_v51  ;;  %4321 = vmatmul.msk.f32.gmra.mxu1 %vm545_vm0, %v5839_v3 }
 0x356   : > { %v3636_v7 = vmax.f32 %v3604_v0, 0.0  ;;  %4353 = vmatmul.msk.f32.gmra.mxu2 %vm545_vm0, %v3339_v4  ;;  %v6251_v0 = vpop.f32.mrf.mxu0  ;;  %v2984_v4 = vadd.f32 %v6069_v61, %v5891_v44  ;;  %v6860_v44 = vld [vmem:[#allocation53_spill] sm:$0xff]  ;;  %v6861_v61 = vld [vmem:[#allocation11_spill] sm:$0xff] }
 0x357   : > { %v3343_v52 = vmul.f32 %v6861_v61, %v6860_v44  ;;  %v6869_v44 = vld [vmem:[#allocation23_spill] sm:$0xff]  ;;  %v6871_v61 = vld [vmem:[#allocation28_spill] sm:$0xff] }
 0x358   : > { %4368 = vmatmul.msk.f32.gmra.mxu3 %vm545_vm0, %v3636_v7 }
 0x359   : > { %v3174_v56 = vpop.f32.mrf.mxu1  ;;  %v3481_v57 = vpop.f32.mrf.mxu2 }
 0x35a   : > { %v3569_v40 = vadd.f32 %v3481_v57, %v3259_v41  ;;  %v3260_v45 = vadd.f32 %v3174_v56, %v2982_v48  ;;  %v6858_v57 = vld [vmem:[#allocation10_spill] sm:$0xff] }
 0x35c   : > { %v3605_v3 = vadd.f32 %v6177_v16, %v3569_v40  ;;  %4322 = vmatmul.msk.f32.gmra.mxu1 %vm545_vm0, %v5858_v63  ;;  %v2675_v40 = vadd.f32 %v6062_v60, %v6858_v57 }
 0x35e   : > { %v3637_v21 = vmax.f32 %v3605_v3, 0.0  ;;  %4354 = vmatmul.msk.f32.gmra.mxu2 %vm545_vm0, %v3340_v36  ;;  %v6264_v3 = vpop.f32.mrf.mxu3  ;;  %v2985_v36 = vadd.f32 %v6190_v37, %v2675_v40  ;;  %v6272_v38 = vpop.f32.mrf.mxu0  ;;  %v6864_v37 = vld [vmem:[#allocation39_spill] sm:$0xff] }
 0x360   : > { %4369 = vmatmul.msk.f32.gmra.mxu3 %vm545_vm0, %v3637_v21 }
 0x361   : > { %v3177_v15 = vpop.f32.mrf.mxu1  ;;  %v3484_v58 = vpop.f32.mrf.mxu2 }
 0x362   : > { %v3570_v29 = vadd.f32 %v3484_v58, %v3260_v45  ;;  %v3261_v9 = vadd.f32 %v3177_v15, %v2983_v30  ;;  %v6862_v58 = vld [vmem:[#allocation18_spill] sm:$0xff] }
 0x364   : > { %v3606_v63 = vadd.f32 %v6177_v16, %v3570_v29  ;;  %4323 = vmatmul.msk.f32.gmra.mxu1 %vm545_vm0, %v5875_v35  ;;  %v2676_v29 = vadd.f32 %v6075_v25, %v6862_v58  ;;  %v6872_v58 = vld [vmem:[#allocation43_spill] sm:$0xff] }
 0x366   : > { %v3638_v62 = vmax.f32 %v3606_v63, 0.0  ;;  %4355 = vmatmul.msk.f32.gmra.mxu2 %vm545_vm0, %v3341_v43  ;;  %v3344_v43 = vmul.f32 %v5944_v34, %v6864_v37  ;;  %v2986_v22 = vadd.f32 %v6210_v8, %v2676_v29  ;;  %v6284_v30 = vpop.f32.mrf.mxu3  ;;  %v6867_v8 = vld [vmem:[#allocation56_spill] sm:$0xff] }
 0x367   : > { %v6873_v29 = vld [vmem:[#allocation36_spill] sm:$0xff] }
 0x368   : > { %4370 = vmatmul.msk.f32.gmra.mxu3 %vm545_vm0, %v3638_v62 }
 0x369   : > { %v3180_v6 = vpop.f32.mrf.mxu1  ;;  %v3487_v28 = vpop.f32.mrf.mxu2 }
 0x36a   : > { %v3571_v51 = vadd.f32 %v3487_v28, %v3261_v9  ;;  %v3262_v39 = vadd.f32 %v3180_v6, %v2984_v4  ;;  %v6287_v9 = vpop.f32.mrf.mxu0  ;;  %v3345_v4 = vmul.f32 %v5962_v2, %v6867_v8 }
 0x36c   : > { %v3607_v35 = vadd.f32 %v6177_v16, %v3571_v51  ;;  %4324 = vmatmul.msk.f32.gmra.mxu1 %vm545_vm0, %v5894_v33 }
 0x36e   : > { %v3639_v54 = vmax.f32 %v3607_v35, 0.0  ;;  %4356 = vmatmul.msk.f32.gmra.mxu2 %vm545_vm0, %v3342_v53  ;;  %v6865_v35 = vld [vmem:[#allocation17_spill] sm:$0xff]  ;;  %v6866_v53 = vld [vmem:[#allocation14_spill] sm:$0xff] }
 0x36f   : > { %v2677_v32 = vadd.f32 %v6088_v47, %v6865_v35 }
 0x370   : > { %4371 = vmatmul.msk.f32.gmra.mxu3 %vm545_vm0, %v3639_v54 }
 0x371   : > { %v3183_v7 = vpop.f32.mrf.mxu1  ;;  %v3490_v41 = vpop.f32.mrf.mxu2  ;;  %v2987_v54 = vadd.f32 %v6224_v31, %v2677_v32  ;;  %v6870_v31 = vld [vmem:[#allocation57_spill] sm:$0xff] }
 0x372   : > { %v3572_v56 = vadd.f32 %v3490_v41, %v3262_v39  ;;  %v3263_v21 = vadd.f32 %v3183_v7, %v2985_v36  ;;  %v6299_v7 = vpop.f32.mrf.mxu3  ;;  %v6302_v57 = vpop.f32.mrf.mxu0 }
 0x374   : > { %v3608_v33 = vadd.f32 %v6177_v16, %v3572_v56  ;;  %4325 = vmatmul.msk.f32.gmra.mxu1 %vm545_vm0, %v6859_v11 }
 0x376   : > { %v3640_v48 = vmax.f32 %v3608_v33, 0.0  ;;  %4357 = vmatmul.msk.f32.gmra.mxu2 %vm545_vm0, %v3343_v52  ;;  %v6868_v33 = vld [vmem:[#allocation20_spill] sm:$0xff]  ;;  %v3346_v52 = vmul.f32 %v6871_v61, %v6870_v31  ;;  %v6881_v61 = vld [vmem:[#allocation59_spill] sm:$0xff] }
 0x377   : > { %v2678_v11 = vadd.f32 %v6097_v26, %v6868_v33 }
 0x378   : > { %4372 = vmatmul.msk.f32.gmra.mxu3 %vm545_vm0, %v3640_v48 }
 0x379   : > { %v3186_v60 = vpop.f32.mrf.mxu1  ;;  %v3493_v45 = vpop.f32.mrf.mxu2  ;;  %v2988_v36 = vadd.f32 %v6238_v50, %v2678_v11  ;;  %v6875_v50 = vld [vmem:[#allocation42_spill] sm:$0xff] }
 0x37a   : > { %v3573_v15 = vadd.f32 %v3493_v45, %v3263_v21  ;;  %v3264_v6 = vadd.f32 %v3186_v60, %v2986_v22  ;;  %v6876_v22 = vld [vmem:[#allocation24_spill] sm:$0xff] }
 0x37c   : > { %v3609_v63 = vadd.f32 %v6177_v16, %v3573_v15  ;;  %4326 = vmatmul.msk.f32.gmra.mxu1 %vm545_vm0, %v6863_v5  ;;  %v6314_v15 = vpop.f32.mrf.mxu3  ;;  %v2929_v5 = vpop.f32.mrf.mxu0 }
 0x37e   : > { %v3641_v62 = vmax.f32 %v3609_v63, 0.0  ;;  %4358 = vmatmul.msk.f32.gmra.mxu2 %vm545_vm0, %v3344_v43  ;;  %v2679_v63 = vadd.f32 %v6873_v29, %v6872_v58  ;;  %v6874_v43 = vld [vmem:[#allocation65_spill] sm:$0xff]  ;;  %v3318_v29 = vld [vmem:[#allocation2 + $0x121] sm:$0xff] }
 0x380   : > { %4373 = vmatmul.msk.f32.gmra.mxu3 %vm545_vm0, %v3641_v62  ;;  %v3347_v62 = vmul.f32 %v6876_v22, %v6875_v50  ;;  %v6883_v50 = vld [vmem:[#allocation45_spill] sm:$0xff] }
 0x381   : > { %v3189_v25 = vpop.f32.mrf.mxu1  ;;  %v3496_v28 = vpop.f32.mrf.mxu2  ;;  %v3350_v22 = vmul.f32 %v3318_v29, %v6883_v50 }
 0x382   : > { %v3574_v51 = vadd.f32 %v3496_v28, %v3264_v6  ;;  %v3265_v41 = vadd.f32 %v3189_v25, %v2987_v54  ;;  %v2989_v6 = vadd.f32 %v6251_v0, %v2679_v63  ;;  %v6878_v54 = vld [vmem:[#allocation67_spill] sm:$0xff]  ;;  %v6879_v0 = vld [vmem:[#allocation58_spill] sm:$0xff] }
 0x384   : > { %v3610_v34 = vadd.f32 %v6177_v16, %v3574_v51  ;;  %4327 = vmatmul.msk.f32.gmra.mxu1 %vm545_vm0, %v6866_v53  ;;  %v6328_v8 = vpop.f32.mrf.mxu3 }
 0x386   : > { %v3642_v39 = vmax.f32 %v3610_v34, 0.0  ;;  %4359 = vmatmul.msk.f32.gmra.mxu2 %vm545_vm0, %v3345_v4  ;;  %v6877_v34 = vld [vmem:[#allocation22_spill] sm:$0xff] }
 0x387   : > { %v2680_v53 = vadd.f32 %v6118_v24, %v6877_v34  ;;  %v3317_v24 = vld [vmem:[#allocation2 + $0x119] sm:$0xff] }
 0x388   : > { %4374 = vmatmul.msk.f32.gmra.mxu3 %vm545_vm0, %v3642_v39  ;;  %v6880_v39 = vld [vmem:[#allocation68_spill] sm:$0xff] }
 0x389   : > { %v3192_v56 = vpop.f32.mrf.mxu1  ;;  %v3499_v47 = vpop.f32.mrf.mxu2 }
 0x38a   : > { %v3575_v40 = vadd.f32 %v3499_v47, %v3265_v41  ;;  %v3266_v21 = vadd.f32 %v3192_v56, %v2988_v36  ;;  %v3348_v41 = vmul.f32 %v6880_v39, %v6879_v0  ;;  %v2990_v56 = vadd.f32 %v6272_v38, %v2680_v53  ;;  %v2932_v47 = vpop.f32.mrf.mxu0  ;;  %v6882_v36 = vld [vmem:[#allocation31_spill] sm:$0xff] }
 0x38c   : > { %v3611_v2 = vadd.f32 %v6177_v16, %v3575_v40  ;;  %4328 = vmatmul.msk.f32.gmra.mxu1 %vm545_vm0, %v6869_v44  ;;  %v3039_v44 = vld [vmem:[#allocation2 + $0x118] sm:$0xff] }
 0x38e   : > { %v3643_v48 = vmax.f32 %v3611_v2, 0.0  ;;  %4360 = vmatmul.msk.f32.gmra.mxu2 %vm545_vm0, %v3346_v52  ;;  %v3349_v52 = vmul.f32 %v3317_v24, %v6881_v61 }
 0x390   : > { %4375 = vmatmul.msk.f32.gmra.mxu3 %vm545_vm0, %v3643_v48  ;;  %v2681_v48 = vadd.f32 %v6127_v10, %v6882_v36 }
 0x391   : > { %v3195_v60 = vpop.f32.mrf.mxu1  ;;  %v3502_v45 = vpop.f32.mrf.mxu2 }
 0x392   : > { %v3576_v26 = vadd.f32 %v3502_v45, %v3266_v21  ;;  %v3267_v28 = vadd.f32 %v3195_v60, %v2989_v6  ;;  %v2991_v38 = vadd.f32 %v6287_v9, %v2681_v48  ;;  %v6344_v60 = vpop.f32.mrf.mxu3 }
 0x394   : > { %v3612_v37 = vadd.f32 %v6177_v16, %v3576_v26  ;;  %4329 = vmatmul.msk.f32.gmra.mxu1 %vm545_vm0, %v6874_v43  ;;  %v2935_v26 = vpop.f32.mrf.mxu0  ;;  %v3040_v43 = vld [vmem:[#allocation2 + $0x120] sm:$0xff] }
 0x396   : > { %v3644_v25 = vmax.f32 %v3612_v37, 0.0  ;;  %4361 = vmatmul.msk.f32.gmra.mxu2 %vm545_vm0, %v3347_v62  ;;  %v6884_v62 = vld [vmem:[#allocation33_spill] sm:$0xff] }
 0x397   : > { %v2682_v6 = vadd.f32 %v6136_v23, %v6884_v62 }
 0x398   : > { %4376 = vmatmul.msk.f32.gmra.mxu3 %vm545_vm0, %v3644_v25 }
 0x399   : > { %v3198_v51 = vpop.f32.mrf.mxu1  ;;  %v3505_v35 = vpop.f32.mrf.mxu2  ;;  %v2992_v25 = vadd.f32 %v6302_v57, %v2682_v6 }
 0x39a   : > { %v3577_v32 = vadd.f32 %v3505_v35, %v3267_v28  ;;  %v3268_v33 = vadd.f32 %v3198_v51, %v2990_v56  ;;  %v6355_v51 = vpop.f32.mrf.mxu3 }
 0x39c   : > { %v3613_v4 = vadd.f32 %v6177_v16, %v3577_v32  ;;  %4330 = vmatmul.msk.f32.gmra.mxu1 %vm545_vm0, %v6878_v54  ;;  %v2938_v53 = vpop.f32.mrf.mxu0  ;;  %v6885_v54 = vld [vmem:[#allocation60_spill] sm:$0xff] }
 0x39d   : > { %v2683_v23 = vadd.f32 %v6146_v18, %v6885_v54 }
 0x39e   : > { %v3645_v40 = vmax.f32 %v3613_v4, 0.0  ;;  %4362 = vmatmul.msk.f32.gmra.mxu2 %vm545_vm0, %v3348_v41 }
 0x39f   : > { %v2993_v39 = vadd.f32 %v2929_v5, %v2683_v23 }
 0x3a0   : > { %4377 = vmatmul.msk.f32.gmra.mxu3 %vm545_vm0, %v3645_v40 }
 0x3a1   : > { %v3201_v11 = vpop.f32.mrf.mxu1  ;;  %v3508_v2 = vpop.f32.mrf.mxu2 }
 0x3a2   : > { %v3578_v31 = vadd.f32 %v3508_v2, %v3268_v33  ;;  %v3269_v58 = vadd.f32 %v3201_v11, %v2991_v38  ;;  %v6362_v24 = vpop.f32.mrf.mxu3  ;;  %v6886_v11 = vld [vmem:[#allocation49_spill] sm:$0xff] }
 0x3a3   : > { %v2684_v2 = vadd.f32 %v6159_v12, %v6886_v11  ;;  %v6887_v12 = vld [vmem:[#allocation61_spill] sm:$0xff] }
 0x3a4   : > { %v3614_v21 = vadd.f32 %v6177_v16, %v3578_v31  ;;  %4331 = vmatmul.msk.f32.gmra.mxu1 %vm545_vm0, %v3039_v44  ;;  %v2941_v44 = vpop.f32.mrf.mxu0 }
 0x3a5   : > { %v2994_v31 = vadd.f32 %v2932_v47, %v2684_v2 }
 0x3a6   : > { %v3646_v45 = vmax.f32 %v3614_v21, 0.0  ;;  %4363 = vmatmul.msk.f32.gmra.mxu2 %vm545_vm0, %v3349_v52  ;;  %v6371_v52 = vld [vmem:[%s6572_s6] ss:$0 sm:$0xff] }
 0x3a8   : > { %4378 = vmatmul.msk.f32.gmra.mxu3 %vm545_vm0, %v3646_v45  ;;  %v2685_v45 = vadd.f32 %v6172_v17, %v6887_v12 }
 0x3a9   : > { %v3204_v63 = vpop.f32.mrf.mxu1  ;;  %v3511_v37 = vpop.f32.mrf.mxu2 }
 0x3aa   : > { %v3579_v10 = vadd.f32 %v3511_v37, %v3269_v58  ;;  %v3270_v35 = vadd.f32 %v3204_v63, %v2992_v25  ;;  %v2995_v29 = vadd.f32 %v2935_v26, %v2685_v45  ;;  %v6888_v25 = vld [vmem:[#allocation66_spill] sm:$0xff] }
 0x3ab   : > { %v2686_v26 = vadd.f32 %v6188_v14, %v6888_v25  ;;  %v6890_v45 = vld [vmem:[#allocation54_spill] sm:$0xff] }
 0x3ac   : > { %v3615_v9 = vadd.f32 %v6177_v16, %v3579_v10  ;;  %4332 = vmatmul.msk.f32.gmra.mxu1 %vm545_vm0, %v3040_v43  ;;  %v2944_v63 = vpop.f32.mrf.mxu0  ;;  %v4490_v43 = vld [vmem:[%s4821_s27] sm:$0xff] }
 0x3ae   : > { %v3647_v28 = vmax.f32 %v3615_v9, 0.0  ;;  %4364 = vmatmul.msk.f32.gmra.mxu2 %vm545_vm0, %v3350_v22 }
 0x3b0   : > { %4379 = vmatmul.msk.f32.gmra.mxu3 %vm545_vm0, %v3647_v28 }
 0x3b1   : > { %v3207_v32 = vpop.f32.mrf.mxu1  ;;  %v3514_v34 = vpop.f32.mrf.mxu2 }
 0x3b2   : > { %v3580_v4 = vadd.f32 %v3514_v34, %v3270_v35  ;;  %v3271_v57 = vadd.f32 %v3207_v32, %v2993_v39  ;;  %v2996_v32 = vadd.f32 %v2938_v53, %v2686_v26 }
 0x3b4   : > { %v3616_v0 = vadd.f32 %v6177_v16, %v3580_v4  ;;  %v4491_v4 = vld [vmem:[%s4821_s27 + $0x8] sm:$0xff]  ;;  %v2947_v23 = vpop.f32.mrf.mxu0 }
 0x3b6   : > { %v3648_v41 = vmax.f32 %v3616_v0, 0.0 }
 0x3b8   : > { %4380 = vmatmul.msk.f32.gmra.mxu3 %vm545_vm0, %v3648_v41 }
 0x3b9   : > { %v3210_v56 = vpop.f32.mrf.mxu1  ;;  %v3517_v40 = vpop.f32.mrf.mxu2 }
 0x3ba   : > { %v3581_v33 = vadd.f32 %v3517_v40, %v3271_v57  ;;  %v3272_v5 = vadd.f32 %v3210_v56, %v2994_v31  ;;  %v6889_v40 = vld [vmem:[#allocation51_spill] sm:$0xff]  ;;  %v4492_v31 = vld [vmem:[%s4821_s27 + $0x10] sm:$0xff] }
 0x3bc   : > { %v3617_v18 = vadd.f32 %v6177_v16, %v3581_v33  ;;  %v2687_v33 = vadd.f32 %v6201_v20, %v6889_v40 }
 0x3be   : > { %v3649_v61 = vmax.f32 %v3617_v18, 0.0  ;;  %v2997_v2 = vadd.f32 %v2941_v44, %v2687_v33 }
 0x3c0   : > { %4381 = vmatmul.msk.f32.gmra.mxu3 %vm545_vm0, %v3649_v61 }
 0x3c1   : > { %v3213_v36 = vpop.f32.mrf.mxu1  ;;  %v3520_v48 = vpop.f32.mrf.mxu2 }
 0x3c2   : > { %v3582_v21 = vadd.f32 %v3520_v48, %v3272_v5  ;;  %v3273_v50 = vadd.f32 %v3213_v36, %v2995_v29 }
 0x3c3   : > { %v3786_v38 = vpop.f32.mrf.mxu3 }
 0x3c4   : > { %v3618_v47 = vadd.f32 %v6177_v16, %v3582_v21  ;;  %v3787_v58 = vadd.f32 %v6371_v52, %v3786_v38  ;;  %v2950_v38 = vpop.f32.mrf.mxu0 }
 0x3c6   : > { %v3650_v37 = vmax.f32 %v3618_v47, 0.0  ;;  %v3882_v10 = vadd.f32 %v4490_v43, %v3787_v58  ;;  %v2688_v47 = vadd.f32 %v6221_v1, %v6890_v45  ;;  %v4493_v43 = vld [vmem:[%s4821_s27 + $0x18] sm:$0xff] }
 0x3c7   : > { %v6891_v1 = vld [vmem:[#allocation62_spill] sm:$0xff] }
 0x3c8   : > { %v3914_v22 = vmax.f32 %v3882_v10, 0.0  ;;  %4382 = vmatmul.msk.f32.gmra.mxu3 %vm545_vm0, %v3650_v37  ;;  %v2998_v29 = vadd.f32 %v2944_v63, %v2688_v47  ;;  %v2689_v25 = vadd.f32 %v6235_v46, %v6891_v1 }
 0x3c9   : > { %v3216_v62 = vpop.f32.mrf.mxu1  ;;  %v3523_v6 = vpop.f32.mrf.mxu2 }
 0x3ca   : > { %3946 = vst [vmem:[%s6382_s14] sm:$0xff] %v3914_v22  ;;  %v3583_v17 = vadd.f32 %v3523_v6, %v3273_v50  ;;  %v3274_v0 = vadd.f32 %v3216_v62, %v2996_v32 }
 0x3cb   : > { %v3789_v9 = vpop.f32.mrf.mxu3 }
 0x3cc   : > { %v3619_v28 = vadd.f32 %v6177_v16, %v3583_v17  ;;  %v3790_v35 = vadd.f32 %v6371_v52, %v3789_v9  ;;  %v2953_v26 = vpop.f32.mrf.mxu0 }
 0x3ce   : > { %v3651_v34 = vmax.f32 %v3619_v28, 0.0  ;;  %v3883_v54 = vadd.f32 %v4491_v4, %v3790_v35  ;;  %v2999_v35 = vadd.f32 %v2947_v23, %v2689_v25 }
 0x3d0   : > { %v3915_v39 = vmax.f32 %v3883_v54, 0.0  ;;  %4383 = vmatmul.msk.f32.gmra.mxu3 %vm545_vm0, %v3651_v34  ;;  %v4494_v34 = vld [vmem:[%s4821_s27 + $0x20] sm:$0xff] }
 0x3d1   : > { %v3219_v41 = vpop.f32.mrf.mxu1  ;;  %v3526_v57 = vpop.f32.mrf.mxu2 }
 0x3d2   : > { %3947 = vst [vmem:[%s6382_s14 + $0x8] sm:$0xff] %v3915_v39  ;;  %v3584_v56 = vadd.f32 %v3526_v57, %v3274_v0  ;;  %v3275_v5 = vadd.f32 %v3219_v41, %v2997_v2  ;;  %v4495_v2 = vld [vmem:[%s4821_s27 + $0x28] sm:$0xff] }
 0x3d3   : > { %v3792_v14 = vpop.f32.mrf.mxu3 }
 0x3d4   : > { %v3620_v53 = vadd.f32 %v6177_v16, %v3584_v56  ;;  %v3793_v11 = vadd.f32 %v6371_v52, %v3792_v14  ;;  %v6892_v56 = vld [vmem:[#allocation50_spill] sm:$0xff] }
 0x3d5   : > { %v2690_v14 = vadd.f32 %v6249_v19, %v6892_v56  ;;  %v4498_v56 = vld [vmem:[%s4821_s27 + $0x40] sm:$0xff] }
 0x3d6   : > { %v3652_v18 = vmax.f32 %v3620_v53, 0.0  ;;  %v3884_v61 = vadd.f32 %v4492_v31, %v3793_v11  ;;  %v2956_v53 = vpop.f32.mrf.mxu0 }
 0x3d7   : > { %v3000_v33 = vadd.f32 %v2950_v38, %v2690_v14 }
 0x3d8   : > { %v3916_v36 = vmax.f32 %v3884_v61, 0.0  ;;  %4384 = vmatmul.msk.f32.gmra.mxu3 %vm545_vm0, %v3652_v18 }
 0x3d9   : > { %v3222_v48 = vpop.f32.mrf.mxu1  ;;  %v3529_v21 = vpop.f32.mrf.mxu2 }
 0x3da   : > { %3948 = vst [vmem:[%s6382_s14 + $0x10] sm:$0xff] %v3916_v36  ;;  %v3585_v12 = vadd.f32 %v3529_v21, %v3275_v5  ;;  %v3276_v50 = vadd.f32 %v3222_v48, %v2998_v29  ;;  %v6893_v21 = vld [vmem:[#allocation63_spill] sm:$0xff] }
 0x3db   : > { %v3795_v20 = vpop.f32.mrf.mxu3 }
 0x3dc   : > { %v3621_v44 = vadd.f32 %v6177_v16, %v3585_v12  ;;  %v3796_v58 = vadd.f32 %v6371_v52, %v3795_v20  ;;  %v2691_v12 = vadd.f32 %v6264_v3, %v6893_v21 }
 0x3de   : > { %v3653_v37 = vmax.f32 %v3621_v44, 0.0  ;;  %v3885_v10 = vadd.f32 %v4493_v43, %v3796_v58  ;;  %v3001_v45 = vadd.f32 %v2953_v26, %v2691_v12  ;;  %v4496_v44 = vld [vmem:[%s4821_s27 + $0x30] sm:$0xff]  ;;  %v2959_v29 = vpop.f32.mrf.mxu0  ;;  %v4497_v26 = vld [vmem:[%s4821_s27 + $0x38] sm:$0xff] }
 0x3e0   : > { %v3917_v22 = vmax.f32 %v3885_v10, 0.0  ;;  %4385 = vmatmul.msk.f32.gmra.mxu3 %vm545_vm0, %v3653_v37 }
 0x3e1   : > { %v3225_v62 = vpop.f32.mrf.mxu1  ;;  %v3532_v6 = vpop.f32.mrf.mxu2 }
 0x3e2   : > { %3949 = vst [vmem:[%s6382_s14 + $0x18] sm:$0xff] %v3917_v22  ;;  %v3586_v17 = vadd.f32 %v3532_v6, %v3276_v50  ;;  %v3277_v54 = vadd.f32 %v3225_v62, %v2999_v35  ;;  %v6894_v62 = vld [vmem:[#allocation55_spill] sm:$0xff] }
 0x3e3   : > { %v3798_v9 = vpop.f32.mrf.mxu3  ;;  %v2692_v6 = vadd.f32 %v6284_v30, %v6894_v62 }
 0x3e4   : > { %v3622_v63 = vadd.f32 %v6177_v16, %v3586_v17  ;;  %v3799_v28 = vadd.f32 %v6371_v52, %v3798_v9 }
 0x3e5   : > { %v3002_v1 = vadd.f32 %v2956_v53, %v2692_v6 }
 0x3e6   : > { %v3654_v32 = vmax.f32 %v3622_v63, 0.0  ;;  %v3886_v4 = vadd.f32 %v4494_v34, %v3799_v28 }
 0x3e8   : > { %v3918_v0 = vmax.f32 %v3886_v4, 0.0  ;;  %4386 = vmatmul.msk.f32.gmra.mxu3 %vm545_vm0, %v3654_v32 }
 0x3e9   : > { %v3228_v39 = vpop.f32.mrf.mxu1  ;;  %v3535_v41 = vpop.f32.mrf.mxu2 }
 0x3ea   : > { %3950 = vst [vmem:[%s6382_s14 + $0x20] sm:$0xff] %v3918_v0  ;;  %v3587_v57 = vadd.f32 %v3535_v41, %v3277_v54  ;;  %v3278_v31 = vadd.f32 %v3228_v39, %v3000_v33  ;;  %v2962_v54 = vpop.f32.mrf.mxu0  ;;  %v2693_v0 = vadd.f32 %v6299_v7, %v6122_v55  ;;  %v2694_v55 = vadd.f32 %v6314_v15, %v6130_v59 }
 0x3eb   : > { %v3801_v46 = vpop.f32.mrf.mxu3  ;;  %v2695_v15 = vadd.f32 %v6328_v8, %v6138_v13  ;;  %v2696_v8 = vadd.f32 %v6344_v60, %v6144_v27  ;;  %v2697_v60 = vadd.f32 %v6355_v51, %v6153_v49  ;;  %v2698_v49 = vadd.f32 %v6362_v24, %v6163_v42 }
 0x3ec   : > { %v3623_v40 = vadd.f32 %v6177_v16, %v3587_v57  ;;  %v3802_v23 = vadd.f32 %v6371_v52, %v3801_v46  ;;  %v3003_v57 = vadd.f32 %v2959_v29, %v2693_v0  ;;  %v4500_v29 = vld [vmem:[%s4821_s27 + $0x50] sm:$0xff] }
 0x3ee   : > { %v3655_v11 = vmax.f32 %v3623_v40, 0.0  ;;  %v3887_v18 = vadd.f32 %v4495_v2, %v3802_v23 }
 0x3f0   : > { %v3919_v61 = vmax.f32 %v3887_v18, 0.0  ;;  %4387 = vmatmul.msk.f32.gmra.mxu3 %vm545_vm0, %v3655_v11 }
 0x3f1   : > { %v3231_v5 = vpop.f32.mrf.mxu1  ;;  %v3538_v36 = vpop.f32.mrf.mxu2 }
 0x3f2   : > { %3951 = vst [vmem:[%s6382_s14 + $0x28] sm:$0xff] %v3919_v61  ;;  %v3588_v48 = vadd.f32 %v3538_v36, %v3278_v31  ;;  %v3279_v37 = vadd.f32 %v3231_v5, %v3001_v45  ;;  %v2965_v31 = vpop.f32.mrf.mxu0  ;;  %v3004_v61 = vadd.f32 %v2962_v54, %v2694_v55  ;;  %v4499_v36 = vld [vmem:[%s4821_s27 + $0x48] sm:$0xff] }
 0x3f3   : > { %v3804_v19 = vpop.f32.mrf.mxu3 }
 0x3f4   : > { %v3624_v38 = vadd.f32 %v6177_v16, %v3588_v48  ;;  %v3805_v20 = vadd.f32 %v6371_v52, %v3804_v19 }
 0x3f6   : > { %v3656_v47 = vmax.f32 %v3624_v38, 0.0  ;;  %v3888_v58 = vadd.f32 %v4496_v44, %v3805_v20  ;;  %v3005_v44 = vadd.f32 %v2965_v31, %v2695_v15  ;;  %v4505_v15 = vld [vmem:[%s4821_s27 + $0x78] sm:$0xff] }
 0x3f8   : > { %v3920_v43 = vmax.f32 %v3888_v58, 0.0  ;;  %4388 = vmatmul.msk.f32.gmra.mxu3 %vm545_vm0, %v3656_v47 }
 0x3f9   : > { %v3234_v10 = vpop.f32.mrf.mxu1  ;;  %v3541_v50 = vpop.f32.mrf.mxu2 }
 0x3fa   : > { %3952 = vst [vmem:[%s6382_s14 + $0x30] sm:$0xff] %v3920_v43  ;;  %v3589_v22 = vadd.f32 %v3541_v50, %v3279_v37  ;;  %v3280_v28 = vadd.f32 %v3234_v10, %v3002_v1  ;;  %v2968_v43 = vpop.f32.mrf.mxu0 }
 0x3fb   : > { %v3807_v3 = vpop.f32.mrf.mxu3 }
 0x3fc   : > { %v3625_v17 = vadd.f32 %v6177_v16, %v3589_v22  ;;  %v3808_v9 = vadd.f32 %v6371_v52, %v3807_v3 }
 0x3fe   : > { %v3657_v25 = vmax.f32 %v3625_v17, 0.0  ;;  %v3889_v63 = vadd.f32 %v4497_v26, %v3808_v9  ;;  %v3006_v9 = vadd.f32 %v2968_v43, %v2696_v8  ;;  %v4508_v8 = vld [vmem:[%s4821_s27 + $0x90] sm:$0xff] }
 0x400   : > { %v3921_v35 = vmax.f32 %v3889_v63, 0.0  ;;  %4389 = vmatmul.msk.f32.gmra.mxu3 %vm545_vm0, %v3657_v25  ;;  %v4501_v25 = vld [vmem:[%s4821_s27 + $0x58] sm:$0xff] }
 0x401   : > { %v3237_v32 = vpop.f32.mrf.mxu1  ;;  %v3544_v34 = vpop.f32.mrf.mxu2 }
 0x402   : > { %3953 = vst [vmem:[%s6382_s14 + $0x38] sm:$0xff] %v3921_v35  ;;  %v3590_v4 = vadd.f32 %v3544_v34, %v3280_v28  ;;  %v3281_v40 = vadd.f32 %v3237_v32, %v3003_v57  ;;  %v2971_v35 = vpop.f32.mrf.mxu0 }
 0x403   : > { %v3810_v30 = vpop.f32.mrf.mxu3  ;;  %v3007_v0 = vadd.f32 %v2971_v35, %v2697_v60 }
 0x404   : > { %v3626_v39 = vadd.f32 %v6177_v16, %v3590_v4  ;;  %v3811_v41 = vadd.f32 %v6371_v52, %v3810_v30 }
 0x406   : > { %v3658_v46 = vmax.f32 %v3626_v39, 0.0  ;;  %v3890_v14 = vadd.f32 %v4498_v56, %v3811_v41  ;;  %v4502_v41 = vld [vmem:[%s4821_s27 + $0x60] sm:$0xff] }
 0x408   : > { %v3922_v23 = vmax.f32 %v3890_v14, 0.0  ;;  %4390 = vmatmul.msk.f32.gmra.mxu3 %vm545_vm0, %v3658_v46 }
 0x409   : > { %v3240_v33 = vpop.f32.mrf.mxu1  ;;  %v3547_v53 = vpop.f32.mrf.mxu2 }
 0x40a   : > { %3954 = vst [vmem:[%s6382_s14 + $0x40] sm:$0xff] %v3922_v23  ;;  %v3591_v11 = vadd.f32 %v3547_v53, %v3281_v40  ;;  %v3282_v19 = vadd.f32 %v3240_v33, %v3004_v61  ;;  %v2974_v23 = vpop.f32.mrf.mxu0 }
 0x40b   : > { %v3813_v2 = vpop.f32.mrf.mxu3 }
 0x40c   : > { %v3627_v7 = vadd.f32 %v6177_v16, %v3591_v11  ;;  %v3814_v18 = vadd.f32 %v6371_v52, %v3813_v2  ;;  %v3008_v2 = vadd.f32 %v2974_v23, %v2698_v49  ;;  %v4513_v23 = vld [vmem:[%s4821_s27 + $0xb8] sm:$0xff] }
 0x40e   : > { %v3659_v5 = vmax.f32 %v3627_v7, 0.0  ;;  %v3891_v48 = vadd.f32 %v4499_v36, %v3814_v18  ;;  %v4503_v7 = vld [vmem:[%s4821_s27 + $0x68] sm:$0xff] }
 0x410   : > { %v3923_v21 = vmax.f32 %v3891_v48, 0.0  ;;  %4391 = vmatmul.msk.f32.gmra.mxu3 %vm545_vm0, %v3659_v5 }
 0x411   : > { %v3243_v12 = vpop.f32.mrf.mxu1  ;;  %v3550_v38 = vpop.f32.mrf.mxu2 }
 0x412   : > { %3955 = vst [vmem:[%s6382_s14 + $0x48] sm:$0xff] %v3923_v21  ;;  %v3592_v20 = vadd.f32 %v3550_v38, %v3282_v19  ;;  %v3283_v10 = vadd.f32 %v3243_v12, %v3005_v44  ;;  %v4504_v21 = vld [vmem:[%s4821_s27 + $0x70] sm:$0xff] }
 0x413   : > { %v3816_v59 = vpop.f32.mrf.mxu3 }
 0x414   : > { %v3628_v45 = vadd.f32 %v6177_v16, %v3592_v20  ;;  %v3817_v47 = vadd.f32 %v6371_v52, %v3816_v59 }
 0x416   : > { %v3660_v58 = vmax.f32 %v3628_v45, 0.0  ;;  %v3892_v37 = vadd.f32 %v4500_v29, %v3817_v47 }
 0x418   : > { %v3924_v50 = vmax.f32 %v3892_v37, 0.0  ;;  %4392 = vmatmul.msk.f32.gmra.mxu3 %vm545_vm0, %v3660_v58  ;;  %v4506_v58 = vld [vmem:[%s4821_s27 + $0x80] sm:$0xff] }
 0x419   : > { %v3246_v22 = vpop.f32.mrf.mxu1  ;;  %v3553_v3 = vpop.f32.mrf.mxu2 }
 0x41a   : > { %3956 = vst [vmem:[%s6382_s14 + $0x50] sm:$0xff] %v3924_v50  ;;  %v3593_v62 = vadd.f32 %v3553_v3, %v3283_v10  ;;  %v3284_v63 = vadd.f32 %v3246_v22, %v3006_v9  ;;  %v4507_v50 = vld [vmem:[%s4821_s27 + $0x88] sm:$0xff] }
 0x41b   : > { %v3819_v13 = vpop.f32.mrf.mxu3 }
 0x41c   : > { %v3629_v6 = vadd.f32 %v6177_v16, %v3593_v62  ;;  %v3820_v17 = vadd.f32 %v6371_v52, %v3819_v13 }
 0x41e   : > { %v3661_v1 = vmax.f32 %v3629_v6, 0.0  ;;  %v3893_v26 = vadd.f32 %v4501_v25, %v3820_v17  ;;  %v4509_v25 = vld [vmem:[%s4821_s27 + $0x98] sm:$0xff] }
 0x420   : > { %v3925_v28 = vmax.f32 %v3893_v26, 0.0  ;;  %4393 = vmatmul.msk.f32.gmra.mxu3 %vm545_vm0, %v3661_v1 }
 0x421   : > { %v3556_v32 = vpop.f32.mrf.mxu2  ;;  %v3249_v4 = vpop.f32.mrf.mxu1 }
 0x422   : > { %3957 = vst [vmem:[%s6382_s14 + $0x58] sm:$0xff] %v3925_v28  ;;  %v3594_v34 = vadd.f32 %v3556_v32, %v3284_v63  ;;  %v3285_v46 = vadd.f32 %v3249_v4, %v3007_v0  ;;  %v4510_v32 = vld [vmem:[%s4821_s27 + $0xa0] sm:$0xff] }
 0x423   : > { %v3822_v27 = vpop.f32.mrf.mxu3 }
 0x424   : > { %v3630_v54 = vadd.f32 %v6177_v16, %v3594_v34  ;;  %v3823_v30 = vadd.f32 %v6371_v52, %v3822_v27 }
 0x426   : > { %v3662_v39 = vmax.f32 %v3630_v54, 0.0  ;;  %v3894_v57 = vadd.f32 %v4502_v41, %v3823_v30  ;;  %v4511_v54 = vld [vmem:[%s4821_s27 + $0xa8] sm:$0xff] }
 0x428   : > { %v3926_v56 = vmax.f32 %v3894_v57, 0.0  ;;  %4394 = vmatmul.msk.f32.gmra.mxu3 %vm545_vm0, %v3662_v39  ;;  %v4512_v57 = vld [vmem:[%s4821_s27 + $0xb0] sm:$0xff] }
 0x429   : > { %v3559_v14 = vpop.f32.mrf.mxu2  ;;  %v3252_v11 = vpop.f32.mrf.mxu1 }
 0x42a   : > { %3958 = vst [vmem:[%s6382_s14 + $0x60] sm:$0xff] %v3926_v56  ;;  %v3595_v40 = vadd.f32 %v3559_v14, %v3285_v46  ;;  %v3286_v31 = vadd.f32 %v3252_v11, %v3008_v2  ;;  %v4514_v11 = vld [vmem:[%s4821_s27 + $0xc0] sm:$0xff] }
 0x42b   : > { %v3825_v33 = vpop.f32.mrf.mxu3 }
 0x42c   : > { %v3631_v51 = vadd.f32 %v6177_v16, %v3595_v40  ;;  %v3826_v53 = vadd.f32 %v6371_v52, %v3825_v33 }
 0x42e   : > { %v3663_v55 = vmax.f32 %v3631_v51, 0.0  ;;  %v3895_v18 = vadd.f32 %v4503_v7, %v3826_v53 }
 0x430   : > { %v3927_v61 = vmax.f32 %v3895_v18, 0.0  ;;  %4395 = vmatmul.msk.f32.gmra.mxu3 %vm545_vm0, %v3663_v55 }
 0x431   : > { %v3562_v5 = vpop.f32.mrf.mxu2 }
 0x432   : > { %3959 = vst [vmem:[%s6382_s14 + $0x68] sm:$0xff] %v3927_v61  ;;  %v3596_v42 = vadd.f32 %v3562_v5, %v3286_v31  ;;  %v4515_v31 = vld [vmem:[%s4821_s27 + $0xc8] sm:$0xff] }
 0x433   : > { %v3828_v24 = vpop.f32.mrf.mxu3 }
 0x434   : > { %v3632_v36 = vadd.f32 %v6177_v16, %v3596_v42  ;;  %v3829_v48 = vadd.f32 %v6371_v52, %v3828_v24 }
 0x436   : > { %v3664_v19 = vmax.f32 %v3632_v36, 0.0  ;;  %v3896_v12 = vadd.f32 %v4504_v21, %v3829_v48  ;;  %v4516_v36 = vld [vmem:[%s4821_s27 + $0xd0] sm:$0xff] }
 0x438   : > { %v3928_v38 = vmax.f32 %v3896_v12, 0.0  ;;  %4396 = vmatmul.msk.f32.gmra.mxu3 %vm545_vm0, %v3664_v19 }
 0x43a   : > { %3960 = vst [vmem:[%s6382_s14 + $0x70] sm:$0xff] %v3928_v38  ;;  %v4517_v38 = vld [vmem:[%s4821_s27 + $0xd8] sm:$0xff] }
 0x43b   : > { %v3831_v20 = vpop.f32.mrf.mxu3 }
 0x43c   : > { %v3832_v59 = vadd.f32 %v6371_v52, %v3831_v20 }
 0x43e   : > { %v3897_v45 = vadd.f32 %v4505_v15, %v3832_v59 }
 0x440   : > { %v3929_v47 = vmax.f32 %v3897_v45, 0.0 }
 0x442   : > { %3961 = vst [vmem:[%s6382_s14 + $0x78] sm:$0xff] %v3929_v47  ;;  %v4518_v47 = vld [vmem:[%s4821_s27 + $0xe0] sm:$0xff] }
 0x443   : > { %v3834_v16 = vpop.f32.mrf.mxu3 }
 0x444   : > { %v3835_v44 = vadd.f32 %v6371_v52, %v3834_v16 }
 0x446   : > { %v3898_v29 = vadd.f32 %v4506_v58, %v3835_v44 }
 0x448   : > { %v3930_v37 = vmax.f32 %v3898_v29, 0.0 }
 0x44a   : > { %3962 = vst [vmem:[%s6382_s14 + $0x80] sm:$0xff] %v3930_v37  ;;  %v4519_v37 = vld [vmem:[%s4821_s27 + $0xe8] sm:$0xff] }
 0x44b   : > { %v3837_v43 = vpop.f32.mrf.mxu3 }
 0x44c   : > { %v3838_v10 = vadd.f32 %v6371_v52, %v3837_v43 }
 0x44e   : > { %v3899_v22 = vadd.f32 %v4507_v50, %v3838_v10 }
 0x450   : > { %v3931_v3 = vmax.f32 %v3899_v22, 0.0 }
 0x452   : > { %3963 = vst [vmem:[%s6382_s14 + $0x88] sm:$0xff] %v3931_v3  ;;  %v4520_v3 = vld [vmem:[%s4821_s27 + $0xf0] sm:$0xff] }
 0x453   : > { %v3840_v62 = vpop.f32.mrf.mxu3 }
 0x454   : > { %v3841_v13 = vadd.f32 %v6371_v52, %v3840_v62 }
 0x456   : > { %v3900_v6 = vadd.f32 %v4508_v8, %v3841_v13 }
 0x458   : > { %v3932_v17 = vmax.f32 %v3900_v6, 0.0 }
 0x45a   : > { %3964 = vst [vmem:[%s6382_s14 + $0x90] sm:$0xff] %v3932_v17  ;;  %v4521_v17 = vld [vmem:[%s4821_s27 + $0xf8] sm:$0xff] }
 0x45b   : > { %v3843_v9 = vpop.f32.mrf.mxu3 }
 0x45c   : > { %v3844_v1 = vadd.f32 %v6371_v52, %v3843_v9 }
 0x45e   : > { %v3901_v26 = vadd.f32 %v4509_v25, %v3844_v1 }
 0x460   : > { %v3933_v63 = vmax.f32 %v3901_v26, 0.0 }
 0x462   : > { %3965 = vst [vmem:[%s6382_s14 + $0x98] sm:$0xff] %v3933_v63 }
 0x463   : > { %v3846_v28 = vpop.f32.mrf.mxu3 }
 0x464   : > { %v3847_v35 = vadd.f32 %v6371_v52, %v3846_v28 }
 0x466   : > { %v3902_v34 = vadd.f32 %v4510_v32, %v3847_v35 }
 0x468   : > { %v3934_v4 = vmax.f32 %v3902_v34, 0.0 }
 0x46a   : > { %3966 = vst [vmem:[%s6382_s14 + $0xa0] sm:$0xff] %v3934_v4 }
 0x46b   : > { %v3849_v27 = vpop.f32.mrf.mxu3 }
 0x46c   : > { %v3850_v60 = vadd.f32 %v6371_v52, %v3849_v27 }
 0x46e   : > { %v3903_v30 = vadd.f32 %v4511_v54, %v3850_v60 }
 0x470   : > { %v3935_v0 = vmax.f32 %v3903_v30, 0.0 }
 0x472   : > { %3967 = vst [vmem:[%s6382_s14 + $0xa8] sm:$0xff] %v3935_v0 }
 0x473   : > { %v3852_v39 = vpop.f32.mrf.mxu3 }
 0x474   : > { %v3853_v41 = vadd.f32 %v6371_v52, %v3852_v39 }
 0x476   : > { %v3904_v46 = vadd.f32 %v4512_v57, %v3853_v41 }
 0x478   : > { %v3936_v56 = vmax.f32 %v3904_v46, 0.0 }
 0x47a   : > { %3968 = vst [vmem:[%s6382_s14 + $0xb0] sm:$0xff] %v3936_v56 }
 0x47b   : > { %v3855_v14 = vpop.f32.mrf.mxu3 }
 0x47c   : > { %v3856_v40 = vadd.f32 %v6371_v52, %v3855_v14 }
 0x47e   : > { %v3905_v33 = vadd.f32 %v4513_v23, %v3856_v40 }
 0x480   : > { %v3937_v49 = vmax.f32 %v3905_v33, 0.0 }
 0x482   : > { %3969 = vst [vmem:[%s6382_s14 + $0xb8] sm:$0xff] %v3937_v49 }
 0x483   : > { %v3858_v51 = vpop.f32.mrf.mxu3 }
 0x484   : > { %v3859_v53 = vadd.f32 %v6371_v52, %v3858_v51 }
 0x486   : > { %v3906_v2 = vadd.f32 %v4514_v11, %v3859_v53 }
 0x488   : > { %v3938_v55 = vmax.f32 %v3906_v2, 0.0 }
 0x48a   : > { %3970 = vst [vmem:[%s6382_s14 + $0xc0] sm:$0xff] %v3938_v55 }
 0x48b   : > { %v3861_v7 = vpop.f32.mrf.mxu3 }
 0x48c   : > { %v3862_v18 = vadd.f32 %v6371_v52, %v3861_v7 }
 0x48e   : > { %v3907_v61 = vadd.f32 %v4515_v31, %v3862_v18 }
 0x490   : > { %v3939_v5 = vmax.f32 %v3907_v61, 0.0 }
 0x492   : > { %3971 = vst [vmem:[%s6382_s14 + $0xc8] sm:$0xff] %v3939_v5 }
 0x493   : > { %v3864_v42 = vpop.f32.mrf.mxu3 }
 0x494   : > { %v3865_v24 = vadd.f32 %v6371_v52, %v3864_v42 }
 0x496   : > { %v3908_v48 = vadd.f32 %v4516_v36, %v3865_v24 }
 0x498   : > { %v3940_v19 = vmax.f32 %v3908_v48, 0.0 }
 0x49a   : > { %3972 = vst [vmem:[%s6382_s14 + $0xd0] sm:$0xff] %v3940_v19 }
 0x49b   : > { %v3867_v21 = vpop.f32.mrf.mxu3 }
 0x49c   : > { %v3868_v12 = vadd.f32 %v6371_v52, %v3867_v21 }
 0x49e   : > { %v3909_v20 = vadd.f32 %v4517_v38, %v3868_v12 }
 0x4a0   : > { %v3941_v59 = vmax.f32 %v3909_v20, 0.0 }
 0x4a2   : > { %3973 = vst [vmem:[%s6382_s14 + $0xd8] sm:$0xff] %v3941_v59 }
 0x4a3   : > { %v3870_v15 = vpop.f32.mrf.mxu3 }
 0x4a4   : > { %v3871_v45 = vadd.f32 %v6371_v52, %v3870_v15 }
 0x4a6   : > { %v3910_v16 = vadd.f32 %v4518_v47, %v3871_v45 }
 0x4a8   : > { %v3942_v44 = vmax.f32 %v3910_v16, 0.0 }
 0x4aa   : > { %3974 = vst [vmem:[%s6382_s14 + $0xe0] sm:$0xff] %v3942_v44 }
 0x4ab   : > { %v3873_v58 = vpop.f32.mrf.mxu3 }
 0x4ac   : > { %v3874_v29 = vadd.f32 %v6371_v52, %v3873_v58 }
 0x4ae   : > { %v3911_v43 = vadd.f32 %v4519_v37, %v3874_v29 }
 0x4b0   : > { %v3943_v10 = vmax.f32 %v3911_v43, 0.0 }
 0x4b2   : > { %3975 = vst [vmem:[%s6382_s14 + $0xe8] sm:$0xff] %v3943_v10 }
 0x4b3   : > { %v3876_v50 = vpop.f32.mrf.mxu3 }
 0x4b4   : > { %v3877_v22 = vadd.f32 %v6371_v52, %v3876_v50 }
 0x4b6   : > { %v3912_v62 = vadd.f32 %v4520_v3, %v3877_v22 }
 0x4b8   : > { %v3944_v13 = vmax.f32 %v3912_v62, 0.0 }
 0x4ba   : > { %3976 = vst [vmem:[%s6382_s14 + $0xf0] sm:$0xff] %v3944_v13 }
 0x4bb   : > { %v3879_v8 = vpop.f32.mrf.mxu3 }
 0x4bc   : > { %v3880_v6 = vadd.f32 %v6371_v52, %v3879_v8 }
 0x4be   : > { %v3913_v9 = vadd.f32 %v4521_v17, %v3880_v6 }
 0x4c0   : > { %v3945_v1 = vmax.f32 %v3913_v9, 0.0 }
 0x4c2   : > { %3977 = vst [vmem:[%s6382_s14 + $0xf8] sm:$0xff] %v3945_v1 }
 0x4c3   : > { %4579 = shalt.err (!%p4576_p8)
}
 0x4c4   : > { %s4625_s28 = smov 128   ;;  %s4626_s14 = smov 8  }
 0x4c5   : > { %4420 = dma.vmem_to_hbm [thread:$0]  (%p4715_p5), %s3992_s24, 4096, %s3994_s25, %s3979_s13, %s4625_s28, %s4625_s28, %s4626_s14  }
 0x4c6 PF: > { %p4432_p9 = scmp.ge.s32.totalorder %s4618_s12, 2  ;;  %s4008_s23 = sand.u32 1, %s4606_s30  }
 0x4c7   : > { %s4009_s29 = scalar_lea.sflag [#allocation5], %s4008_s23 }
 0x4c8   : > { %p4427_p10 = pnand %p4432_p9, %p4719_p6 }
 0x4ca   : > { %p4428_p11 = pneg %p4427_p10 }
 0x4cc   : > { %4601 = dma.done.wait (%p4428_p11), %s4009_s29, 4096  }
 0x4cd   : > { %4603 = vsyncadd (%p4428_p11), %s4009_s29, 4294963200  ;;  %p20_p12 = scmp.ge.s32.totalorder %s4702_s15, 4   ;;  %s6895_s30 = smov %s4610_s10 }
 0x4ce   : > { %s6896_s10 = smov %s4614_s11  ;;  %s6897_s11 = smov %s4713_s18 }
 0x4cf   : > { %s6898_s12 = smov %s4702_s15  ;;  %22 = sbr.rel (!%p20_p12) target bundleno = 4 (0x4), region = 104 }
 0x4d4   :  { %4015 = vsyncpa [#allocation4], 1 }
 0x4d5   :  { %4017 = vsyncpa [#allocation4 + $0x1], 1 }
 0x4d6   :  { %4018 = vsyncpa [#allocation5], 1 }
 0x4d7   :  { %4020 = vsyncpa [#allocation5 + $0x1], 1 }

</bundles_post_ra>
